<compile_context>
chip_gen: v6e
topology: v6e:2x2x1
jax: 0.10.0
libtpu: 0.0.40
codegen_flags: <defaults>
</compile_context>

<pallas_src>
import functools

import jax
import jax.numpy as jnp
from jax.experimental import pallas as pl
from jax.experimental.pallas import tpu as pltpu


def jigsaw_head_kernel(x_ref, w_ref, b_ref, o_ref):
    """One grid step at (n = class tile [parallel], t = tile group [arbitrary]).

    x_ref: (TG, B, HW, C)   bf16  backbone features for TG jigsaw tiles
    w_ref: (TG, C, TILE_N)  bf16  Linear weight slice, pre-scaled by 1/(H*W)
    b_ref: (1, TILE_N)      f32
    o_ref: (B, TILE_N)      f32   accumulator, resident across the t axis
    """
    t = pl.program_id(1)

    @pl.when(t == 0)
    def _init():
        o_ref[...] = jnp.broadcast_to(b_ref[...], o_ref.shape)

    tg = x_ref.shape[0]
    acc = jnp.zeros(o_ref.shape, jnp.float32)
    for g in range(tg):  # TG <= 3, statically unrolled
        # AdaptiveAvgPool2d((1,1)): sum over H*W in f32; 1/(H*W) is folded
        # into the pre-computed weight.
        pooled = jnp.sum(x_ref[g].astype(jnp.float32), axis=1)            # (B, C)
        acc = acc + jnp.dot(pooled.astype(jnp.bfloat16), w_ref[g],
                            preferred_element_type=jnp.float32)           # MXU, f32 acc
    o_ref[...] += acc


def prepare_jigsaw_head_params(weight, bias, *, T, C, H, W):
    """One-time parameter prep. Do NOT run per forward call.

    weight: (T*C, CLS) f32 -- transpose of PyTorch nn.Linear's (CLS, T*C) layout.
    bias:   (CLS,)     f32
    Returns (w_bf, b_pad, cls):
      w_bf : (T, C, CLSP) bf16, lane-padded classes, pre-scaled by 1/(H*W)
      b_pad: (1, CLSP)    f32
    """
    IN, CLS = weight.shape
    assert IN == T * C, (
        f"weight must be (T*C, classes) = ({T * C}, classes); got {weight.shape}. "
        "PyTorch stores nn.Linear weight as (classes, T*C) -- transpose it first.")
    assert bias.shape == (CLS,)
    CLSP = ((CLS + 127) // 128) * 128            # lane-pad classes: 1000 -> 1024
    inv_hw = 1.0 / float(H * W)
    w_scaled = weight.astype(jnp.float32) * inv_hw
    w_bf = jnp.pad(w_scaled, ((0, 0), (0, CLSP - CLS))).reshape(T, C, CLSP)
    w_bf = w_bf.astype(jnp.bfloat16)
    b_pad = jnp.pad(bias.astype(jnp.float32), (0, CLSP - CLS)).reshape(1, CLSP)
    return w_bf, b_pad, int(CLS)


@functools.partial(jax.jit, static_argnames=("cls",))
def jigsaw_head_apply(x, w_bf, b_pad, *, cls):
    """Forward: AdaptiveAvgPool2d((1,1)) -> flatten(B, T*C) -> Linear.

    x:     (B, T, C, H, W) f32   (cast to bf16 on the way in)
    w_bf:  (T, C, CLSP)    bf16  (from prepare_jigsaw_head_params)
    b_pad: (1, CLSP)       f32
    returns (B, cls) f32
    """
    B, T, C, H, W = x.shape
    Tw, Cw, CLSP = w_bf.shape
    assert (Tw, Cw) == (T, C)
    HW = H * W

    # bf16 cast BEFORE the transpose halves the layout-plumbing HBM traffic;
    # allow_input_fusion lets XLA fold this into the pallas_call input pipeline.
    x_bf = x.astype(jnp.bfloat16).reshape(B, T, C, HW).transpose(1, 0, 3, 2)  # (T,B,HW,C)

    # Class-tile size (parallel axis -> feeds v7x's 2 TensorCores; harmless on
    # v5e/v6e where the single core just iterates it).
    if CLSP % 512 == 0:
        TILE_N = 512
    elif CLSP % 256 == 0:
        TILE_N = 256
    else:
        TILE_N = 128
    # Group T in 3s -> ~1.5 MiB weight blocks per step (DMA >> per-step overhead).
    TG = 3 if T % 3 == 0 else 1
    grid = (CLSP // TILE_N, T // TG)

    # NOTE: at training batch sizes, add a "parallel" B grid axis with an x
    # block (TG, TILE_B, HW, C) and out block (TILE_B, TILE_N); at B=2 the
    # full-B block easily fits VMEM.
    out = pl.pallas_call(
        jigsaw_head_kernel,
        out_shape=jax.ShapeDtypeStruct((B, CLSP), jnp.float32),
        grid_spec=pltpu.PrefetchScalarGridSpec(
            num_scalar_prefetch=0,
            grid=grid,
            in_specs=[
                pl.BlockSpec((TG, B, HW, C), lambda n, t: (t, 0, 0, 0)),
                pl.BlockSpec((TG, C, TILE_N), lambda n, t: (t, 0, n)),
                pl.BlockSpec((1, TILE_N), lambda n, t: (0, n)),
            ],
            out_specs=pl.BlockSpec((B, TILE_N), lambda n, t: (0, n)),
        ),
        compiler_params=pltpu.CompilerParams(
            dimension_semantics=("parallel", "arbitrary"),
            allow_input_fusion=[True, False, False],
        ),
    )(x_bf, w_bf, b_pad)
    return out[:, :cls]


if __name__ == "__main__":
    # backbone='resnet18', classes=1000 (module default): Linear(512*9, 1000)
    B, T, C, H, W = 2, 9, 512, 7, 7
    CLASSES = 1000
    IN = T * C

    key = jax.random.PRNGKey(0)
    kx, kw, kb = jax.random.split(key, 3)
    x = jax.random.normal(kx, (B, T, C, H, W), dtype=jnp.float32)
    bound = 1.0 / jnp.sqrt(IN)
    weight = jax.random.uniform(kw, (IN, CLASSES), dtype=jnp.float32,
                                minval=-bound, maxval=bound)
    bias = jax.random.uniform(kb, (CLASSES,), dtype=jnp.float32,
                              minval=-bound, maxval=bound)

    # One-time parameter prep (hoisted out of the per-call path).
    w_bf, b_pad, cls = prepare_jigsaw_head_params(weight, bias, T=T, C=C, H=H, W=W)

    out = jigsaw_head_apply(x, w_bf, b_pad, cls=cls)
    jax.block_until_ready(out)

    # Plain-JAX f32 reference: same math as the PyTorch module
    # (pool over H,W -> squeeze -> view(B, -1) -> linear).
    pooled = jnp.mean(x, axis=(3, 4)).reshape(B, IN)
    ref = pooled @ weight + bias

    assert out.shape == (B, CLASSES)
    # Kernel runs x/weight in bf16 (f32 accumulation) -> allow bf16-level error.
    assert jnp.allclose(out, ref, atol=2e-2, rtol=2e-2), \
        float(jnp.max(jnp.abs(out - ref)))

    print("KERNEL_OK")
</pallas_src>

<mosaic_0001>
module attributes {stable_mosaic.version = 11 : i64} {
  func.func @jigsaw_head_kernel(%arg0: i32, %arg1: i32, %arg2: memref<3x2x49x512xbf16, #tpu.memory_space<vmem>>, %arg3: memref<3x512x512xbf16, #tpu.memory_space<vmem>>, %arg4: memref<1x512xf32, #tpu.memory_space<vmem>>, %arg5: memref<2x512xf32, #tpu.memory_space<vmem>>) attributes {dimension_semantics = [#tpu.dimension_semantics<parallel>, #tpu.dimension_semantics<arbitrary>], iteration_bounds = array<i64: 2, 3>, scalar_prefetch = 0 : i64, scratch_operands = 0 : i64, tpu.core_type = #tpu.core_type<tc>, window_params = [{transform_indices = @transform_0, window_bounds = array<i64: 3, 2, 49, 512>}, {transform_indices = @transform_1, window_bounds = array<i64: 3, 512, 512>}, {transform_indices = @transform_2, window_bounds = array<i64: 1, 512>}, {transform_indices = @transform_3, window_bounds = array<i64: 2, 512>}]} {
    %c0_i32 = arith.constant 0 : i32
    %0 = arith.cmpi eq, %arg1, %c0_i32 : i32
    %1 = arith.extui %0 : i1 to i32
    %c0_i32_0 = arith.constant 0 : i32
    %2 = arith.cmpi ne, %1, %c0_i32_0 : i32
    scf.if %2 {
      %c0_29 = arith.constant 0 : index
      %c0_30 = arith.constant 0 : index
      %34 = vector.load %arg4[%c0_29, %c0_30] : memref<1x512xf32, #tpu.memory_space<vmem>>, vector<1x512xf32>
      %35 = vector.shape_cast %34 : vector<1x512xf32> to vector<1x512xf32>
      %36 = vector.broadcast %35 : vector<1x512xf32> to vector<2x512xf32>
      %c0_31 = arith.constant 0 : index
      %c0_32 = arith.constant 0 : index
      %37 = vector.load %arg5[%c0_31, %c0_32] : memref<2x512xf32, #tpu.memory_space<vmem>>, vector<2x512xf32>
      tpu.vector_store %arg5[%c0_31, %c0_32], %36 {strides = array<i32>} : memref<2x512xf32, #tpu.memory_space<vmem>>, vector<2x512xf32>,
    } else {
    }
    %cst = arith.constant 0.000000e+00 : f32
    %3 = vector.broadcast %cst : f32 to vector<2x512xf32>
    %c0 = arith.constant 0 : index
    %c0_1 = arith.constant 0 : index
    %c0_2 = arith.constant 0 : index
    %c0_3 = arith.constant 0 : index
    %4 = vector.load %arg2[%c0, %c0_1, %c0_2, %c0_3] : memref<3x2x49x512xbf16, #tpu.memory_space<vmem>>, vector<1x2x49x512xbf16>
    %5 = vector.shape_cast %4 : vector<1x2x49x512xbf16> to vector<2x49x512xbf16>
    %6 = arith.extf %5 : vector<2x49x512xbf16> to vector<2x49x512xf32>
    %cst_4 = arith.constant dense<0.000000e+00> : vector<2x512xf32>
    %7 = vector.multi_reduction <add>, %6, %cst_4 [1] : vector<2x49x512xf32> to vector<2x512xf32>
    %8 = arith.truncf %7 : vector<2x512xf32> to vector<2x512xbf16>
    %c0_5 = arith.constant 0 : index
    %c0_6 = arith.constant 0 : index
    %c0_7 = arith.constant 0 : index
    %9 = vector.load %arg3[%c0_5, %c0_6, %c0_7] : memref<3x512x512xbf16, #tpu.memory_space<vmem>>, vector<1x512x512xbf16>
    %10 = vector.shape_cast %9 : vector<1x512x512xbf16> to vector<512x512xbf16>
    %cst_8 = arith.constant dense<0.000000e+00> : vector<2x512xf32>
    %11 = tpu.matmul %8, %10, %cst_8 {dimension_numbers = #tpu.dot_dimension_numbers<[1], [0], [0], [1], [0, 0, 1, 1], [], []>} : vector<2x512xbf16>, vector<512x512xbf16>, vector<2x512xf32> -> vector<2x512xf32>
    %12 = arith.addf %3, %11 : vector<2x512xf32>
    %c1 = arith.constant 1 : index
    %c0_9 = arith.constant 0 : index
    %c0_10 = arith.constant 0 : index
    %c0_11 = arith.constant 0 : index
    %13 = vector.load %arg2[%c1, %c0_9, %c0_10, %c0_11] : memref<3x2x49x512xbf16, #tpu.memory_space<vmem>>, vector<1x2x49x512xbf16>
    %14 = vector.shape_cast %13 : vector<1x2x49x512xbf16> to vector<2x49x512xbf16>
    %15 = arith.extf %14 : vector<2x49x512xbf16> to vector<2x49x512xf32>
    %cst_12 = arith.constant dense<0.000000e+00> : vector<2x512xf32>
    %16 = vector.multi_reduction <add>, %15, %cst_12 [1] : vector<2x49x512xf32> to vector<2x512xf32>
    %17 = arith.truncf %16 : vector<2x512xf32> to vector<2x512xbf16>
    %c1_13 = arith.constant 1 : index
    %c0_14 = arith.constant 0 : index
    %c0_15 = arith.constant 0 : index
    %18 = vector.load %arg3[%c1_13, %c0_14, %c0_15] : memref<3x512x512xbf16, #tpu.memory_space<vmem>>, vector<1x512x512xbf16>
    %19 = vector.shape_cast %18 : vector<1x512x512xbf16> to vector<512x512xbf16>
    %cst_16 = arith.constant dense<0.000000e+00> : vector<2x512xf32>
    %20 = tpu.matmul %17, %19, %cst_16 {dimension_numbers = #tpu.dot_dimension_numbers<[1], [0], [0], [1], [0, 0, 1, 1], [], []>} : vector<2x512xbf16>, vector<512x512xbf16>, vector<2x512xf32> -> vector<2x512xf32>
    %21 = arith.addf %12, %20 : vector<2x512xf32>
    %c2 = arith.constant 2 : index
    %c0_17 = arith.constant 0 : index
    %c0_18 = arith.constant 0 : index
    %c0_19 = arith.constant 0 : index
    %22 = vector.load %arg2[%c2, %c0_17, %c0_18, %c0_19] : memref<3x2x49x512xbf16, #tpu.memory_space<vmem>>, vector<1x2x49x512xbf16>
    %23 = vector.shape_cast %22 : vector<1x2x49x512xbf16> to vector<2x49x512xbf16>
    %24 = arith.extf %23 : vector<2x49x512xbf16> to vector<2x49x512xf32>
    %cst_20 = arith.constant dense<0.000000e+00> : vector<2x512xf32>
    %25 = vector.multi_reduction <add>, %24, %cst_20 [1] : vector<2x49x512xf32> to vector<2x512xf32>
    %26 = arith.truncf %25 : vector<2x512xf32> to vector<2x512xbf16>
    %c2_21 = arith.constant 2 : index
    %c0_22 = arith.constant 0 : index
    %c0_23 = arith.constant 0 : index
    %27 = vector.load %arg3[%c2_21, %c0_22, %c0_23] : memref<3x512x512xbf16, #tpu.memory_space<vmem>>, vector<1x512x512xbf16>
    %28 = vector.shape_cast %27 : vector<1x512x512xbf16> to vector<512x512xbf16>
    %cst_24 = arith.constant dense<0.000000e+00> : vector<2x512xf32>
    %29 = tpu.matmul %26, %28, %cst_24 {dimension_numbers = #tpu.dot_dimension_numbers<[1], [0], [0], [1], [0, 0, 1, 1], [], []>} : vector<2x512xbf16>, vector<512x512xbf16>, vector<2x512xf32> -> vector<2x512xf32>
    %30 = arith.addf %21, %29 : vector<2x512xf32>
    %c0_25 = arith.constant 0 : index
    %c0_26 = arith.constant 0 : index
    %31 = vector.load %arg5[%c0_25, %c0_26] : memref<2x512xf32, #tpu.memory_space<vmem>>, vector<2x512xf32>
    %32 = arith.addf %31, %30 : vector<2x512xf32>
    %c0_27 = arith.constant 0 : index
    %c0_28 = arith.constant 0 : index
    %33 = vector.load %arg5[%c0_27, %c0_28] : memref<2x512xf32, #tpu.memory_space<vmem>>, vector<2x512xf32>
    tpu.vector_store %arg5[%c0_27, %c0_28], %32 {strides = array<i32>} : memref<2x512xf32, #tpu.memory_space<vmem>>, vector<2x512xf32>,
    return
  }
  func.func @transform_0(%arg0: i32, %arg1: i32) -> (i32, i32, i32, i32) {
    %c0_i32 = arith.constant 0 : i32
    %c0_i32_0 = arith.constant 0 : i32
    %c0_i32_1 = arith.constant 0 : i32
    %c0_i32_2 = arith.constant 0 : i32
    return %arg1, %c0_i32, %c0_i32_0, %c0_i32_1 : i32, i32, i32, i32
  }
  func.func @transform_1(%arg0: i32, %arg1: i32) -> (i32, i32, i32) {
    %c0_i32 = arith.constant 0 : i32
    %c0_i32_0 = arith.constant 0 : i32
    return %arg1, %c0_i32, %arg0 : i32, i32, i32
  }
  func.func @transform_2(%arg0: i32, %arg1: i32) -> (i32, i32) {
    %c0_i32 = arith.constant 0 : i32
    %c0_i32_0 = arith.constant 0 : i32
    return %c0_i32, %arg0 : i32, i32
  }
  func.func @transform_3(%arg0: i32, %arg1: i32) -> (i32, i32) {
    %c0_i32 = arith.constant 0 : i32
    %c0_i32_0 = arith.constant 0 : i32
    return %c0_i32, %arg0 : i32, i32
  }
}

</mosaic_0001>

<bundles_post_ra>
// kernel: jigsaw_head_apply.2
= control target key start
LH: loop header
LB: loop body
LE: loop exit
PB: predicated region body
PF: predicated region fallthrough
CT: control target
= control target key end

     0   :  { %s9004_s0 = inlined_call_operand.hbm [shape: bf16[9,512,1024], index: 0, kind: input, shape index: {}]   ;;  %s9005_s1 = inlined_call_operand.hbm [shape: f32[1,1024], index: 1, kind: input, shape index: {}]   ;;  %s9006_s2 = inlined_call_operand.vmem [shape: bf16[2,9,512,49], index: 2, kind: input, shape index: {}]   ;;  %s9007_s3 = inlined_call_operand.hbm [shape: f32[2,1024], index: 3, kind: output, shape index: {}]  }
   0x1   :  { %9011 = sst [smem:[#allocation14_spill]] %s9004_s0 }
   0x2   :  { %9012 = sst [smem:[#allocation15_spill]] %s9007_s3 }
   0x3   :  { %8 = vsyncpa [#allocation3], 0 }
   0x4   :  { %10 = vsyncpa [#allocation3 + $0x1], 0 }
   0x5   :  { %11 = vsyncpa [#allocation6], 0 }
   0x6   :  { %13 = vsyncpa [#allocation6 + $0x1], 0 }
   0x7   :  { %14 = vsyncpa [#allocation4], 0 }
   0x8   :  { %16 = vsyncpa [#allocation4 + $0x1], 0  ;;  %s7773_s12 = smov 0   ;;  %s7775_s13 = smov 0  }
   0x9   :  { %s7777_s14 = smov 0   ;;  %s7779_s15 = smov 0  }
   0xa   :  { %s7781_s16 = smov 0   ;;  %s7783_s17 = smov 0  }
   0xb   :  { %s7785_s18 = smov 0   ;;  %s7787_s19 = smov 0  }
   0xc   :  { %s7789_s20 = smov 0   ;;  %s7791_s21 = smov 0  }
   0xd   :  { %s7793_s22 = smov 0  }
   0xe LB: > { %9013 = sst [smem:[#allocation12_spill]] %s7731_s19  ;;  %s31_s23 = sadd.s32 1, %s7735_s20  ;;  %s7743_s22 = sphi %s7793_s22, %s22_s22   ;;  %s7739_s21 = sphi %s7791_s21, %s9061_s21   ;;  %s7735_s20 = sphi %s7789_s20, %s9060_s20   ;;  %s7731_s19 = sphi %s7787_s19, %s9059_s19   ;;  %s7727_s18 = sphi %s7785_s18, %s9058_s18   ;;  %s7723_s17 = sphi %s7783_s17, %s9057_s17   ;;  %s7719_s16 = sphi %s7781_s16, %s9056_s16   ;;  %s7715_s15 = sphi %s7779_s15, %s9055_s15   ;;  %s7711_s14 = sphi %s7777_s14, %s9054_s14   ;;  %s7707_s13 = sphi %s7775_s13, %s9053_s13   ;;  %s7703_s12 = sphi %s7773_s12, %s9052_s12  }
   0xf   : > { %p7829_p0 = scmp.ge.s32.totalorder %s31_s23, 3  ;;  %p76_p1 = scmp.ne.s32.totalorder %s7723_s17, %s7719_s16 }
  0x10   : > { %p77_p2 = scmp.eq.s32.totalorder %s7743_s22, 0  ;;  %p6809_p4 = scmp.lt.s32.totalorder %s7743_s22, 6 }
  0x11   : > { %s9063_s23 = smov (%p7829_p0, %s31_s23), 0  ;;  %s168_s26 = sand.u32 1, %s7723_s17  }
  0x12   : > { %p78_p3 = por %p77_p2, %p76_p1  ;;  %s6789_s27 = smul.u32 3072, %s168_s26 }
  0x13   : > { %s5465_s28 = sshll.u32 %s7739_s21, 2  ;;  %s6288_s29 = smul.u32 1536, %s7735_s20 }
  0x14   : > { %p7849_p5 = pnand %p6809_p4, %p78_p3  ;;  %s172_s5 = scalar_lea.vmem [#allocation2], %s6789_s27 }
  0x15   : > { %s179_s4 = sadd.s32 %s6288_s29, %s5465_s28  ;;  %s182_s6 = sshll.u32 %s172_s5, 4  ;;  %s183_s6 = int_to_ptr.vmem [resolvable:$true] %s182_s6 }
  0x16   : > { %s5467_s7 = sshll.u32 %s179_s4, 6  ;;  %s9016_s0 = sld [smem:[#allocation14_spill]] }
  0x17   : > { %p5471_p6 = scmp.ge.s32.totalorder %s7743_s22, 1  ;;  %s169_s11 = scalar_lea.sflag [#allocation3], %s168_s26 }
  0x18   : > { %p7565_p7 = pneg %p7849_p5  ;;  %s7576_s25 = scalar_lea.vmem %s183_s6, 49152 }
  0x19   : > { %p7577_p8 = scmp.ne.s32.totalorder %s183_s6, %s7576_s25  ;;  %s7745_s3 = smov [#allocation2]  }
  0x1a   : > { %s7581_s19 = sshll.u32 %s7745_s3, 4  ;;  %s7582_s19 = int_to_ptr.vmem [resolvable:$false] %s7581_s19 }
  0x1b   : > { %p7579_p9 = pnand %p7577_p8, %p7565_p7  ;;  %s7583_s28 = scalar_lea.vmem %s7582_s19, 98304 }
  0x1c   : > { %s181_s10 = scalar_lea.hbm %s9016_s0, %s5467_s7  ;;  %p7584_p11 = scmp.lt.s32.totalorder %s183_s6, %s7582_s19 }
  0x1d   : > { %p7580_p10 = pneg %p7579_p9  ;;  %p7585_p12 = scmp.lt.s32.totalorder %s7583_s28, %s7576_s25 }
  0x1f   : > { %p7586_p13 = por %p7585_p12, %p7584_p11 }
  0x21   : > { %p7587_p1 = pnand %p7586_p13, %p7580_p10 }
  0x23   : > { %7590 = shalt.err (!%p7587_p1)
}
  0x24   : > { %s7746_s27 = smov 512   ;;  %s7747_s3 = smov 256  }
  0x25   : > { %s7748_s19 = smov 16   ;;  %p209_p3 = scmp.lt.s32.totalorder %s7743_s22, 7 }
  0x26   : > { %6801 = dma.hbm_to_vmem [thread:$0]  (!%p7849_p5), %s181_s10, 49152, %s183_s6, %s169_s11, %s7746_s27, %s7747_s3, %s7748_s19  }
  0x27   : > { %p7864_p7 = pnand %p5471_p6, %p209_p3  ;;  %s64_s26 = ssub.s32 %s7735_s20, %s9063_s23 }
  0x28   : > { %s5461_s29 = sadd.s32 4294967295, %s7743_s22   ;;  %s34_s4 = sadd.s32 1, %s7739_s21 }
  0x29   : > { %p82_p8 = scmp.ne.s32.totalorder %s7719_s16, %s7715_s15  ;;  %s9065_s4 = smov (!%p7829_p0, %s34_s4), %s7739_s21 }
  0x2a   : > { %s5462_s30 = sadd.s32 4294967294, %s7743_s22   ;;  %p83_p5 = scmp.eq.s32.totalorder %s5461_s29, 0 }
  0x2b   : > { %p36_p9 = scmp.ge.s32.totalorder %s9065_s4, 2  ;;  %s95_s5 = sadd.s32 1, %s7711_s14 }
  0x2c   : > { %p7879_p10 = por %p83_p5, %p82_p8  ;;  %p108_p6 = scmp.ne.s32.totalorder %s7707_s13, %s7703_s12 }
  0x2d   : > { %s9067_s4 = smov (%p36_p9, %s9065_s4), 0  ;;  %p102_p0 = scmp.ne.s32.totalorder %s7711_s14, %s7707_s13 }
  0x2e   : > { %9019 = sst [smem:[#allocation13_spill]] %s9067_s4  ;;  %p7892_p11 = por %p108_p6, %p83_p5 }
  0x2f   : > { %s65_s24 = ssub.s32 %s7739_s21, %s9067_s4  ;;  %p132_p12 = scmp.eq.s32.totalorder %s5461_s29, 5 }
  0x30   : > { %s66_s7 = sor.u32 %s65_s24, %s64_s26  ;;  %p93_p13 = scmp.eq.s32.totalorder %s65_s24, 0 }
  0x31   : > { %p67_p1 = scmp.eq.s32.totalorder %s66_s7, 0  ;;  %p7898_p3 = por %p132_p12, %p102_p0 }
  0x32   : > { %s7903_s9 = scalar_select %p93_p13, %s7711_s14, %s95_s5  }
  0x33   : > { %s9021_s8 = scalar_select %p7898_p3, 1, 0 }
  0x34   : > { %s9022_s10 = sadd.s32 1, %s7723_s17  ;;  %p138_p8 = scmp.eq.s32.totalorder %s5462_s30, 5 }
  0x35   : > { %s7908_s11 = scalar_select %p67_p1, %s7723_s17, %s9022_s10  }
  0x36   : > { %s192_s28 = sand.u32 1, %s7711_s14   ;;  %p104_p5 = por %p102_p0, %p77_p2 }
  0x37   : > { %s5468_s27 = sshll.u32 %s192_s28, 2  ;;  %p7916_p9 = por %p138_p8, %p108_p6 }
  0x38   : > { %s6289_s19 = sshll.u32 %s7739_s21, 6  ;;  %s196_s26 = scalar_lea.vmem [#allocation5], %s5468_s27 }
  0x39   : > { %s9023_s3 = scalar_select %p7916_p9, 1, 0 }
  0x3a   : > { %s204_s29 = sshll.u32 %s196_s26, 4  ;;  %s202_s5 = scalar_lea.hbm %s9005_s1, %s6289_s19  ;;  %s205_s29 = int_to_ptr.vmem [resolvable:$true] %s204_s29 }
  0x3b   : > { %p7926_p12 = pnand %p6809_p4, %p104_p5  ;;  %s193_s10 = scalar_lea.sflag [#allocation6], %s192_s28 }
  0x3c   : > { %s7604_s0 = scalar_lea.vmem %s205_s29, 64  ;;  %s7749_s27 = smov [#allocation5]  }
  0x3d   : > { %p7593_p2 = pneg %p7926_p12  ;;  %p7605_p6 = scmp.ne.s32.totalorder %s205_s29, %s7604_s0 }
  0x3e   : > { %s7609_s26 = sshll.u32 %s7749_s27, 4  ;;  %s7610_s26 = int_to_ptr.vmem [resolvable:$false] %s7609_s26 }
  0x3f   : > { %p7607_p0 = pnand %p7605_p6, %p7593_p2  ;;  %s7611_s4 = scalar_lea.vmem %s7610_s26, 128 }
  0x40   : > { %p7612_p1 = scmp.lt.s32.totalorder %s205_s29, %s7610_s26  ;;  %p7613_p8 = scmp.lt.s32.totalorder %s7611_s4, %s7604_s0 }
  0x41   : > { %p7608_p13 = pneg %p7607_p0 }
  0x42   : > { %p7614_p9 = por %p7613_p8, %p7612_p1 }
  0x44   : > { %p7615_p3 = pnand %p7614_p9, %p7608_p13 }
  0x46   : > { %7618 = shalt.err (!%p7615_p3)
}
  0x47   : > { %6804 = dma.hbm_to_vmem [thread:$0]  (!%p7926_p12), %s202_s5, 64, %s205_s29, %s193_s10  }
  0x48   : > { %213 = sbr.rel (%p7864_p7) target bundleno = 791 (0x317), region = 32 }
  0x4d   : > { %s215_s28 = sand.u32 1, %s7719_s16  }
  0x4e   : > { %s6790_s19 = smul.u32 3072, %s215_s28  ;;  %s216_s24 = scalar_lea.sflag [#allocation3], %s215_s28 }
  0x50   : > { %s7937_s7 = scalar_lea.vmem [#allocation2], %s6790_s19 }
  0x51   : > { %7690 = dma.done.wait (%p7879_p10), %s216_s24, 49152  }
  0x52   : > { %7692 = vsyncadd (%p7879_p10), %s216_s24, 4294918144  ;;  %s7944_s0 = sand.u32 1, %s7707_s13  }
  0x53   : > { %s5472_s25 = sshll.u32 %s7944_s0, 2  ;;  %s225_s4 = scalar_lea.sflag [#allocation6], %s7944_s0 }
  0x54   : > { %s7948_s29 = scalar_lea.vmem [#allocation5], %s5472_s25 }
  0x55   : > { %7694 = dma.done.wait (%p7892_p11), %s225_s4, 64  }
  0x56   : > { %7696 = vsyncadd (%p7892_p11), %s225_s4, 4294967232  ;;  %s5473_s5 = sshll.u32 %s7944_s0, 3  ;;  %s262_s6 = smul.u32 3, %s7727_s18 }
  0x57   : > { %s8047_s15 = scalar_lea.vmem [#allocation7], %s5473_s5  ;;  %p5642_p7 = scmp.ne.s32.totalorder %s7727_s18, 0 }
  0x58   : > { %p263_p4 = scmp.lt.s32.totalorder %s262_s6, 8 }
  0x5a   : > { %s9069_s6 = smov (!%p263_p4, %s262_s6), 8 }
  0x5b   : > { %s6791_s30 = smul.u32 224, %s9069_s6 }
  0x5d   : > { %s7959_s26 = scalar_lea.vmem %s9006_s2, %s6791_s30 }
  0x5e   : > { %v273_v0 = vld [vmem:[%s7959_s26] sm:$0xff]   ;;  %v6904_v1 = vld [vmem:[%s7959_s26 + $0x8] sm:$0xff]   ;;  %v6905_v2 = vld [vmem:[%s7959_s26 + $0x10] sm:$0xff]  }
  0x5f   : > { %279 = vst [vmem:[#allocation8] sm:$0xff] %v273_v0   ;;  %6295 = vst [vmem:[#allocation8 + $0x8] sm:$0xff] %v6904_v1   ;;  %v6906_v3 = vld [vmem:[%s7959_s26 + $0x18] sm:$0xff]   ;;  %v6907_v4 = vld [vmem:[%s7959_s26 + $0x20] sm:$0xff]  }
  0x60   : > { %6300 = vst [vmem:[#allocation8 + $0x10] sm:$0xff] %v6905_v2   ;;  %6305 = vst [vmem:[#allocation8 + $0x18] sm:$0xff] %v6906_v3   ;;  %v6908_v5 = vld [vmem:[%s7959_s26 + $0x28] sm:$0xff]   ;;  %v6909_v6 = vld [vmem:[%s7959_s26 + $0x30] sm:$0xff]  }
  0x61   : > { %6310 = vst [vmem:[#allocation8 + $0x20] sm:$0xff] %v6907_v4   ;;  %6315 = vst [vmem:[#allocation8 + $0x28] sm:$0xff] %v6908_v5   ;;  %v6910_v7 = vld [vmem:[%s7959_s26 + $0x38] sm:$0xff]   ;;  %v6911_v8 = vld [vmem:[%s7959_s26 + $0x40] sm:$0xff]  }
  0x62   : > { %6320 = vst [vmem:[#allocation8 + $0x30] sm:$0xff] %v6909_v6   ;;  %6325 = vst [vmem:[#allocation8 + $0x38] sm:$0xff] %v6910_v7   ;;  %v6912_v9 = vld [vmem:[%s7959_s26 + $0x48] sm:$0xff]   ;;  %v6913_v10 = vld [vmem:[%s7959_s26 + $0x50] sm:$0xff]  }
  0x63   : > { %6330 = vst [vmem:[#allocation8 + $0x40] sm:$0xff] %v6911_v8   ;;  %6335 = vst [vmem:[#allocation8 + $0x48] sm:$0xff] %v6912_v9   ;;  %v6914_v11 = vld [vmem:[%s7959_s26 + $0x58] sm:$0xff]   ;;  %v6915_v12 = vld [vmem:[%s7959_s26 + $0x60] sm:$0xff]  }
  0x64   : > { %6340 = vst [vmem:[#allocation8 + $0x50] sm:$0xff] %v6913_v10   ;;  %6345 = vst [vmem:[#allocation8 + $0x58] sm:$0xff] %v6914_v11   ;;  %v6916_v13 = vld [vmem:[%s7959_s26 + $0x68] sm:$0xff]   ;;  %v6917_v14 = vld [vmem:[%s7959_s26 + $0x70] sm:$0xff]  }
  0x65   : > { %6350 = vst [vmem:[#allocation8 + $0x60] sm:$0xff] %v6915_v12   ;;  %6355 = vst [vmem:[#allocation8 + $0x68] sm:$0xff] %v6916_v13   ;;  %v6918_v15 = vld [vmem:[%s7959_s26 + $0x78] sm:$0xff]   ;;  %v6919_v16 = vld [vmem:[%s7959_s26 + $0x80] sm:$0xff]  }
  0x66   : > { %6360 = vst [vmem:[#allocation8 + $0x70] sm:$0xff] %v6917_v14   ;;  %6365 = vst [vmem:[#allocation8 + $0x78] sm:$0xff] %v6918_v15   ;;  %v6920_v17 = vld [vmem:[%s7959_s26 + $0x88] sm:$0xff]   ;;  %v6921_v18 = vld [vmem:[%s7959_s26 + $0x90] sm:$0xff]  }
  0x67   : > { %6370 = vst [vmem:[#allocation8 + $0x80] sm:$0xff] %v6919_v16   ;;  %6375 = vst [vmem:[#allocation8 + $0x88] sm:$0xff] %v6920_v17   ;;  %v6922_v19 = vld [vmem:[%s7959_s26 + $0x98] sm:$0xff]   ;;  %v6923_v20 = vld [vmem:[%s7959_s26 + $0xa0] sm:$0xff]  }
  0x68   : > { %6380 = vst [vmem:[#allocation8 + $0x90] sm:$0xff] %v6921_v18   ;;  %6385 = vst [vmem:[#allocation8 + $0x98] sm:$0xff] %v6922_v19   ;;  %v6924_v21 = vld [vmem:[%s7959_s26 + $0xa8] sm:$0xff]   ;;  %v6925_v22 = vld [vmem:[%s7959_s26 + $0xb0] sm:$0xff]  }
  0x69   : > { %6390 = vst [vmem:[#allocation8 + $0xa0] sm:$0xff] %v6923_v20   ;;  %6395 = vst [vmem:[#allocation8 + $0xa8] sm:$0xff] %v6924_v21   ;;  %v6926_v23 = vld [vmem:[%s7959_s26 + $0xb8] sm:$0xff]   ;;  %v6927_v24 = vld [vmem:[%s7959_s26 + $0xc0] sm:$0xff]  }
  0x6a   : > { %6400 = vst [vmem:[#allocation8 + $0xb0] sm:$0xff] %v6925_v22   ;;  %6405 = vst [vmem:[#allocation8 + $0xb8] sm:$0xff] %v6926_v23   ;;  %v6928_v25 = vld [vmem:[%s7959_s26 + $0xc8] sm:$0xff]   ;;  %v6929_v26 = vld [vmem:[%s7959_s26 + $0xd0] sm:$0xff]  }
  0x6b   : > { %6410 = vst [vmem:[#allocation8 + $0xc0] sm:$0xff] %v6927_v24   ;;  %6415 = vst [vmem:[#allocation8 + $0xc8] sm:$0xff] %v6928_v25   ;;  %v6930_v27 = vld [vmem:[%s7959_s26 + $0xd8] sm:$0xff]   ;;  %v6931_v28 = vld [vmem:[%s7959_s26 + $0xe0] sm:$0xff]  }
  0x6c   : > { %6420 = vst [vmem:[#allocation8 + $0xd0] sm:$0xff] %v6929_v26   ;;  %6425 = vst [vmem:[#allocation8 + $0xd8] sm:$0xff] %v6930_v27   ;;  %v6932_v29 = vld [vmem:[%s7959_s26 + $0xe8] sm:$0xff]   ;;  %v6933_v30 = vld [vmem:[%s7959_s26 + $0xf0] sm:$0xff]  }
  0x6d   : > { %6430 = vst [vmem:[#allocation8 + $0xe0] sm:$0xff] %v6931_v28   ;;  %6435 = vst [vmem:[#allocation8 + $0xe8] sm:$0xff] %v6932_v29   ;;  %v6934_v31 = vld [vmem:[%s7959_s26 + $0xf8] sm:$0xff]   ;;  %v6935_v32 = vld [vmem:[%s7959_s26 + $0x100] sm:$0xff]  }
  0x6e   : > { %6440 = vst [vmem:[#allocation8 + $0xf0] sm:$0xff] %v6933_v30   ;;  %6445 = vst [vmem:[#allocation8 + $0xf8] sm:$0xff] %v6934_v31   ;;  %v6936_v33 = vld [vmem:[%s7959_s26 + $0x108] sm:$0xff]   ;;  %v6937_v34 = vld [vmem:[%s7959_s26 + $0x110] sm:$0xff]  }
  0x6f   : > { %6450 = vst [vmem:[#allocation8 + $0x100] sm:$0xff] %v6935_v32   ;;  %6455 = vst [vmem:[#allocation8 + $0x108] sm:$0xff] %v6936_v33   ;;  %v6938_v35 = vld [vmem:[%s7959_s26 + $0x118] sm:$0xff]   ;;  %v6939_v36 = vld [vmem:[%s7959_s26 + $0x120] sm:$0xff]  }
  0x70   : > { %6460 = vst [vmem:[#allocation8 + $0x110] sm:$0xff] %v6937_v34   ;;  %6465 = vst [vmem:[#allocation8 + $0x118] sm:$0xff] %v6938_v35   ;;  %v6940_v37 = vld [vmem:[%s7959_s26 + $0x128] sm:$0xff]   ;;  %v6941_v38 = vld [vmem:[%s7959_s26 + $0x130] sm:$0xff]  }
  0x71   : > { %6470 = vst [vmem:[#allocation8 + $0x120] sm:$0xff] %v6939_v36   ;;  %6475 = vst [vmem:[#allocation8 + $0x128] sm:$0xff] %v6940_v37   ;;  %v6942_v39 = vld [vmem:[%s7959_s26 + $0x138] sm:$0xff]   ;;  %v6943_v40 = vld [vmem:[%s7959_s26 + $0x140] sm:$0xff]  }
  0x72   : > { %6480 = vst [vmem:[#allocation8 + $0x130] sm:$0xff] %v6941_v38   ;;  %6485 = vst [vmem:[#allocation8 + $0x138] sm:$0xff] %v6942_v39   ;;  %v6944_v41 = vld [vmem:[%s7959_s26 + $0x148] sm:$0xff]   ;;  %v6945_v42 = vld [vmem:[%s7959_s26 + $0x150] sm:$0xff]  }
  0x73   : > { %6490 = vst [vmem:[#allocation8 + $0x140] sm:$0xff] %v6943_v40   ;;  %6495 = vst [vmem:[#allocation8 + $0x148] sm:$0xff] %v6944_v41   ;;  %v6946_v43 = vld [vmem:[%s7959_s26 + $0x158] sm:$0xff]   ;;  %v6947_v44 = vld [vmem:[%s7959_s26 + $0x160] sm:$0xff]  }
  0x74   : > { %6500 = vst [vmem:[#allocation8 + $0x150] sm:$0xff] %v6945_v42   ;;  %6505 = vst [vmem:[#allocation8 + $0x158] sm:$0xff] %v6946_v43   ;;  %v6948_v45 = vld [vmem:[%s7959_s26 + $0x168] sm:$0xff]   ;;  %v6949_v46 = vld [vmem:[%s7959_s26 + $0x170] sm:$0xff]  }
  0x75   : > { %6510 = vst [vmem:[#allocation8 + $0x160] sm:$0xff] %v6947_v44   ;;  %6515 = vst [vmem:[#allocation8 + $0x168] sm:$0xff] %v6948_v45   ;;  %v6950_v47 = vld [vmem:[%s7959_s26 + $0x178] sm:$0xff]   ;;  %v6951_v48 = vld [vmem:[%s7959_s26 + $0x180] sm:$0xff]  }
  0x76   : > { %6520 = vst [vmem:[#allocation8 + $0x170] sm:$0xff] %v6949_v46   ;;  %6525 = vst [vmem:[#allocation8 + $0x178] sm:$0xff] %v6950_v47   ;;  %v6952_v49 = vld [vmem:[%s7959_s26 + $0x188] sm:$0xff]   ;;  %v6953_v50 = vld [vmem:[%s7959_s26 + $0x190] sm:$0xff]  }
  0x77   : > { %6530 = vst [vmem:[#allocation8 + $0x180] sm:$0xff] %v6951_v48   ;;  %6535 = vst [vmem:[#allocation8 + $0x188] sm:$0xff] %v6952_v49   ;;  %v6954_v51 = vld [vmem:[%s7959_s26 + $0x198] sm:$0xff]   ;;  %v6955_v52 = vld [vmem:[%s7959_s26 + $0x1a0] sm:$0xff]  }
  0x78   : > { %6540 = vst [vmem:[#allocation8 + $0x190] sm:$0xff] %v6953_v50   ;;  %6545 = vst [vmem:[#allocation8 + $0x198] sm:$0xff] %v6954_v51   ;;  %v6956_v53 = vld [vmem:[%s7959_s26 + $0x1a8] sm:$0xff]   ;;  %v6957_v54 = vld [vmem:[%s7959_s26 + $0x1b0] sm:$0xff]  }
  0x79   : > { %6550 = vst [vmem:[#allocation8 + $0x1a0] sm:$0xff] %v6955_v52   ;;  %6555 = vst [vmem:[#allocation8 + $0x1a8] sm:$0xff] %v6956_v53   ;;  %v6958_v55 = vld [vmem:[%s7959_s26 + $0x1b8] sm:$0xff]   ;;  %v6959_v56 = vld [vmem:[%s7959_s26 + $0x1c0] sm:$0xff]  }
  0x7a   : > { %6560 = vst [vmem:[#allocation8 + $0x1b0] sm:$0xff] %v6957_v54   ;;  %6565 = vst [vmem:[#allocation8 + $0x1b8] sm:$0xff] %v6958_v55   ;;  %v6960_v57 = vld [vmem:[%s7959_s26 + $0x1c8] sm:$0xff]   ;;  %v6961_v58 = vld [vmem:[%s7959_s26 + $0x1d0] sm:$0xff]  }
  0x7b   : > { %6570 = vst [vmem:[#allocation8 + $0x1c0] sm:$0xff] %v6959_v56   ;;  %6575 = vst [vmem:[#allocation8 + $0x1c8] sm:$0xff] %v6960_v57   ;;  %v6962_v59 = vld [vmem:[%s7959_s26 + $0x1d8] sm:$0xff]   ;;  %v6963_v60 = vld [vmem:[%s7959_s26 + $0x1e0] sm:$0xff]  }
  0x7c   : > { %6580 = vst [vmem:[#allocation8 + $0x1d0] sm:$0xff] %v6961_v58   ;;  %6585 = vst [vmem:[#allocation8 + $0x1d8] sm:$0xff] %v6962_v59   ;;  %v6964_v61 = vld [vmem:[%s7959_s26 + $0x1e8] sm:$0xff]   ;;  %v6965_v62 = vld [vmem:[%s7959_s26 + $0x1f0] sm:$0xff]  }
  0x7d   : > { %6590 = vst [vmem:[#allocation8 + $0x1e0] sm:$0xff] %v6963_v60   ;;  %6595 = vst [vmem:[#allocation8 + $0x1e8] sm:$0xff] %v6964_v61   ;;  %v6966_v63 = vld [vmem:[%s7959_s26 + $0x1f8] sm:$0xff]   ;;  %v6967_v0 = vld [vmem:[%s7959_s26 + $0x200] sm:$0xff]  }
  0x7e   : > { %6600 = vst [vmem:[#allocation8 + $0x1f0] sm:$0xff] %v6965_v62   ;;  %6605 = vst [vmem:[#allocation8 + $0x1f8] sm:$0xff] %v6966_v63   ;;  %v6968_v1 = vld [vmem:[%s7959_s26 + $0x208] sm:$0xff]   ;;  %v6969_v2 = vld [vmem:[%s7959_s26 + $0x210] sm:$0xff]  }
  0x7f   : > { %6610 = vst [vmem:[#allocation8 + $0x200] sm:$0xff] %v6967_v0   ;;  %6615 = vst [vmem:[#allocation8 + $0x208] sm:$0xff] %v6968_v1   ;;  %v6970_v3 = vld [vmem:[%s7959_s26 + $0x218] sm:$0xff]   ;;  %v6971_v4 = vld [vmem:[%s7959_s26 + $0x220] sm:$0xff]  }
  0x80   : > { %6620 = vst [vmem:[#allocation8 + $0x210] sm:$0xff] %v6969_v2   ;;  %6625 = vst [vmem:[#allocation8 + $0x218] sm:$0xff] %v6970_v3   ;;  %v6972_v5 = vld [vmem:[%s7959_s26 + $0x228] sm:$0xff]   ;;  %v6973_v6 = vld [vmem:[%s7959_s26 + $0x230] sm:$0xff]  }
  0x81   : > { %6630 = vst [vmem:[#allocation8 + $0x220] sm:$0xff] %v6971_v4   ;;  %6635 = vst [vmem:[#allocation8 + $0x228] sm:$0xff] %v6972_v5   ;;  %v6974_v7 = vld [vmem:[%s7959_s26 + $0x238] sm:$0xff]   ;;  %v6975_v8 = vld [vmem:[%s7959_s26 + $0x240] sm:$0xff]  }
  0x82   : > { %6640 = vst [vmem:[#allocation8 + $0x230] sm:$0xff] %v6973_v6   ;;  %6645 = vst [vmem:[#allocation8 + $0x238] sm:$0xff] %v6974_v7   ;;  %v6976_v9 = vld [vmem:[%s7959_s26 + $0x248] sm:$0xff]   ;;  %v6977_v10 = vld [vmem:[%s7959_s26 + $0x250] sm:$0xff]  }
  0x83   : > { %6650 = vst [vmem:[#allocation8 + $0x240] sm:$0xff] %v6975_v8   ;;  %6655 = vst [vmem:[#allocation8 + $0x248] sm:$0xff] %v6976_v9   ;;  %v6978_v11 = vld [vmem:[%s7959_s26 + $0x258] sm:$0xff]   ;;  %v6979_v12 = vld [vmem:[%s7959_s26 + $0x260] sm:$0xff]  }
  0x84   : > { %6660 = vst [vmem:[#allocation8 + $0x250] sm:$0xff] %v6977_v10   ;;  %6665 = vst [vmem:[#allocation8 + $0x258] sm:$0xff] %v6978_v11   ;;  %v6980_v13 = vld [vmem:[%s7959_s26 + $0x268] sm:$0xff]   ;;  %v6981_v14 = vld [vmem:[%s7959_s26 + $0x270] sm:$0xff]   ;;  %1786 = sbr.rel (%p5642_p7) target bundleno = 152 (0x98), region = 44 }
  0x85   : > { %6670 = vst [vmem:[#allocation8 + $0x260] sm:$0xff] %v6979_v12   ;;  %6675 = vst [vmem:[#allocation8 + $0x268] sm:$0xff] %v6980_v13   ;;  %v6982_v15 = vld [vmem:[%s7959_s26 + $0x278] sm:$0xff]   ;;  %v6983_v16 = vld [vmem:[%s7959_s26 + $0x280] sm:$0xff]  }
  0x86   : > { %6680 = vst [vmem:[#allocation8 + $0x270] sm:$0xff] %v6981_v14   ;;  %6685 = vst [vmem:[#allocation8 + $0x278] sm:$0xff] %v6982_v15   ;;  %v6984_v17 = vld [vmem:[%s7959_s26 + $0x288] sm:$0xff]   ;;  %v6985_v18 = vld [vmem:[%s7959_s26 + $0x290] sm:$0xff]  }
  0x87   : > { %6690 = vst [vmem:[#allocation8 + $0x280] sm:$0xff] %v6983_v16   ;;  %6695 = vst [vmem:[#allocation8 + $0x288] sm:$0xff] %v6984_v17   ;;  %v6986_v19 = vld [vmem:[%s7959_s26 + $0x298] sm:$0xff]  }
  0x88   : > { %6700 = vst [vmem:[#allocation8 + $0x290] sm:$0xff] %v6985_v18   ;;  %6705 = vst [vmem:[#allocation8 + $0x298] sm:$0xff] %v6986_v19  }
  0x89   : > { %v1789_v20 = vlaneseq  ;;  %v7750_v21 = vmov 1983009808   ;;  %v1787_v24 = vld [vmem:[%s7948_s29] sm:$0xf] }
  0x8a   : > { %v1808_v22 = vunpack.c.l.s4 %v7750_v21 }
  0x8b   : > { %v1790_v23 = vshrl.u32 %v1789_v20, 7 }
  0x8c   : > { %v1809_v25 = vunpack.c.0.s8 %v1808_v22 }
  0x8d   : > { %v1791_v26 = vsub.s32 0, %v1790_v23  ;;  %v1795_v27 = vsub.s32 1, %v1790_v23  ;;  %v1799_v28 = vsub.s32 2, %v1790_v23  ;;  %v1803_v29 = vsub.s32 3, %v1790_v23 }
  0x8e   : > { %v1812_v30 = vsub.s32 %v1809_v25, %v1790_v23 }
  0x8f   : > { %v1792_v31 = vrot.slane %v1787_v24, %v1791_v26  ;;  %v1796_v32 = vrot.slane %v1787_v24, %v1795_v27  ;;  %v1800_v33 = vrot.slane %v1787_v24, %v1799_v28  ;;  %v1804_v34 = vrot.slane %v1787_v24, %v1803_v29 }
  0x91   : > { %v1805_v35 = vcombine.low %v1792_v31, %v1796_v32  ;;  %v1806_v36 = vcombine.low %v1800_v33, %v1804_v34 }
  0x93   : > { %v1813_v37 = vrot.slane %v1805_v35, %v1812_v30  ;;  %v1820_v38 = vrot.slane %v1806_v36, %v1812_v30 }
  0x95   : > { %v1821_v39 = vcombine.low %v1813_v37, %v1820_v38 }
  0x97   : > { %1823 = vst [vmem:[%s8047_s15] sm:$0xff] %v1821_v39 }
  0x98 PF: > { %v6987_v40 = vld [vmem:[%s7937_s7 + $0x4e4] ss:$16 sps:$4 sm:$0xff]   ;;  %v6991_v42 = vld [vmem:[%s7937_s7 + $0x4e0] ss:$16 sps:$4 sm:$0xff]   ;;  %v8100_v24 = vld [vmem:[#allocation8 + $0xe0] sm:$0xff]  ;;  %vm1913_vm0 = vcmask 1040384  }
  0x99   : > { %v6989_v41 = vld [vmem:[%s7937_s7 + $0x6e4] ss:$16 sps:$4 sm:$0xff]   ;;  %3144 = vmatprep.subr.bf16.mxu0 %v6987_v40  ;;  %v6992_v43 = vld [vmem:[%s7937_s7 + $0x6e0] ss:$16 sps:$4 sm:$0xff]   ;;  %v8104_v27 = vld [vmem:[#allocation8 + $0xf0] sm:$0xff]  ;;  %v2178_v30 = vunpack.c.l.bf16 %v8100_v24  ;;  %v2179_v31 = vunpack.c.h.bf16 %v8100_v24  ;;  %vm2491_vm1 = vcmask 1041409  }
  0x9a   : > { %3185 = vmatprep.subr.bf16.mxu1 %v6989_v41  ;;  %v6993_v44 = vld [vmem:[%s7937_s7 + $0x4c4] ss:$16 sps:$4 sm:$0xff]   ;;  %3145 = vmatpush1.bf16.msra.mxu0 %v6991_v42  ;;  %v6997_v46 = vld [vmem:[%s7937_s7 + $0x4c0] ss:$16 sps:$4 sm:$0xff]   ;;  %v8106_v28 = vld [vmem:[#allocation8 + $0x100] sm:$0xff]  ;;  %v2182_v35 = vunpack.c.l.bf16 %v8104_v27  ;;  %v2183_v36 = vunpack.c.h.bf16 %v8104_v27  ;;  %s9047_s18 = sld [smem:[#allocation12_spill]] }
  0x9b   : > { %3186 = vmatpush1.bf16.msra.mxu1 %v6992_v43  ;;  %v6995_v45 = vld [vmem:[%s7937_s7 + $0x6c4] ss:$16 sps:$4 sm:$0xff]   ;;  %3146 = vmatprep.subr.bf16.mxu0 %v6993_v44  ;;  %v6998_v47 = vld [vmem:[%s7937_s7 + $0x6c0] ss:$16 sps:$4 sm:$0xff]   ;;  %v8108_v29 = vld [vmem:[#allocation8 + $0x110] sm:$0xff]  ;;  %v2186_v37 = vunpack.c.l.bf16 %v8106_v28  ;;  %v2187_v38 = vunpack.c.h.bf16 %v8106_v28  ;;  %s5342_s19 = sshll.u32 %s8047_s15, 4  ;;  %s5343_s19 = int_to_ptr.vmem [resolvable:$true] %s5342_s19 }
  0x9c   : > { %3187 = vmatprep.subr.bf16.mxu1 %v6995_v45  ;;  %v6999_v48 = vld [vmem:[%s7937_s7 + $0x4a4] ss:$16 sps:$4 sm:$0xff]   ;;  %v7003_v50 = vld [vmem:[%s7937_s7 + $0x4a0] ss:$16 sps:$4 sm:$0xff]   ;;  %v8112_v32 = vld [vmem:[#allocation8 + $0x120] sm:$0xff]  ;;  %v2191_v43 = vunpack.c.h.bf16 %v8108_v29  ;;  %s9048_s25 = sld [smem:[#allocation15_spill]] }
  0x9d   : > { %v7001_v49 = vld [vmem:[%s7937_s7 + $0x6a4] ss:$16 sps:$4 sm:$0xff]   ;;  %v7004_v51 = vld [vmem:[%s7937_s7 + $0x6a0] ss:$16 sps:$4 sm:$0xff]   ;;  %v8114_v33 = vld [vmem:[#allocation8 + $0x130] sm:$0xff]  ;;  %v2195_v45 = vunpack.c.h.bf16 %v8112_v32  ;;  %s5328_s29 = scalar_lea.sflag [#allocation4], %s7944_s0 }
  0x9e   : > { %3147 = vmatpush1.bf16.msra.mxu0 %v6997_v46  ;;  %v7005_v52 = vld [vmem:[%s7937_s7 + $0x484] ss:$16 sps:$4 sm:$0xff]   ;;  %v7009_v54 = vld [vmem:[%s7937_s7 + $0x480] ss:$16 sps:$4 sm:$0xff]   ;;  %v8116_v34 = vld [vmem:[#allocation8 + $0x140] sm:$0x11] }
  0x9f   : > { %3188 = vmatpush1.bf16.msra.mxu1 %v6998_v47  ;;  %3148 = vmatprep.subr.bf16.mxu0 %v6999_v48  ;;  %v7007_v53 = vld [vmem:[%s7937_s7 + $0x684] ss:$16 sps:$4 sm:$0xff]   ;;  %v7010_v55 = vld [vmem:[%s7937_s7 + $0x680] ss:$16 sps:$4 sm:$0xff]   ;;  %v8122_v39 = vld [vmem:[#allocation8 + $0x150] sm:$0xff]  ;;  %s7619_s5 = scalar_lea.vmem %s5343_s19, 128 }
  0xa0   : > { %3189 = vmatprep.subr.bf16.mxu1 %v7001_v49  ;;  %v7011_v56 = vld [vmem:[%s7937_s7 + $0x464] ss:$16 sps:$4 sm:$0xff]   ;;  %v7015_v58 = vld [vmem:[%s7937_s7 + $0x460] ss:$16 sps:$4 sm:$0xff]   ;;  %v8124_v40 = vld [vmem:[#allocation8 + $0x160] sm:$0xff]  ;;  %s6290_s28 = sshll.u32 %s9047_s18, 7  ;;  %p7620_p10 = scmp.ne.s32.totalorder %s5343_s19, %s7619_s5 }
  0xa1   : > { %v7013_v57 = vld [vmem:[%s7937_s7 + $0x664] ss:$16 sps:$4 sm:$0xff]   ;;  %v7016_v59 = vld [vmem:[%s7937_s7 + $0x660] ss:$16 sps:$4 sm:$0xff]   ;;  %v8126_v41 = vld [vmem:[#allocation8 + $0x170] sm:$0xff]  ;;  %p9049_p11 = scmp.ne.s32.totalorder %s9021_s8, 0 }
  0xa2   : > { %3149 = vmatpush1.bf16.msra.mxu0 %v7003_v50  ;;  %v7017_v60 = vld [vmem:[%s7937_s7 + $0x444] ss:$16 sps:$4 sm:$0xff]   ;;  %v7021_v62 = vld [vmem:[%s7937_s7 + $0x440] ss:$16 sps:$4 sm:$0xff]   ;;  %v8132_v46 = vld [vmem:[#allocation8 + $0x180] sm:$0xff]  ;;  %v2199_v50 = vunpack.c.h.bf16 %v8114_v33  ;;  %s5340_s4 = scalar_lea.hbm %s9048_s25, %s6290_s28  ;;  %s7752_s6 = smov [#allocation7]  }
  0xa3   : > { %3190 = vmatpush1.bf16.msra.mxu1 %v7004_v51  ;;  %3150 = vmatprep.subr.bf16.mxu0 %v7005_v52  ;;  %v7019_v61 = vld [vmem:[%s7937_s7 + $0x644] ss:$16 sps:$4 sm:$0xff]   ;;  %v7022_v63 = vld [vmem:[%s7937_s7 + $0x640] ss:$16 sps:$4 sm:$0xff]   ;;  %v8134_v47 = vld [vmem:[#allocation8 + $0x190] sm:$0xff]  ;;  %v2202_v51 = vunpack.c.l.bf16 %v8116_v34  ;;  %v2203_v52 = vunpack.c.h.bf16 %v8116_v34  ;;  %p7621_p3 = pnand %p7620_p10, %p9049_p11  ;;  %s7623_s30 = sshll.u32 %s7752_s6, 4  ;;  %s7624_s30 = int_to_ptr.vmem [resolvable:$false] %s7623_s30 }
  0xa4   : > { %3191 = vmatprep.subr.bf16.mxu1 %v7007_v53  ;;  %v7023_v0 = vld [vmem:[%s7937_s7 + $0x424] ss:$16 sps:$4 sm:$0xff]   ;;  %v7027_v2 = vld [vmem:[%s7937_s7 + $0x420] ss:$16 sps:$4 sm:$0xff]   ;;  %v8136_v48 = vld [vmem:[#allocation8 + $0x1a0] sm:$0xff]  ;;  %s7625_s10 = scalar_lea.vmem %s7624_s30, 256  ;;  %p7626_p9 = scmp.lt.s32.totalorder %s5343_s19, %s7624_s30 }
  0xa5   : > { %v7025_v1 = vld [vmem:[%s7937_s7 + $0x624] ss:$16 sps:$4 sm:$0xff]   ;;  %v7028_v3 = vld [vmem:[%s7937_s7 + $0x620] ss:$16 sps:$4 sm:$0xff]   ;;  %p7622_p5 = pneg %p7621_p3  ;;  %p7627_p12 = scmp.lt.s32.totalorder %s7625_s10, %s7619_s5 }
  0xa6   : > { %3151 = vmatpush1.bf16.msra.mxu0 %v7009_v54  ;;  %v7029_v4 = vld [vmem:[%s7937_s7 + $0x404] ss:$16 sps:$4 sm:$0xff]   ;;  %v7033_v6 = vld [vmem:[%s7937_s7 + $0x400] ss:$16 sps:$4 sm:$0xff]   ;;  %v8143_v54 = vld [vmem:[#allocation8 + $0x1b0] sm:$0x11] }
  0xa7   : > { %3192 = vmatpush1.bf16.msra.mxu1 %v7010_v55  ;;  %3152 = vmatprep.subr.bf16.mxu0 %v7011_v56  ;;  %v7031_v5 = vld [vmem:[%s7937_s7 + $0x604] ss:$16 sps:$4 sm:$0xff]   ;;  %v7034_v7 = vld [vmem:[%s7937_s7 + $0x600] ss:$16 sps:$4 sm:$0xff]   ;;  %v2206_v55 = vunpack.c.l.bf16 %v8122_v39  ;;  %v2207_v56 = vunpack.c.h.bf16 %v8122_v39  ;;  %v9025_v34 = vunpack.c.l.bf16 %v8143_v54  ;;  %p7628_p2 = por %p7627_p12, %p7626_p9 }
  0xa8   : > { %3193 = vmatprep.subr.bf16.mxu1 %v7013_v57  ;;  %v7035_v8 = vld [vmem:[%s7937_s7 + $0x5e4] ss:$16 sps:$4 sm:$0xff]   ;;  %v7039_v10 = vld [vmem:[%s7937_s7 + $0x5e0] ss:$16 sps:$4 sm:$0xff]   ;;  %v2210_v57 = vunpack.c.l.bf16 %v8124_v40 }
  0xa9   : > { %v7037_v9 = vld [vmem:[%s7937_s7 + $0x7e4] ss:$16 sps:$4 sm:$0xff]   ;;  %v7040_v11 = vld [vmem:[%s7937_s7 + $0x7e0] ss:$16 sps:$4 sm:$0xff]   ;;  %p7629_p6 = pnand %p7628_p2, %p7622_p5 }
  0xaa   : > { %3153 = vmatpush1.bf16.msra.mxu0 %v7015_v58  ;;  %v7041_v12 = vld [vmem:[%s7937_s7 + $0x5c4] ss:$16 sps:$4 sm:$0xff]   ;;  %v7045_v14 = vld [vmem:[%s7937_s7 + $0x5c0] ss:$16 sps:$4 sm:$0xff]   ;;  %v2211_v58 = vunpack.c.h.bf16 %v8124_v40  ;;  %v2286_v24 = vadd.f32 %v2210_v57, %v2206_v55  ;;  %v9028_v40 = vunpack.c.l.bf16 %v8108_v29  ;;  %v9029_v57 = vunpack.c.l.bf16 %v8126_v41 }
  0xab   : > { %3194 = vmatpush1.bf16.msra.mxu1 %v7016_v59  ;;  %3154 = vmatprep.subr.bf16.mxu0 %v7017_v60  ;;  %v7043_v13 = vld [vmem:[%s7937_s7 + $0x7c4] ss:$16 sps:$4 sm:$0xff]   ;;  %v7046_v15 = vld [vmem:[%s7937_s7 + $0x7c0] ss:$16 sps:$4 sm:$0xff]  }
  0xac   : > { %3195 = vmatprep.subr.bf16.mxu1 %v7019_v61  ;;  %v7047_v16 = vld [vmem:[%s7937_s7 + $0x5a4] ss:$16 sps:$4 sm:$0xff]   ;;  %v7051_v18 = vld [vmem:[%s7937_s7 + $0x5a0] ss:$16 sps:$4 sm:$0xff]   ;;  %v2215_v61 = vunpack.c.h.bf16 %v8126_v41 }
  0xad   : > { %v7049_v17 = vld [vmem:[%s7937_s7 + $0x7a4] ss:$16 sps:$4 sm:$0xff]   ;;  %v7052_v19 = vld [vmem:[%s7937_s7 + $0x7a0] ss:$16 sps:$4 sm:$0xff]  }
  0xae   : > { %3155 = vmatpush1.bf16.msra.mxu0 %v7021_v62  ;;  %v7053_v20 = vld [vmem:[%s7937_s7 + $0x584] ss:$16 sps:$4 sm:$0xff]   ;;  %v7057_v22 = vld [vmem:[%s7937_s7 + $0x580] ss:$16 sps:$4 sm:$0xff]  }
  0xaf   : > { %3196 = vmatpush1.bf16.msra.mxu1 %v7022_v63  ;;  %3156 = vmatprep.subr.bf16.mxu0 %v7023_v0  ;;  %v7055_v21 = vld [vmem:[%s7937_s7 + $0x784] ss:$16 sps:$4 sm:$0xff]   ;;  %v7058_v23 = vld [vmem:[%s7937_s7 + $0x780] ss:$16 sps:$4 sm:$0xff]   ;;  %v2219_v63 = vunpack.c.h.bf16 %v8132_v46 }
  0xb0   : > { %3197 = vmatprep.subr.bf16.mxu1 %v7025_v1  ;;  %v7059_v25 = vld [vmem:[%s7937_s7 + $0x564] ss:$16 sps:$4 sm:$0xff]   ;;  %v7063_v53 = vld [vmem:[%s7937_s7 + $0x560] ss:$16 sps:$4 sm:$0xff]  }
  0xb1   : > { %v7061_v26 = vld [vmem:[%s7937_s7 + $0x764] ss:$16 sps:$4 sm:$0xff]   ;;  %v7064_v59 = vld [vmem:[%s7937_s7 + $0x760] ss:$16 sps:$4 sm:$0xff]  }
  0xb2   : > { %3157 = vmatpush1.bf16.msra.mxu0 %v7027_v2  ;;  %v8154_v0 = vld [vmem:[#allocation8 + $0xe8] sm:$0xff]  ;;  %v8156_v1 = vld [vmem:[#allocation8 + $0xf8] sm:$0xff] }
  0xb3   : > { %3198 = vmatpush1.bf16.msra.mxu1 %v7028_v3  ;;  %3158 = vmatprep.subr.bf16.mxu0 %v7029_v4  ;;  %v7065_v2 = vld [vmem:[%s7937_s7 + $0x544] ss:$16 sps:$4 sm:$0xff]   ;;  %v9027_v28 = vunpack.c.l.bf16 %v8156_v1 }
  0xb4   : > { %3199 = vmatprep.subr.bf16.mxu1 %v7031_v5  ;;  %v7067_v3 = vld [vmem:[%s7937_s7 + $0x744] ss:$16 sps:$4 sm:$0xff]   ;;  %v2223_v5 = vunpack.c.h.bf16 %v8134_v47 }
  0xb5   : > { %v8200_v49 = vld [vmem:[#allocation8 + $0x178] sm:$0xff] }
  0xb6   : > { %3159 = vmatpush1.bf16.msra.mxu0 %v7033_v6  ;;  %v8191_v6 = vld [vmem:[#allocation8 + $0x168] sm:$0xff] }
  0xb7   : > { %3200 = vmatpush1.bf16.msra.mxu1 %v7034_v7  ;;  %3160 = vmatprep.subr.bf16.mxu0 %v7035_v8  ;;  %v2227_v7 = vunpack.c.h.bf16 %v8136_v48  ;;  %v8164_v8 = vld [vmem:[#allocation8 + $0x108] sm:$0xff] }
  0xb8   : > { %3201 = vmatprep.subr.bf16.mxu1 %v7037_v9  ;;  %v7069_v9 = vld [vmem:[%s7937_s7 + $0x540] ss:$16 sps:$4 sm:$0xff]   ;;  %v2189_v4 = vunpack.c.h.bf16 %v8164_v8 }
  0xba   : > { %3161 = vmatpush2.bf16.msra.mxu0 %v7039_v10  ;;  %v7070_v10 = vld [vmem:[%s7937_s7 + $0x740] ss:$16 sps:$4 sm:$0xff]  }
  0xbb   : > { %3202 = vmatpush2.bf16.msra.mxu1 %v7040_v11  ;;  %3162 = vmatprep.subr.bf16.mxu0 %v7041_v12  ;;  %v2231_v12 = vunpack.c.h.bf16 %v8143_v54 }
  0xbc   : > { %3203 = vmatprep.subr.bf16.mxu1 %v7043_v13  ;;  %v2247_v13 = vadd.f32 %v2183_v36, %v2179_v31  ;;  %v8187_v36 = vld [vmem:[#allocation8 + $0x158] sm:$0xff] }
  0xbd   : > { %v2304_v31 = vsel %vm1913_vm0, %v2231_v12, 0.0  ;;  %v7076_v12 = vld [vmem:[%s7937_s7 + $0x720] ss:$16 sps:$4 sm:$0xff]  }
  0xbe   : > { %3163 = vmatpush2.bf16.msra.mxu0 %v7045_v14  ;;  %v8171_v14 = vsel %vm1913_vm0, %v2203_v52, 0.0  ;;  %v2185_v52 = vunpack.c.h.bf16 %v8156_v1 }
  0xbf   : > { %3204 = vmatpush2.bf16.msra.mxu1 %v7046_v15  ;;  %3164 = vmatprep.subr.bf16.mxu0 %v7047_v16  ;;  %v8173_v15 = vld [vmem:[#allocation8 + $0x118] sm:$0xff] }
  0xc0   : > { %3205 = vmatprep.subr.bf16.mxu1 %v7049_v17  ;;  %v7071_v16 = vld [vmem:[%s7937_s7 + $0x524] ss:$16 sps:$4 sm:$0xff]  }
  0xc1   : > { %v7073_v17 = vld [vmem:[%s7937_s7 + $0x724] ss:$16 sps:$4 sm:$0xff]  }
  0xc2   : > { %3165 = vmatpush2.bf16.msra.mxu0 %v7051_v18  ;;  %v2299_v18 = vadd.f32 %v2211_v58, %v2207_v56  ;;  %v8207_v56 = vld [vmem:[#allocation8 + $0x188] sm:$0xff] }
  0xc3   : > { %3206 = vmatpush2.bf16.msra.mxu1 %v7052_v19  ;;  %3166 = vmatprep.subr.bf16.mxu0 %v7053_v20  ;;  %v8177_v19 = vld [vmem:[#allocation8 + $0x128] sm:$0xff]  ;;  %v8179_v20 = vld [vmem:[#allocation8 + $0x138] sm:$0xff] }
  0xc4   : > { %3207 = vmatprep.subr.bf16.mxu1 %v7055_v21  ;;  %v8181_v21 = vld [vmem:[#allocation8 + $0x148] sm:$0x11]  ;;  %v2300_v58 = vadd.f32 %v2299_v18, %v2215_v61 }
  0xc5   : > { %v7079_v18 = vld [vmem:[%s7937_s7 + $0x704] ss:$16 sps:$4 sm:$0xff]   ;;  %v2204_v42 = vunpack.c.l.bf16 %v8181_v21 }
  0xc6   : > { %3167 = vmatpush2.bf16.msra.mxu0 %v7057_v22  ;;  %v2301_v44 = vadd.f32 %v2300_v58, %v2219_v63  ;;  %v8216_v61 = vld [vmem:[#allocation8 + $0x1a8] sm:$0xff]  ;;  %v2209_v58 = vunpack.c.h.bf16 %v8187_v36  ;;  %v2221_v63 = vunpack.c.h.bf16 %v8207_v56 }
  0xc7   : > { %3208 = vmatpush2.bf16.msra.mxu1 %v7058_v23  ;;  %3168 = vmatprep.subr.bf16.mxu0 %v7059_v25  ;;  %v2181_v23 = vunpack.c.h.bf16 %v8154_v0  ;;  %v2229_v62 = vunpack.c.h.bf16 %v8216_v61 }
  0xc8   : > { %3209 = vmatprep.subr.bf16.mxu1 %v7061_v26  ;;  %v2248_v26 = vadd.f32 %v2247_v13, %v2187_v38  ;;  %v2193_v38 = vunpack.c.h.bf16 %v8173_v15  ;;  %v2302_v60 = vadd.f32 %v2301_v44, %v2223_v5 }
  0xc9   : > { %v2273_v25 = vadd.f32 %v2185_v52, %v2181_v23  ;;  %v2239_v23 = vsel %vm1913_vm0, %v2202_v51, 0.0  ;;  %v7088_v52 = vld [vmem:[%s7937_s7 + $0x6ec] ss:$16 sps:$4 sm:$0xff]   ;;  %v9026_v51 = vunpack.c.l.bf16 %v8154_v0  ;;  %v2265_v0 = vsel %vm1913_vm0, %v2204_v42, 0.0 }
  0xca   : > { %3169 = vmatpush2.bf16.msra.mxu0 %v7063_v53  ;;  %v2249_v13 = vadd.f32 %v2248_v26, %v2191_v43  ;;  %v8209_v53 = vld [vmem:[#allocation8 + $0x198] sm:$0xff]  ;;  %v2205_v43 = vunpack.c.h.bf16 %v8181_v21  ;;  %v2303_v44 = vadd.f32 %v2302_v60, %v2227_v7  ;;  %v9037_v42 = vunpack.c.l.bf16 %v8191_v6 }
  0xcb   : > { %3210 = vmatpush2.bf16.msra.mxu1 %v7064_v59  ;;  %3170 = vmatprep.subr.bf16.mxu0 %v7065_v2  ;;  %v7075_v59 = vld [vmem:[%s7937_s7 + $0x520] ss:$16 sps:$4 sm:$0xff]   ;;  %v2225_v5 = vunpack.c.h.bf16 %v8209_v53  ;;  %v2274_v11 = vadd.f32 %v2273_v25, %v2189_v4 }
  0xcc   : > { %3211 = vmatprep.subr.bf16.mxu1 %v7067_v3  ;;  %v7077_v3 = vld [vmem:[%s7937_s7 + $0x504] ss:$16 sps:$4 sm:$0xff]   ;;  %v2250_v26 = vadd.f32 %v2249_v13, %v2195_v45  ;;  %v2217_v45 = vunpack.c.h.bf16 %v8200_v49  ;;  %v2305_v60 = vadd.f32 %v2304_v31, %v2303_v44  ;;  %v2278_v7 = vsel %vm1913_vm0, %v2205_v43, 0.0 }
  0xcd   : > { %v8221_v2 = vld [vmem:[#allocation8 + $0x1b8] sm:$0x11] }
  0xce   : > { %3171 = vmatpush2.bf16.msra.mxu0 %v7069_v9  ;;  %v2213_v9 = vunpack.c.h.bf16 %v8191_v6  ;;  %v2251_v21 = vadd.f32 %v2250_v26, %v2199_v50  ;;  %v7082_v50 = vld [vmem:[%s7937_s7 + $0x700] ss:$16 sps:$4 sm:$0xff]   ;;  %v2232_v13 = vunpack.c.l.bf16 %v8221_v2 }
  0xcf   : > { %3212 = vmatpush2.bf16.msra.mxu1 %v7070_v10  ;;  %3172 = vmatprep.subr.bf16.mxu0 %v7071_v16  ;;  %v2233_v16 = vunpack.c.h.bf16 %v8221_v2 }
  0xd0   : > { %3213 = vmatprep.subr.bf16.mxu1 %v7073_v17  ;;  %v7081_v17 = vld [vmem:[%s7937_s7 + $0x500] ss:$16 sps:$4 sm:$0xff]   ;;  %v2253_v26 = vadd.f32 %v8171_v14, %v2251_v21  ;;  %v2325_v22 = vadd.f32 %v2213_v9, %v2209_v58  ;;  %v9033_v9 = vunpack.c.l.bf16 %v8132_v46  ;;  %v9039_v46 = vunpack.c.l.bf16 %v8134_v47 }
  0xd1   : > { %v2330_v14 = vsel %vm1913_vm0, %v2233_v16, 0.0  ;;  %v9035_v16 = vunpack.c.l.bf16 %v8173_v15  ;;  %v9041_v15 = vunpack.c.l.bf16 %v8200_v49 }
  0xd2   : > { %3173 = vmatpush2.bf16.msra.mxu0 %v7075_v59  ;;  %v2234_v59 = vadd.f32 %v2182_v35, %v2178_v30  ;;  %v2254_v10 = vrot.slane %v2253_v26, 4  ;;  %v2326_v31 = vadd.f32 %v2325_v22, %v2217_v45  ;;  %v2275_v30 = vadd.f32 %v2274_v11, %v2193_v38 }
  0xd3   : > { %3214 = vmatpush2.bf16.msra.mxu1 %v7076_v12  ;;  %3174 = vmatprep.subr.bf16.mxu0 %v7077_v3  ;;  %v7085_v12 = vld [vmem:[%s7937_s7 + $0x4ec] ss:$16 sps:$4 sm:$0xff]   ;;  %v2306_v3 = vrot.slane %v2305_v60, 4  ;;  %v2291_v35 = vsel %vm1913_vm0, %v9025_v34, 0.0  ;;  %v2287_v22 = vadd.f32 %v2286_v24, %v9029_v57  ;;  %v9030_v11 = vunpack.c.h.bf16 %v8177_v19 }
  0xd4   : > { %3215 = vmatprep.subr.bf16.mxu1 %v7079_v18  ;;  %v2235_v18 = vadd.f32 %v2234_v59, %v2186_v37  ;;  %v2255_v27 = vadd.f32 %v2254_v10, %v2253_v26  ;;  %v2260_v37 = vadd.f32 %v9027_v28, %v9026_v51  ;;  %v2327_v39 = vadd.f32 %v2326_v31, %v2221_v63 }
  0xd5   : > { %v2307_v4 = vadd.f32 %v2306_v3, %v2305_v60  ;;  %v2276_v54 = vadd.f32 %v2275_v30, %v9030_v11  ;;  %v9031_v38 = vunpack.c.l.bf16 %v8164_v8  ;;  %v9032_v63 = vunpack.c.l.bf16 %v8112_v32 }
  0xd6   : > { %3175 = vmatpush2.bf16.msra.mxu0 %v7081_v17  ;;  %v2236_v55 = vadd.f32 %v2235_v18, %v9028_v40  ;;  %v2256_v25 = vrot.slane %v2255_v27, 2  ;;  %v2328_v58 = vadd.f32 %v2327_v39, %v2225_v5  ;;  %v2288_v41 = vadd.f32 %v2287_v22, %v9033_v9 }
  0xd7   : > { %3216 = vmatpush2.bf16.msra.mxu1 %v7082_v50  ;;  %3226 = vmatprep.subr.bf16.mxu0 %v7085_v12  ;;  %v2261_v43 = vadd.f32 %v2260_v37, %v9031_v38  ;;  %v2308_v1 = vrot.slane %v2307_v4, 2  ;;  %v9034_v45 = vunpack.c.h.bf16 %v8179_v20  ;;  %v9036_v17 = vunpack.c.l.bf16 %v8187_v36 }
  0xd8   : > { %3267 = vmatprep.subr.bf16.mxu1 %v7088_v52  ;;  %v2237_v29 = vadd.f32 %v2236_v55, %v9032_v63  ;;  %v2257_v10 = vadd.f32 %v2256_v25, %v2255_v27  ;;  %v2329_v50 = vadd.f32 %v2328_v58, %v2229_v62  ;;  %v9038_v32 = vunpack.c.l.bf16 %v8114_v33 }
  0xd9   : > { %v2277_v21 = vadd.f32 %v2276_v54, %v9034_v45  ;;  %v2262_v8 = vadd.f32 %v2261_v43, %v9035_v16  ;;  %v2312_v44 = vadd.f32 %v9037_v42, %v9036_v17  ;;  %v2309_v5 = vadd.f32 %v2308_v1, %v2307_v4 }
  0xda   : > { %v2238_v26 = vadd.f32 %v2237_v29, %v9038_v32  ;;  %v2289_v60 = vadd.f32 %v2288_v41, %v9039_v46  ;;  %v2258_v59 = vrot.slane %v2257_v10, 1  ;;  %v9040_v52 = vunpack.c.l.bf16 %v8177_v19 }
  0xdb   : > { %v2279_v12 = vadd.f32 %v2278_v7, %v2277_v21  ;;  %v2313_v31 = vadd.f32 %v2312_v44, %v9041_v15  ;;  %v2310_v36 = vrot.slane %v2309_v5, 1  ;;  %v2331_v18 = vadd.f32 %v2330_v14, %v2329_v50 }
  0xdc   : > { %v2263_v3 = vadd.f32 %v2262_v8, %v9040_v52  ;;  %v2240_v6 = vadd.f32 %v2239_v23, %v2238_v26  ;;  %v9042_v24 = vunpack.c.l.bf16 %v8136_v48  ;;  %v2259_v27 = vadd.f32 %v2258_v59, %v2257_v10 }
  0xdd   : > { %v2280_v33 = vrot.slane %v2279_v12, 4  ;;  %v9043_v30 = vunpack.c.l.bf16 %v8179_v20  ;;  %v9044_v34 = vunpack.c.l.bf16 %v8207_v56  ;;  %v2311_v51 = vadd.f32 %v2310_v36, %v2309_v5 }
  0xde   : > { %v2290_v62 = vadd.f32 %v2289_v60, %v9042_v24  ;;  %v2332_v19 = vrot.slane %v2331_v18, 4  ;;  %v2241_v28 = vrot.slane %v2240_v6, 4  ;;  %v2339_v49 = vpack.c.bf16 %v2259_v27, %v2259_v27 }
  0xdf   : > { %v2264_v47 = vadd.f32 %v2263_v3, %v9043_v30  ;;  %v2314_v7 = vadd.f32 %v2313_v31, %v9044_v34  ;;  %v2281_v4 = vadd.f32 %v2280_v33, %v2279_v12  ;;  %v9045_v14 = vunpack.c.l.bf16 %v8209_v53 }
  0xe0   : > { %v2292_v37 = vadd.f32 %v2291_v35, %v2290_v62  ;;  %v2343_v48 = vpack.c.bf16 %v2311_v51, %v2311_v51  ;;  %v2333_v40 = vadd.f32 %v2332_v19, %v2331_v18  ;;  %v2242_v55 = vadd.f32 %v2241_v28, %v2240_v6  ;;  %v7091_v51 = vld [vmem:[%s7937_s7 + $0x4cc] ss:$16 sps:$4 sm:$0xff]  }
  0xe1   : > { %v2266_v39 = vadd.f32 %v2265_v0, %v2264_v47  ;;  %v2315_v23 = vadd.f32 %v2314_v7, %v9045_v14  ;;  %v2484_v22 = vunpack.c.l.b16 %v2339_v49  ;;  %v2282_v20 = vrot.slane %v2281_v4, 2  ;;  %v7083_v47 = vld [vmem:[%s7937_s7 + $0x4e8] ss:$16 sps:$4 sm:$0xff]  }
  0xe2   : > { %v2293_v57 = vrot.slane %v2292_v37, 4  ;;  %v9046_v56 = vunpack.c.l.bf16 %v8216_v61  ;;  %v2488_v54 = vunpack.c.l.b16 %v2343_v48  ;;  %v2334_v38 = vrot.slane %v2333_v40, 2  ;;  %v7086_v14 = vld [vmem:[%s7937_s7 + $0x6e8] ss:$16 sps:$4 sm:$0xff]   ;;  %v7094_v48 = vld [vmem:[%s7937_s7 + $0x6cc] ss:$16 sps:$4 sm:$0xff]  }
  0xe3   : > { %v2267_v25 = vrot.slane %v2266_v39, 4  ;;  %v2243_v43 = vrot.slane %v2242_v55, 2  ;;  %v2283_v1 = vadd.f32 %v2282_v20, %v2281_v4  ;;  %v2317_v53 = vsel %vm1913_vm0, %v2232_v13, 0.0  ;;  %v7097_v4 = vld [vmem:[%s7937_s7 + $0x4ac] ss:$16 sps:$4 sm:$0xff]  }
  0xe4   : > { %v2316_v11 = vadd.f32 %v2315_v23, %v9046_v56  ;;  %v2294_v35 = vadd.f32 %v2293_v57, %v2292_v37  ;;  %v2493_v0 = vsel %vm2491_vm1, %v2488_v54, %v2484_v22  ;;  %v2335_v63 = vadd.f32 %v2334_v38, %v2333_v40  ;;  %v7089_v37 = vld [vmem:[%s7937_s7 + $0x4c8] ss:$16 sps:$4 sm:$0xff]   ;;  %v7100_v22 = vld [vmem:[%s7937_s7 + $0x6ac] ss:$16 sps:$4 sm:$0xff]  }
  0xe5   : > { %v2268_v58 = vadd.f32 %v2267_v25, %v2266_v39  ;;  %v2244_v29 = vadd.f32 %v2243_v43, %v2242_v55  ;;  %v2497_v41 = vpack.c.b16 %v2493_v0, %v2493_v0  ;;  %v2284_v10 = vrot.slane %v2283_v1, 1  ;;  %v7095_v40 = vld [vmem:[%s7937_s7 + $0x4a8] ss:$16 sps:$4 sm:$0xff]   ;;  %v7103_v55 = vld [vmem:[%s7937_s7 + $0x48c] ss:$16 sps:$4 sm:$0xff]  }
  0xe6   : > { %v2295_v9 = vrot.slane %v2294_v35, 2  ;;  %v2318_v61 = vadd.f32 %v2317_v53, %v2316_v11  ;;  %v2336_v21 = vrot.slane %v2335_v63, 1  ;;  %v7092_v57 = vld [vmem:[%s7937_s7 + $0x6c8] ss:$16 sps:$4 sm:$0xff]   ;;  %v7109_v25 = vld [vmem:[%s7937_s7 + $0x46c] ss:$16 sps:$4 sm:$0xff]  }
  0xe7   : > { %v2269_v45 = vrot.slane %v2268_v58, 2  ;;  %v2245_v16 = vrot.slane %v2244_v29, 1  ;;  %3176 = vmatprep.mubr.bf16.mxu0 %v2497_v41  ;;  %v2285_v17 = vadd.f32 %v2284_v10, %v2283_v1  ;;  %v7101_v20 = vld [vmem:[%s7937_s7 + $0x488] ss:$16 sps:$4 sm:$0xff]   ;;  %v7106_v11 = vld [vmem:[%s7937_s7 + $0x68c] ss:$16 sps:$4 sm:$0xff]  }
  0xe8   : > { %v2296_v8 = vadd.f32 %v2295_v9, %v2294_v35  ;;  %v2319_v44 = vrot.slane %v2318_v61, 4  ;;  %v2337_v5 = vadd.f32 %v2336_v21, %v2335_v63  ;;  %v7098_v56 = vld [vmem:[%s7937_s7 + $0x6a8] ss:$16 sps:$4 sm:$0xff]   ;;  %v7115_v38 = vld [vmem:[%s7937_s7 + $0x44c] ss:$16 sps:$4 sm:$0xff]  }
  0xe9   : > { %v2270_v42 = vadd.f32 %v2269_v45, %v2268_v58  ;;  %v2246_v2 = vadd.f32 %v2245_v16, %v2244_v29  ;;  %v2341_v13 = vpack.c.bf16 %v2285_v17, %v2285_v17  ;;  %v7107_v54 = vld [vmem:[%s7937_s7 + $0x468] ss:$16 sps:$4 sm:$0xff]   ;;  %v7112_v35 = vld [vmem:[%s7937_s7 + $0x66c] ss:$16 sps:$4 sm:$0xff]  }
  0xea   : > { %v2297_v50 = vrot.slane %v2296_v8, 1  ;;  %v2320_v26 = vadd.f32 %v2319_v44, %v2318_v61  ;;  %v2345_v46 = vpack.c.bf16 %v2337_v5, %v2337_v5  ;;  %v7104_v43 = vld [vmem:[%s7937_s7 + $0x688] ss:$16 sps:$4 sm:$0xff]   ;;  %v7121_v58 = vld [vmem:[%s7937_s7 + $0x42c] ss:$16 sps:$4 sm:$0xff]  }
  0xeb   : > { %v2271_v32 = vrot.slane %v2270_v42, 1  ;;  %v2338_v59 = vpack.c.bf16 %v2246_v2, %v2246_v2  ;;  %v2486_v12 = vunpack.c.l.b16 %v2341_v13  ;;  %v7113_v1 = vld [vmem:[%s7937_s7 + $0x448] ss:$16 sps:$4 sm:$0xff]   ;;  %v7118_v0 = vld [vmem:[%s7937_s7 + $0x64c] ss:$16 sps:$4 sm:$0xff]  }
  0xec   : > { %v2298_v60 = vadd.f32 %v2297_v50, %v2296_v8  ;;  %v2321_v3 = vrot.slane %v2320_v26, 2  ;;  %v2490_v15 = vunpack.c.l.b16 %v2345_v46  ;;  %v7110_v53 = vld [vmem:[%s7937_s7 + $0x668] ss:$16 sps:$4 sm:$0xff]   ;;  %v7127_v29 = vld [vmem:[%s7937_s7 + $0x40c] ss:$16 sps:$4 sm:$0xff]  }
  0xed   : > { %v2272_v52 = vadd.f32 %v2271_v32, %v2270_v42  ;;  %v2483_v36 = vunpack.c.l.b16 %v2338_v59  ;;  %v7119_v63 = vld [vmem:[%s7937_s7 + $0x428] ss:$16 sps:$4 sm:$0xff]   ;;  %v7133_v45 = vld [vmem:[%s7937_s7 + $0x5ec] ss:$16 sps:$4 sm:$0xff]  }
  0xee   : > { %v2342_v31 = vpack.c.bf16 %v2298_v60, %v2298_v60  ;;  %v2322_v18 = vadd.f32 %v2321_v3, %v2320_v26  ;;  %v2495_v6 = vsel %vm2491_vm1, %v2490_v15, %v2486_v12  ;;  %v7116_v9 = vld [vmem:[%s7937_s7 + $0x648] ss:$16 sps:$4 sm:$0xff]   ;;  %v7130_v21 = vld [vmem:[%s7937_s7 + $0x60c] ss:$16 sps:$4 sm:$0xff]  }
  0xef   : > { %v2499_v62 = vpack.c.b16 %v2495_v6, %v2495_v6  ;;  %v2340_v33 = vpack.c.bf16 %v2272_v52, %v2272_v52  ;;  %v7125_v10 = vld [vmem:[%s7937_s7 + $0x408] ss:$16 sps:$4 sm:$0xff]   ;;  %v7139_v8 = vld [vmem:[%s7937_s7 + $0x5cc] ss:$16 sps:$4 sm:$0xff]  }
  0xf0   : > { %v2487_v24 = vunpack.c.l.b16 %v2342_v31  ;;  %v2323_v27 = vrot.slane %v2322_v18, 1  ;;  %v7122_v61 = vld [vmem:[%s7937_s7 + $0x628] ss:$16 sps:$4 sm:$0xff]   ;;  %v7136_v42 = vld [vmem:[%s7937_s7 + $0x7ec] ss:$16 sps:$4 sm:$0xff]  }
  0xf1   : > { %3217 = vmatprep.mubr.bf16.mxu1 %v2499_v62  ;;  %v2485_v28 = vunpack.c.l.b16 %v2340_v33  ;;  %v7131_v16 = vld [vmem:[%s7937_s7 + $0x5e8] ss:$16 sps:$4 sm:$0xff]   ;;  %v7145_v5 = vld [vmem:[%s7937_s7 + $0x5ac] ss:$16 sps:$4 sm:$0xff]  }
  0xf2   : > { %v2492_v30 = vsel %vm2491_vm1, %v2487_v24, %v2483_v36  ;;  %v2324_v7 = vadd.f32 %v2323_v27, %v2322_v18  ;;  %v7128_v17 = vld [vmem:[%s7937_s7 + $0x608] ss:$16 sps:$4 sm:$0xff]   ;;  %v7142_v50 = vld [vmem:[%s7937_s7 + $0x7cc] ss:$16 sps:$4 sm:$0xff]  }
  0xf3   : > { %v8313_v34 = vpack.c.b16 %v2492_v30, %v2492_v30  ;;  %v7137_v44 = vld [vmem:[%s7937_s7 + $0x5c8] ss:$16 sps:$4 sm:$0xff]   ;;  %v7151_v32 = vld [vmem:[%s7937_s7 + $0x58c] ss:$16 sps:$4 sm:$0xff]  }
  0xf4   : > { %v2344_v19 = vpack.c.bf16 %v2324_v7, %v2324_v7  ;;  %v7134_v2 = vld [vmem:[%s7937_s7 + $0x7e8] ss:$16 sps:$4 sm:$0xff]   ;;  %v7148_v46 = vld [vmem:[%s7937_s7 + $0x7ac] ss:$16 sps:$4 sm:$0xff]  }
  0xf5   : > { %3177 = vmatmul.mubr.bf16.vlgmr.msra.gmra.mxu0 %v8313_v34  ;;  %v7143_v13 = vld [vmem:[%s7937_s7 + $0x5a8] ss:$16 sps:$4 sm:$0xff]   ;;  %v7157_v59 = vld [vmem:[%s7937_s7 + $0x56c] ss:$16 sps:$4 sm:$0xff]  }
  0xf6   : > { %3227 = vmatpush1.bf16.msra.mxu0 %v7083_v47  ;;  %3258 = vmatprep.mubr.bf16.mxu0 %v2497_v41  ;;  %v2489_v49 = vunpack.c.l.b16 %v2344_v19  ;;  %v7124_v41 = vld [vmem:[%s7937_s7 + $0x62c] ss:$16 sps:$4 sm:$0xff]   ;;  %v7140_v26 = vld [vmem:[%s7937_s7 + $0x7c8] ss:$16 sps:$4 sm:$0xff]  }
  0xf7   : > { %3228 = vmatprep.subr.bf16.mxu0 %v7091_v51  ;;  %v7149_v60 = vld [vmem:[%s7937_s7 + $0x588] ss:$16 sps:$4 sm:$0xff]   ;;  %v7154_v52 = vld [vmem:[%s7937_s7 + $0x78c] ss:$16 sps:$4 sm:$0xff]  }
  0xf8   : > { %v2494_v39 = vsel %vm2491_vm1, %v2489_v49, %v2485_v28  ;;  %v7146_v12 = vld [vmem:[%s7937_s7 + $0x7a8] ss:$16 sps:$4 sm:$0xff]   ;;  %v7163_v36 = vld [vmem:[%s7937_s7 + $0x54c] ss:$16 sps:$4 sm:$0xff]  }
  0xf9   : > { %v8321_v23 = vpack.c.b16 %v2494_v39, %v2494_v39  ;;  %v7155_v3 = vld [vmem:[%s7937_s7 + $0x568] ss:$16 sps:$4 sm:$0xff]   ;;  %v7160_v33 = vld [vmem:[%s7937_s7 + $0x76c] ss:$16 sps:$4 sm:$0xff]  }
  0xfa   : > { %3229 = vmatpush1.bf16.msra.mxu0 %v7089_v37  ;;  %v8366_v15 = vld [vmem:[#allocation8] sm:$0xff]  ;;  %v8368_v31 = vld [vmem:[#allocation8 + $0x10] sm:$0xff] }
  0xfb   : > { %3230 = vmatprep.subr.bf16.mxu0 %v7097_v4  ;;  %3218 = vmatmul.mubr.bf16.vlgmr.msra.gmra.mxu1 %v8321_v23  ;;  %v8371_v18 = vld [vmem:[#allocation8 + $0x70] sm:$0xff]  ;;  %v8373_v6 = vld [vmem:[#allocation8 + $0x20] sm:$0xff]  ;;  %v1853_v30 = vunpack.c.h.bf16 %v8366_v15  ;;  %v1857_v47 = vunpack.c.h.bf16 %v8368_v31 }
  0xfc   : > { %3268 = vmatpush1.bf16.msra.mxu1 %v7086_v14  ;;  %3299 = vmatprep.mubr.bf16.mxu1 %v2499_v62  ;;  %v8375_v24 = vld [vmem:[#allocation8 + $0x80] sm:$0xff]  ;;  %v8377_v62 = vld [vmem:[#allocation8 + $0x90] sm:$0xff]  ;;  %v1881_v7 = vunpack.c.h.bf16 %v8371_v18  ;;  %v1861_v39 = vunpack.c.h.bf16 %v8373_v6 }
  0xfd   : > { %3269 = vmatprep.subr.bf16.mxu1 %v7094_v48  ;;  %v7152_v27 = vld [vmem:[%s7937_s7 + $0x788] ss:$16 sps:$4 sm:$0xff]   ;;  %v1885_v37 = vunpack.c.h.bf16 %v8375_v24  ;;  %v7169_v4 = vld [vmem:[%s7937_s7 + $0x52c] ss:$16 sps:$4 sm:$0xff]   ;;  %v1889_v14 = vunpack.c.h.bf16 %v8377_v62 }
  0xfe   : > { %3231 = vmatpush1.bf16.msra.mxu0 %v7095_v40  ;;  %v7161_v51 = vld [vmem:[%s7937_s7 + $0x548] ss:$16 sps:$4 sm:$0xff]   ;;  %v7166_v48 = vld [vmem:[%s7937_s7 + $0x74c] ss:$16 sps:$4 sm:$0xff]  }
  0xff   : > { %3232 = vmatprep.subr.bf16.mxu0 %v7103_v55  ;;  %v8385_v19 = vld [vmem:[#allocation8 + $0x30] sm:$0xff]  ;;  %v8387_v28 = vld [vmem:[#allocation8 + $0xa0] sm:$0xff] }
 0x100   : > { %3270 = vmatpush1.bf16.msra.mxu1 %v7092_v57  ;;  %v7158_v49 = vld [vmem:[%s7937_s7 + $0x768] ss:$16 sps:$4 sm:$0xff]  }
 0x101   : > { %3271 = vmatprep.subr.bf16.mxu1 %v7100_v22  ;;  %v7167_v40 = vld [vmem:[%s7937_s7 + $0x528] ss:$16 sps:$4 sm:$0xff]   ;;  %v7175_v22 = vld [vmem:[%s7937_s7 + $0x50c] ss:$16 sps:$4 sm:$0xff]  }
 0x102   : > { %3233 = vmatpush1.bf16.msra.mxu0 %v7101_v20  ;;  %v8396_v55 = vld [vmem:[#allocation8 + $0x40] sm:$0xff]  ;;  %v8398_v57 = vld [vmem:[#allocation8 + $0xb0] sm:$0xff] }
 0x103   : > { %3234 = vmatprep.subr.bf16.mxu0 %v7109_v25  ;;  %v8401_v20 = vld [vmem:[#allocation8 + $0x60] sm:$0x11]  ;;  %v8403_v25 = vld [vmem:[#allocation8 + $0xd0] sm:$0x11] }
 0x104   : > { %3272 = vmatpush1.bf16.msra.mxu1 %v7098_v56  ;;  %v1865_v56 = vunpack.c.h.bf16 %v8385_v19 }
 0x105   : > { %3273 = vmatprep.subr.bf16.mxu1 %v7106_v11  ;;  %v1893_v11 = vunpack.c.h.bf16 %v8387_v28 }
 0x106   : > { %3235 = vmatpush1.bf16.msra.mxu0 %v7107_v54  ;;  %v1922_v54 = vadd.f32 %v1857_v47, %v1853_v30  ;;  %v7178_v30 = vld [vmem:[%s7937_s7 + $0x70c] ss:$16 sps:$4 sm:$0xff]   ;;  %v7179_v47 = vld [vmem:[%s7937_s7 + $0xe0] ss:$16 sps:$4 sm:$0xff]  }
 0x107   : > { %3236 = vmatprep.subr.bf16.mxu0 %v7115_v38  ;;  %v1974_v38 = vadd.f32 %v1885_v37, %v1881_v7  ;;  %v8449_v7 = vld [vmem:[#allocation8 + $0x48] sm:$0xff] }
 0x108   : > { %3274 = vmatpush1.bf16.msra.mxu1 %v7104_v43  ;;  %v8407_v43 = vld [vmem:[#allocation8 + $0x50] sm:$0xff] }
 0x109   : > { %3275 = vmatprep.subr.bf16.mxu1 %v7112_v35  ;;  %v8409_v35 = vld [vmem:[#allocation8 + $0xc0] sm:$0xff] }
 0x10a   : > { %3237 = vmatpush1.bf16.msra.mxu0 %v7113_v1  ;;  %v1852_v1 = vunpack.c.l.bf16 %v8366_v15 }
 0x10b   : > { %3238 = vmatprep.subr.bf16.mxu0 %v7121_v58  ;;  %v7164_v58 = vld [vmem:[%s7937_s7 + $0x748] ss:$16 sps:$4 sm:$0xff]  }
 0x10c   : > { %3276 = vmatpush1.bf16.msra.mxu1 %v7110_v53  ;;  %v1869_v53 = vunpack.c.h.bf16 %v8396_v55 }
 0x10d   : > { %3277 = vmatprep.subr.bf16.mxu1 %v7118_v0  ;;  %v1897_v0 = vunpack.c.h.bf16 %v8398_v57 }
 0x10e   : > { %3239 = vmatpush1.bf16.msra.mxu0 %v7119_v63  ;;  %v1923_v63 = vadd.f32 %v1922_v54, %v1861_v39 }
 0x10f   : > { %3240 = vmatprep.subr.bf16.mxu0 %v7127_v29  ;;  %v1975_v29 = vadd.f32 %v1974_v38, %v1889_v14  ;;  %v8454_v14 = vld [vmem:[#allocation8 + $0xa8] sm:$0xff] }
 0x110   : > { %3278 = vmatpush1.bf16.msra.mxu1 %v7116_v9  ;;  %v8415_v9 = vld [vmem:[#allocation8 + $0x8] sm:$0xff] }
 0x111   : > { %3279 = vmatprep.subr.bf16.mxu1 %v7124_v41  ;;  %v8417_v41 = vld [vmem:[#allocation8 + $0x18] sm:$0xff] }
 0x112   : > { %3241 = vmatpush1.bf16.msra.mxu0 %v7125_v10  ;;  %v7172_v10 = vld [vmem:[%s7937_s7 + $0x72c] ss:$16 sps:$4 sm:$0xff]   ;;  %v1858_v54 = vunpack.c.l.bf16 %v8417_v41 }
 0x113   : > { %3242 = vmatprep.subr.bf16.mxu0 %v7133_v45  ;;  %v7173_v45 = vld [vmem:[%s7937_s7 + $0x508] ss:$16 sps:$4 sm:$0xff]  }
 0x114   : > { %3280 = vmatpush1.bf16.msra.mxu1 %v7122_v61  ;;  %v1856_v61 = vunpack.c.l.bf16 %v8368_v31  ;;  %v8439_v31 = vld [vmem:[#allocation8 + $0x38] sm:$0xff] }
 0x115   : > { %3281 = vmatprep.subr.bf16.mxu1 %v7130_v21  ;;  %v1860_v21 = vunpack.c.l.bf16 %v8373_v6 }
 0x116   : > { %3243 = vmatpush2.bf16.msra.mxu0 %v7131_v16  ;;  %v1877_v16 = vunpack.c.h.bf16 %v8401_v20 }
 0x117   : > { %3244 = vmatprep.subr.bf16.mxu0 %v7139_v8  ;;  %v1905_v8 = vunpack.c.h.bf16 %v8403_v25 }
 0x118   : > { %3282 = vmatpush1.bf16.msra.mxu1 %v7128_v17  ;;  %v8425_v17 = vld [vmem:[#allocation8 + $0x78] sm:$0xff] }
 0x119   : > { %3283 = vmatprep.subr.bf16.mxu1 %v7136_v42  ;;  %v1873_v42 = vunpack.c.h.bf16 %v8407_v43 }
 0x11a   : > { %3245 = vmatpush2.bf16.msra.mxu0 %v7137_v44  ;;  %v1901_v44 = vunpack.c.h.bf16 %v8409_v35 }
 0x11b   : > { %3246 = vmatprep.subr.bf16.mxu0 %v7145_v5  ;;  %v1924_v5 = vadd.f32 %v1923_v63, %v1865_v56  ;;  %v8459_v56 = vld [vmem:[#allocation8 + $0x58] sm:$0xff]  ;;  %v8465_v63 = vld [vmem:[#allocation8 + $0x68] sm:$0x11] }
 0x11c   : > { %3284 = vmatpush2.bf16.msra.mxu1 %v7134_v2  ;;  %v1976_v2 = vadd.f32 %v1975_v29, %v1893_v11  ;;  %v1854_v11 = vunpack.c.l.bf16 %v8415_v9  ;;  %v8467_v29 = vld [vmem:[#allocation8 + $0xb8] sm:$0xff] }
 0x11d   : > { %3285 = vmatprep.subr.bf16.mxu1 %v7142_v50  ;;  %v8429_v50 = vld [vmem:[#allocation8 + $0x88] sm:$0xff]  ;;  %v1899_v15 = vunpack.c.h.bf16 %v8467_v29 }
 0x11e   : > { %3247 = vmatpush2.bf16.msra.mxu0 %v7143_v13  ;;  %v7181_v13 = vld [vmem:[%s7937_s7 + $0xe4] ss:$16 sps:$4 sm:$0xff]   ;;  %v1887_v37 = vunpack.c.h.bf16 %v8429_v50 }
 0x11f   : > { %3248 = vmatprep.subr.bf16.mxu0 %v7151_v32  ;;  %v1864_v32 = vunpack.c.l.bf16 %v8385_v19  ;;  %v1872_v19 = vunpack.c.l.bf16 %v8407_v43 }
 0x120   : > { %3286 = vmatpush2.bf16.msra.mxu1 %v7140_v26  ;;  %v1868_v26 = vunpack.c.l.bf16 %v8396_v55 }
 0x121   : > { %3287 = vmatprep.subr.bf16.mxu1 %v7148_v46  ;;  %v1880_v46 = vunpack.c.l.bf16 %v8371_v18  ;;  %v1927_v18 = vsel %vm1913_vm0, %v1877_v16, 0.0  ;;  %v8470_v16 = vld [vmem:[#allocation8 + $0xd8] sm:$0x11] }
 0x122   : > { %3249 = vmatpush2.bf16.msra.mxu0 %v7149_v60  ;;  %v1884_v60 = vunpack.c.l.bf16 %v8375_v24  ;;  %v1979_v24 = vsel %vm1913_vm0, %v1905_v8, 0.0  ;;  %v1871_v8 = vunpack.c.h.bf16 %v8449_v7 }
 0x123   : > { %3250 = vmatprep.subr.bf16.mxu0 %v7157_v59  ;;  %v8436_v59 = vld [vmem:[#allocation8 + $0x28] sm:$0xff] }
 0x124   : > { %3288 = vmatpush2.bf16.msra.mxu1 %v7146_v12  ;;  %v7170_v12 = vld [vmem:[%s7937_s7 + $0x728] ss:$16 sps:$4 sm:$0xff]  }
 0x125   : > { %3289 = vmatprep.subr.bf16.mxu1 %v7154_v52  ;;  %v1925_v52 = vadd.f32 %v1924_v5, %v1869_v53  ;;  %v1908_v5 = vadd.f32 %v1856_v61, %v1852_v1  ;;  %v1961_v61 = vadd.f32 %v1884_v60, %v1880_v46  ;;  %v7182_v46 = vld [vmem:[%s7937_s7 + $0x2e0] ss:$16 sps:$4 sm:$0xff]  }
 0x126   : > { %3251 = vmatpush2.bf16.msra.mxu0 %v7155_v3  ;;  %v1977_v3 = vadd.f32 %v1976_v2, %v1897_v0 }
 0x127   : > { %3252 = vmatprep.subr.bf16.mxu0 %v7163_v36  ;;  %v8441_v36 = vld [vmem:[#allocation8 + $0x98] sm:$0xff] }
 0x128   : > { %3290 = vmatpush2.bf16.msra.mxu1 %v7152_v27  ;;  %v1855_v27 = vunpack.c.h.bf16 %v8415_v9  ;;  %v1978_v39 = vadd.f32 %v1977_v3, %v1901_v44  ;;  %v1891_v38 = vunpack.c.h.bf16 %v8441_v36  ;;  %v1875_v3 = vunpack.c.h.bf16 %v8459_v56 }
 0x129   : > { %3291 = vmatprep.subr.bf16.mxu1 %v7160_v33  ;;  %v1859_v33 = vunpack.c.h.bf16 %v8417_v41 }
 0x12a   : > { %3253 = vmatpush2.bf16.msra.mxu0 %v7161_v51  ;;  %v1883_v51 = vunpack.c.h.bf16 %v8425_v17  ;;  %v1980_v0 = vadd.f32 %v1979_v24, %v1978_v39  ;;  %v1879_v24 = vunpack.c.h.bf16 %v8465_v63 }
 0x12b   : > { %3254 = vmatprep.subr.bf16.mxu0 %v7169_v4  ;;  %v1926_v4 = vadd.f32 %v1925_v52, %v1873_v42  ;;  %v1895_v42 = vunpack.c.h.bf16 %v8454_v14  ;;  %v8477_v52 = vld [vmem:[#allocation8 + $0xc8] sm:$0xff] }
 0x12c   : > { %3292 = vmatpush2.bf16.msra.mxu1 %v7158_v49  ;;  %v1888_v49 = vunpack.c.l.bf16 %v8377_v62  ;;  %v2000_v44 = vadd.f32 %v1887_v37, %v1883_v51  ;;  %v1907_v37 = vunpack.c.h.bf16 %v8470_v16  ;;  %v1935_v62 = vadd.f32 %v1858_v54, %v1854_v11  ;;  %v7205_v11 = vld [vmem:[%s7937_s7 + $0x64] ss:$16 sps:$4 sm:$0xff]  }
 0x12d   : > { %3293 = vmatprep.subr.bf16.mxu1 %v7166_v48  ;;  %v1863_v48 = vunpack.c.h.bf16 %v8436_v59  ;;  %v1928_v53 = vadd.f32 %v1927_v18, %v1926_v4  ;;  %v7185_v18 = vld [vmem:[%s7937_s7 + $0xc0] ss:$16 sps:$4 sm:$0xff]  }
 0x12e   : > { %3255 = vmatpush2.bf16.msra.mxu0 %v7167_v40  ;;  %v7187_v40 = vld [vmem:[%s7937_s7 + $0xc4] ss:$16 sps:$4 sm:$0xff]   ;;  %v2001_v1 = vadd.f32 %v2000_v44, %v1891_v38  ;;  %v1886_v38 = vunpack.c.l.bf16 %v8429_v50  ;;  %v1962_v6 = vadd.f32 %v1961_v61, %v1888_v49  ;;  %v7188_v49 = vld [vmem:[%s7937_s7 + $0x2c0] ss:$16 sps:$4 sm:$0xff]  }
 0x12f   : > { %3256 = vmatprep.subr.bf16.mxu0 %v7175_v22  ;;  %v1892_v22 = vunpack.c.l.bf16 %v8387_v28  ;;  %v1929_v2 = vrot.slane %v1928_v53, 4  ;;  %v7194_v28 = vld [vmem:[%s7937_s7 + $0x2a0] ss:$16 sps:$4 sm:$0xff]  }
 0x130   : > { %3294 = vmatpush2.bf16.msra.mxu1 %v7164_v58  ;;  %v7176_v58 = vld [vmem:[%s7937_s7 + $0x708] ss:$16 sps:$4 sm:$0xff]   ;;  %v2002_v39 = vadd.f32 %v2001_v1, %v1895_v42  ;;  %v1894_v1 = vunpack.c.l.bf16 %v8454_v14  ;;  %v1900_v14 = vunpack.c.l.bf16 %v8409_v35  ;;  %v7200_v35 = vld [vmem:[%s7937_s7 + $0x280] ss:$16 sps:$4 sm:$0xff]  }
 0x131   : > { %3295 = vmatprep.subr.bf16.mxu1 %v7172_v10  ;;  %v1867_v10 = vunpack.c.h.bf16 %v8439_v31  ;;  %v1963_v41 = vadd.f32 %v1962_v6, %v1892_v22 }
 0x132   : > { %3257 = vmatpush2.bf16.msra.mxu0 %v7173_v45  ;;  %v1948_v45 = vadd.f32 %v1859_v33, %v1855_v27  ;;  %v7184_v33 = vld [vmem:[%s7937_s7 + $0x2e4] ss:$16 sps:$4 sm:$0xff]   ;;  %v2003_v42 = vadd.f32 %v2002_v39, %v1899_v15 }
 0x133   : > { %3976 = vmatprep.subr.bf16.mxu0 %v7181_v13  ;;  %v1981_v13 = vrot.slane %v1980_v0, 4 }
 0x134   : > { %3296 = vmatpush2.bf16.msra.mxu1 %v7170_v12  ;;  %v1949_v27 = vadd.f32 %v1948_v45, %v1863_v48  ;;  %v1930_v12 = vadd.f32 %v1929_v2, %v1928_v53  ;;  %v1909_v48 = vadd.f32 %v1908_v5, %v1860_v21  ;;  %v1953_v45 = vsel %vm1913_vm0, %v1879_v24, 0.0  ;;  %v7199_v21 = vld [vmem:[%s7937_s7 + $0x84] ss:$16 sps:$4 sm:$0xff]  }
 0x135   : > { %3259 = vmatmul.mubr.bf16.vlgmr.msra.gmra.mxu0 %v8313_v34  ;;  %3297 = vmatprep.subr.bf16.mxu1 %v7178_v30  ;;  %v7193_v34 = vld [vmem:[%s7937_s7 + $0xa4] ss:$16 sps:$4 sm:$0xff]   ;;  %v1982_v51 = vadd.f32 %v1981_v13, %v1980_v0  ;;  %v1882_v30 = vunpack.c.l.bf16 %v8425_v17  ;;  %v1862_v17 = vunpack.c.l.bf16 %v8436_v59  ;;  %v1890_v59 = vunpack.c.l.bf16 %v8441_v36  ;;  %v7197_v36 = vld [vmem:[%s7937_s7 + $0x80] ss:$16 sps:$4 sm:$0xff]  }
 0x136   : > { %3977 = vmatpush1.bf16.msra.mxu0 %v7179_v47  ;;  %v1950_v4 = vadd.f32 %v1949_v27, %v1867_v10  ;;  %v1903_v47 = vunpack.c.h.bf16 %v8477_v52  ;;  %v1931_v60 = vrot.slane %v1930_v12, 2  ;;  %v7190_v0 = vld [vmem:[%s7937_s7 + $0x2c4] ss:$16 sps:$4 sm:$0xff]   ;;  %v7191_v10 = vld [vmem:[%s7937_s7 + $0xa0] ss:$16 sps:$4 sm:$0xff]   ;;  %v1910_v2 = vadd.f32 %v1909_v48, %v1864_v32 }
 0x137   : > { %3978 = vmatprep.subr.bf16.mxu0 %v7187_v40  ;;  %v1983_v40 = vrot.slane %v1982_v51, 2  ;;  %v1896_v32 = vunpack.c.l.bf16 %v8398_v57  ;;  %v1866_v24 = vunpack.c.l.bf16 %v8439_v31  ;;  %v1936_v57 = vadd.f32 %v1935_v62, %v1862_v17 }
 0x138   : > { %3298 = vmatpush2.bf16.msra.mxu1 %v7176_v58  ;;  %v1951_v53 = vadd.f32 %v1950_v4, %v1871_v8  ;;  %v1932_v58 = vadd.f32 %v1931_v60, %v1930_v12  ;;  %v2005_v8 = vsel %vm1913_vm0, %v1907_v37, 0.0  ;;  %v2004_v5 = vadd.f32 %v2003_v42, %v1903_v47  ;;  %v7202_v37 = vld [vmem:[%s7937_s7 + $0x284] ss:$16 sps:$4 sm:$0xff]   ;;  %v7203_v4 = vld [vmem:[%s7937_s7 + $0x60] ss:$16 sps:$4 sm:$0xff]  }
 0x139   : > { %4017 = vmatprep.subr.bf16.mxu1 %v7184_v33  ;;  %v1984_v44 = vadd.f32 %v1983_v40, %v1982_v51  ;;  %v1987_v33 = vadd.f32 %v1886_v38, %v1882_v30  ;;  %v1911_v43 = vadd.f32 %v1910_v2, %v1868_v26  ;;  %v1876_v31 = vunpack.c.l.bf16 %v8401_v20  ;;  %v7211_v26 = vld [vmem:[%s7937_s7 + $0x44] ss:$16 sps:$4 sm:$0xff]  }
 0x13a   : > { %3979 = vmatpush1.bf16.msra.mxu0 %v7185_v18  ;;  %v1952_v50 = vadd.f32 %v1951_v53, %v1875_v3  ;;  %v1933_v13 = vrot.slane %v1932_v58, 1  ;;  %v2006_v9 = vadd.f32 %v2005_v8, %v2004_v5  ;;  %v1964_v55 = vadd.f32 %v1963_v41, %v1896_v32  ;;  %v7206_v5 = vld [vmem:[%s7937_s7 + $0x260] ss:$16 sps:$4 sm:$0xff]  }
 0x13b   : > { %3980 = vmatprep.subr.bf16.mxu0 %v7193_v34  ;;  %3300 = vmatmul.mubr.bf16.vlgmr.msra.gmra.mxu1 %v8321_v23  ;;  %v1985_v3 = vrot.slane %v1984_v44, 1  ;;  %v7196_v23 = vld [vmem:[%s7937_s7 + $0x2a4] ss:$16 sps:$4 sm:$0xff]   ;;  %v1988_v51 = vadd.f32 %v1987_v33, %v1890_v59  ;;  %v1904_v47 = vunpack.c.l.bf16 %v8403_v25  ;;  %v1870_v60 = vunpack.c.l.bf16 %v8449_v7  ;;  %v7212_v32 = vld [vmem:[%s7937_s7 + $0x240] ss:$16 sps:$4 sm:$0xff]  }
 0x13c   : > { %4018 = vmatpush1.bf16.msra.mxu1 %v7182_v46  ;;  %v1954_v27 = vadd.f32 %v1953_v45, %v1952_v50  ;;  %v1934_v54 = vadd.f32 %v1933_v13, %v1932_v58  ;;  %v2007_v61 = vrot.slane %v2006_v9, 4  ;;  %v1898_v40 = vunpack.c.l.bf16 %v8467_v29  ;;  %v7208_v25 = vld [vmem:[%s7937_s7 + $0x264] ss:$16 sps:$4 sm:$0xff]   ;;  %v7209_v45 = vld [vmem:[%s7937_s7 + $0x40] ss:$16 sps:$4 sm:$0xff]  }
 0x13d   : > { %4019 = vmatprep.subr.bf16.mxu1 %v7190_v0  ;;  %v1986_v18 = vadd.f32 %v1985_v3, %v1984_v44  ;;  %v1937_v20 = vadd.f32 %v1936_v57, %v1866_v24  ;;  %v1989_v17 = vadd.f32 %v1988_v51, %v1894_v1  ;;  %v1965_v6 = vadd.f32 %v1964_v55, %v1900_v14  ;;  %v7217_v29 = vld [vmem:[%s7937_s7 + $0x24] ss:$16 sps:$4 sm:$0xff]  }
 0x13e   : > { %3981 = vmatpush1.bf16.msra.mxu0 %v7191_v10  ;;  %v1955_v15 = vrot.slane %v1954_v27, 4  ;;  %v2014_v22 = vpack.c.bf16 %v1934_v54, %v1934_v54  ;;  %v2008_v30 = vadd.f32 %v2007_v61, %v2006_v9  ;;  %v1912_v10 = vadd.f32 %v1911_v43, %v1872_v19  ;;  %v7214_v3 = vld [vmem:[%s7937_s7 + $0x244] ss:$16 sps:$4 sm:$0xff]  }
 0x13f   : > { %3982 = vmatprep.subr.bf16.mxu0 %v7199_v21  ;;  %v2018_v34 = vpack.c.bf16 %v1986_v18, %v1986_v18  ;;  %v1914_v58 = vsel %vm1913_vm0, %v1876_v31, 0.0  ;;  %v1966_v44 = vsel %vm1913_vm0, %v1904_v47, 0.0  ;;  %v1874_v50 = vunpack.c.l.bf16 %v8459_v56  ;;  %v7220_v9 = vld [vmem:[%s7937_s7 + $0x224] ss:$16 sps:$4 sm:$0xff]  }
 0x140   : > { %4020 = vmatpush1.bf16.msra.mxu1 %v7188_v49  ;;  %v1956_v12 = vadd.f32 %v1955_v15, %v1954_v27  ;;  %v3317_v39 = vunpack.c.l.b16 %v2014_v22  ;;  %v2009_v38 = vrot.slane %v2008_v30, 2  ;;  %v1878_v8 = vunpack.c.l.bf16 %v8465_v63  ;;  %v7215_v27 = vld [vmem:[%s7937_s7 + $0x20] ss:$16 sps:$4 sm:$0xff]   ;;  %v7229_v43 = vld [vmem:[%s7937_s7 + $0x1e4] ss:$16 sps:$4 sm:$0xff]  }
 0x141   : > { %4021 = vmatprep.subr.bf16.mxu1 %v7196_v23  ;;  %v3321_v48 = vunpack.c.l.b16 %v2018_v34  ;;  %v1902_v2 = vunpack.c.l.bf16 %v8477_v52  ;;  %v1938_v49 = vadd.f32 %v1937_v20, %v1870_v60  ;;  %v1990_v13 = vadd.f32 %v1989_v17, %v1898_v40  ;;  %v7226_v51 = vld [vmem:[%s7937_s7 + $0x204] ss:$16 sps:$4 sm:$0xff]   ;;  %v7230_v40 = vld [vmem:[%s7937_s7 + $0x3e0] ss:$16 sps:$4 sm:$0xff]  }
 0x142   : > { %3983 = vmatpush1.bf16.msra.mxu0 %v7197_v36  ;;  %v1957_v46 = vrot.slane %v1956_v12, 2  ;;  %v2010_v7 = vadd.f32 %v2009_v38, %v2008_v30  ;;  %v1906_v33 = vunpack.c.l.bf16 %v8470_v16  ;;  %v1915_v63 = vadd.f32 %v1914_v58, %v1912_v10  ;;  %v7223_v36 = vld [vmem:[%s7937_s7 + $0x4] ss:$16 sps:$4 sm:$0xff]   ;;  %v7221_v16 = vld [vmem:[%s7937_s7] ss:$16 sps:$4 sm:$0xff]  }
 0x143   : > { %3984 = vmatprep.subr.bf16.mxu0 %v7205_v11  ;;  %v3325_v53 = vsel %vm2491_vm1, %v3321_v48, %v3317_v39  ;;  %v1967_v23 = vadd.f32 %v1966_v44, %v1965_v6  ;;  %v1939_v11 = vadd.f32 %v1938_v49, %v1874_v50  ;;  %v1940_v54 = vsel %vm1913_vm0, %v1878_v8, 0.0  ;;  %v7235_v14 = vld [vmem:[%s7937_s7 + $0x1c4] ss:$16 sps:$4 sm:$0xff]   ;;  %v7224_v30 = vld [vmem:[%s7937_s7 + $0x200] ss:$16 sps:$4 sm:$0xff]  }
 0x144   : > { %4022 = vmatpush1.bf16.msra.mxu1 %v7194_v28  ;;  %v1958_v0 = vadd.f32 %v1957_v46, %v1956_v12  ;;  %v8533_v42 = vpack.c.b16 %v3325_v53, %v3325_v53  ;;  %v2011_v59 = vrot.slane %v2010_v7, 1  ;;  %v1991_v18 = vadd.f32 %v1990_v13, %v1902_v2  ;;  %v7218_v28 = vld [vmem:[%s7937_s7 + $0x220] ss:$16 sps:$4 sm:$0xff]   ;;  %v7232_v55 = vld [vmem:[%s7937_s7 + $0x3e4] ss:$16 sps:$4 sm:$0xff]  }
 0x145   : > { %4023 = vmatprep.subr.bf16.mxu1 %v7202_v37  ;;  %v1916_v15 = vrot.slane %v1915_v63, 4  ;;  %v1968_v1 = vrot.slane %v1967_v23, 4  ;;  %v1992_v61 = vsel %vm1913_vm0, %v1906_v33, 0.0  ;;  %v1941_v34 = vadd.f32 %v1940_v54, %v1939_v11  ;;  %v7227_v37 = vld [vmem:[%s7937_s7 + $0x1e0] ss:$16 sps:$4 sm:$0xff]  }
 0x146   : > { %3985 = vmatpush1.bf16.msra.mxu0 %v7203_v4  ;;  %v1959_v21 = vrot.slane %v1958_v0, 1  ;;  %4008 = vmatprep.mubr.bf16.mxu0 %v8533_v42  ;;  %v2012_v56 = vadd.f32 %v2011_v59, %v2010_v7  ;;  %v1993_v12 = vadd.f32 %v1992_v61, %v1991_v18  ;;  %v7233_v39 = vld [vmem:[%s7937_s7 + $0x1c0] ss:$16 sps:$4 sm:$0xff]   ;;  %v7241_v60 = vld [vmem:[%s7937_s7 + $0x1a4] ss:$16 sps:$4 sm:$0xff]  }
 0x147   : > { %3986 = vmatprep.subr.bf16.mxu0 %v7211_v26  ;;  %v1917_v4 = vadd.f32 %v1916_v15, %v1915_v63  ;;  %v1969_v31 = vadd.f32 %v1968_v1, %v1967_v23  ;;  %v1942_v26 = vrot.slane %v1941_v34, 4  ;;  %v7239_v53 = vld [vmem:[%s7937_s7 + $0x1a0] ss:$16 sps:$4 sm:$0xff]   ;;  %v7247_v17 = vld [vmem:[%s7937_s7 + $0x184] ss:$16 sps:$4 sm:$0xff]  }
 0x148   : > { %4024 = vmatpush1.bf16.msra.mxu1 %v7200_v35  ;;  %v1960_v62 = vadd.f32 %v1959_v21, %v1958_v0  ;;  %v2020_v52 = vpack.c.bf16 %v2012_v56, %v2012_v56  ;;  %v1994_v47 = vrot.slane %v1993_v12, 4  ;;  %v7238_v35 = vld [vmem:[%s7937_s7 + $0x3c4] ss:$16 sps:$4 sm:$0xff]   ;;  %v7242_v50 = vld [vmem:[%s7937_s7 + $0x3a0] ss:$16 sps:$4 sm:$0xff]  }
 0x149   : > { %4025 = vmatprep.subr.bf16.mxu1 %v7208_v25  ;;  %v1918_v48 = vrot.slane %v1917_v4, 2  ;;  %v1970_v46 = vrot.slane %v1969_v31, 2  ;;  %v1943_v38 = vadd.f32 %v1942_v26, %v1941_v34  ;;  %v7236_v25 = vld [vmem:[%s7937_s7 + $0x3c0] ss:$16 sps:$4 sm:$0xff]   ;;  %v7253_v44 = vld [vmem:[%s7937_s7 + $0x164] ss:$16 sps:$4 sm:$0xff]  }
 0x14a   : > { %3987 = vmatpush1.bf16.msra.mxu0 %v7209_v45  ;;  %v2016_v19 = vpack.c.bf16 %v1960_v62, %v1960_v62  ;;  %v3323_v24 = vunpack.c.l.b16 %v2020_v52  ;;  %v1995_v20 = vadd.f32 %v1994_v47, %v1993_v12  ;;  %v7244_v45 = vld [vmem:[%s7937_s7 + $0x3a4] ss:$16 sps:$4 sm:$0xff]   ;;  %v7251_v2 = vld [vmem:[%s7937_s7 + $0x160] ss:$16 sps:$4 sm:$0xff]   ;;  %v7280_v26 = vld [vmem:[%s7937_s7 + $0x2ec] ss:$16 sps:$4 sm:$0xff]  }
 0x14b   : > { %3988 = vmatprep.subr.bf16.mxu0 %v7217_v29  ;;  %v1919_v0 = vadd.f32 %v1918_v48, %v1917_v4  ;;  %v1971_v10 = vadd.f32 %v1970_v46, %v1969_v31  ;;  %v1944_v7 = vrot.slane %v1943_v38, 2  ;;  %v7245_v29 = vld [vmem:[%s7937_s7 + $0x180] ss:$16 sps:$4 sm:$0xff]   ;;  %v7259_v13 = vld [vmem:[%s7937_s7 + $0x144] ss:$16 sps:$4 sm:$0xff]  }
 0x14c   : > { %4026 = vmatpush1.bf16.msra.mxu1 %v7206_v5  ;;  %v3319_v41 = vunpack.c.l.b16 %v2016_v19  ;;  %v1996_v6 = vrot.slane %v1995_v20, 2  ;;  %v7250_v5 = vld [vmem:[%s7937_s7 + $0x384] ss:$16 sps:$4 sm:$0xff]   ;;  %v7257_v63 = vld [vmem:[%s7937_s7 + $0x140] ss:$16 sps:$4 sm:$0xff]  }
 0x14d   : > { %4027 = vmatprep.subr.bf16.mxu1 %v7214_v3  ;;  %v1920_v21 = vrot.slane %v1919_v0, 1  ;;  %v1972_v58 = vrot.slane %v1971_v10, 1  ;;  %v1945_v8 = vadd.f32 %v1944_v7, %v1943_v38  ;;  %v7248_v3 = vld [vmem:[%s7937_s7 + $0x380] ss:$16 sps:$4 sm:$0xff]   ;;  %v7256_v56 = vld [vmem:[%s7937_s7 + $0x364] ss:$16 sps:$4 sm:$0xff]  }
 0x14e   : > { %3989 = vmatpush1.bf16.msra.mxu0 %v7215_v27  ;;  %v3327_v57 = vsel %vm2491_vm1, %v3323_v24, %v3319_v41  ;;  %v1997_v59 = vadd.f32 %v1996_v6, %v1995_v20  ;;  %v7265_v19 = vld [vmem:[%s7937_s7 + $0x124] ss:$16 sps:$4 sm:$0xff]   ;;  %v7263_v11 = vld [vmem:[%s7937_s7 + $0x120] ss:$16 sps:$4 sm:$0xff]   ;;  %v7275_v31 = vld [vmem:[%s7937_s7 + $0xe8] ss:$16 sps:$4 sm:$0xff]  }
 0x14f   : > { %3990 = vmatprep.subr.bf16.mxu0 %v7223_v36  ;;  %v8555_v22 = vpack.c.b16 %v3327_v57, %v3327_v57  ;;  %v1921_v62 = vadd.f32 %v1920_v21, %v1919_v0  ;;  %v1973_v49 = vadd.f32 %v1972_v58, %v1971_v10  ;;  %v1946_v27 = vrot.slane %v1945_v8, 1  ;;  %v7262_v41 = vld [vmem:[%s7937_s7 + $0x344] ss:$16 sps:$4 sm:$0xff]   ;;  %v7260_v24 = vld [vmem:[%s7937_s7 + $0x340] ss:$16 sps:$4 sm:$0xff]   ;;  %v8624_v7 = vld [vmem:[#allocation8 + $0x240] sm:$0xff] }
 0x150   : > { %4028 = vmatpush1.bf16.msra.mxu1 %v7212_v32  ;;  %v1998_v33 = vrot.slane %v1997_v59, 1  ;;  %v7254_v32 = vld [vmem:[%s7937_s7 + $0x360] ss:$16 sps:$4 sm:$0xff]   ;;  %v7268_v61 = vld [vmem:[%s7937_s7 + $0x324] ss:$16 sps:$4 sm:$0xff]   ;;  %v8629_v21 = vld [vmem:[#allocation8 + $0x250] sm:$0xff] }
 0x151   : > { %4029 = vmatprep.subr.bf16.mxu1 %v7220_v9  ;;  %4049 = vmatprep.mubr.bf16.mxu1 %v8555_v22  ;;  %v2013_v23 = vpack.c.bf16 %v1921_v62, %v1921_v62  ;;  %v2017_v36 = vpack.c.bf16 %v1973_v49, %v1973_v49  ;;  %v1947_v52 = vadd.f32 %v1946_v27, %v1945_v8  ;;  %v7266_v34 = vld [vmem:[%s7937_s7 + $0x320] ss:$16 sps:$4 sm:$0xff]   ;;  %v7274_v4 = vld [vmem:[%s7937_s7 + $0x304] ss:$16 sps:$4 sm:$0xff]   ;;  %v7281_v47 = vld [vmem:[%s7937_s7 + $0xc8] ss:$16 sps:$4 sm:$0xff]  }
 0x152   : > { %3991 = vmatpush1.bf16.msra.mxu0 %v7221_v16  ;;  %v1999_v9 = vadd.f32 %v1998_v33, %v1997_v59  ;;  %v7271_v16 = vld [vmem:[%s7937_s7 + $0x104] ss:$16 sps:$4 sm:$0xff]   ;;  %v7278_v46 = vld [vmem:[%s7937_s7 + $0x2e8] ss:$16 sps:$4 sm:$0xff]   ;;  %v7295_v38 = vld [vmem:[%s7937_s7 + $0x8c] ss:$16 sps:$4 sm:$0xff]  }
 0x153   : > { %3992 = vmatprep.subr.bf16.mxu0 %v7229_v43  ;;  %v3316_v54 = vunpack.c.l.b16 %v2013_v23  ;;  %v3320_v18 = vunpack.c.l.b16 %v2017_v36  ;;  %v2015_v15 = vpack.c.bf16 %v1947_v52, %v1947_v52  ;;  %v7269_v43 = vld [vmem:[%s7937_s7 + $0x100] ss:$16 sps:$4 sm:$0xff]   ;;  %v7284_v20 = vld [vmem:[%s7937_s7 + $0x2c8] ss:$16 sps:$4 sm:$0xff]   ;;  %v7298_v10 = vld [vmem:[%s7937_s7 + $0x28c] ss:$16 sps:$4 sm:$0xff]  }
 0x154   : > { %4030 = vmatpush1.bf16.msra.mxu1 %v7218_v28  ;;  %v2019_v1 = vpack.c.bf16 %v1999_v9, %v1999_v9  ;;  %v7277_v28 = vld [vmem:[%s7937_s7 + $0xec] ss:$16 sps:$4 sm:$0xff]   ;;  %v7290_v0 = vld [vmem:[%s7937_s7 + $0x2a8] ss:$16 sps:$4 sm:$0xff]  }
 0x155   : > { %4031 = vmatprep.subr.bf16.mxu1 %v7226_v51  ;;  %v3324_v57 = vsel %vm2491_vm1, %v3320_v18, %v3316_v54  ;;  %v3318_v51 = vunpack.c.l.b16 %v2015_v15  ;;  %v7307_v6 = vld [vmem:[%s7937_s7 + $0x4c] ss:$16 sps:$4 sm:$0xff]   ;;  %v7296_v8 = vld [vmem:[%s7937_s7 + $0x288] ss:$16 sps:$4 sm:$0xff]  }
 0x156   : > { %3993 = vmatpush2.bf16.msra.mxu0 %v7227_v37  ;;  %v8591_v12 = vpack.c.b16 %v3324_v57, %v3324_v57  ;;  %v3322_v37 = vunpack.c.l.b16 %v2019_v1  ;;  %v8635_v59 = vld [vmem:[#allocation8 + $0x1f0] sm:$0xff]  ;;  %v8660_v18 = vld [vmem:[#allocation8 + $0x280] sm:$0xff] }
 0x157   : > { %3994 = vmatprep.subr.bf16.mxu0 %v7235_v14  ;;  %v7283_v14 = vld [vmem:[%s7937_s7 + $0xcc] ss:$16 sps:$4 sm:$0xff]   ;;  %v7305_v49 = vld [vmem:[%s7937_s7 + $0x48] ss:$16 sps:$4 sm:$0xff]   ;;  %v4182_v9 = vunpack.c.h.bf16 %v8635_v59 }
 0x158   : > { %4032 = vmatpush1.bf16.msra.mxu1 %v7224_v30  ;;  %v7272_v30 = vld [vmem:[%s7937_s7 + $0x300] ss:$16 sps:$4 sm:$0xff]   ;;  %v7304_v62 = vld [vmem:[%s7937_s7 + $0x26c] ss:$16 sps:$4 sm:$0xff]   ;;  %v7302_v27 = vld [vmem:[%s7937_s7 + $0x268] ss:$16 sps:$4 sm:$0xff]  }
 0x159   : > { %4033 = vmatprep.subr.bf16.mxu1 %v7232_v55  ;;  %v3326_v55 = vsel %vm2491_vm1, %v3322_v37, %v3318_v51  ;;  %v7313_v33 = vld [vmem:[%s7937_s7 + $0x2c] ss:$16 sps:$4 sm:$0xff]   ;;  %v7311_v36 = vld [vmem:[%s7937_s7 + $0x28] ss:$16 sps:$4 sm:$0xff]   ;;  %v8670_v51 = vld [vmem:[#allocation8 + $0x1d8] sm:$0xff] }
 0x15a   : > { %3995 = vmatpush2.bf16.msra.mxu0 %v7233_v39  ;;  %v7289_v39 = vld [vmem:[%s7937_s7 + $0xac] ss:$16 sps:$4 sm:$0xff]   ;;  %v8603_v48 = vpack.c.b16 %v3326_v55, %v3326_v55  ;;  %v7308_v57 = vld [vmem:[%s7937_s7 + $0x248] ss:$16 sps:$4 sm:$0xff]   ;;  %v8672_v37 = vld [vmem:[#allocation8 + $0x238] sm:$0xff] }
 0x15b   : > { %3996 = vmatprep.subr.bf16.mxu0 %v7241_v60  ;;  %v7286_v60 = vld [vmem:[%s7937_s7 + $0x2cc] ss:$16 sps:$4 sm:$0xff]  }
 0x15c   : > { %4034 = vmatpush2.bf16.msra.mxu1 %v7230_v40  ;;  %v7287_v40 = vld [vmem:[%s7937_s7 + $0xa8] ss:$16 sps:$4 sm:$0xff]   ;;  %v7310_v23 = vld [vmem:[%s7937_s7 + $0x24c] ss:$16 sps:$4 sm:$0xff]  }
 0x15d   : > { %4035 = vmatprep.subr.bf16.mxu1 %v7238_v35  ;;  %v7293_v35 = vld [vmem:[%s7937_s7 + $0x88] ss:$16 sps:$4 sm:$0xff]  }
 0x15e   : > { %3997 = vmatpush2.bf16.msra.mxu0 %v7239_v53  ;;  %v7301_v53 = vld [vmem:[%s7937_s7 + $0x6c] ss:$16 sps:$4 sm:$0xff]  }
 0x15f   : > { %3998 = vmatprep.subr.bf16.mxu0 %v7247_v17  ;;  %v8617_v17 = vld [vmem:[#allocation8 + $0x1c0] sm:$0xff]  ;;  %v8656_v52 = vld [vmem:[#allocation8 + $0x290] sm:$0x11] }
 0x160   : > { %4036 = vmatpush2.bf16.msra.mxu1 %v7236_v25  ;;  %v8619_v25 = vld [vmem:[#allocation8 + $0x1d0] sm:$0xff]  ;;  %v4170_v58 = vunpack.c.h.bf16 %v8617_v17 }
 0x161   : > { %4037 = vmatprep.subr.bf16.mxu1 %v7244_v45  ;;  %v7299_v45 = vld [vmem:[%s7937_s7 + $0x68] ss:$16 sps:$4 sm:$0xff]  }
 0x162   : > { %3999 = vmatpush2.bf16.msra.mxu0 %v7245_v29  ;;  %v8627_v29 = vld [vmem:[#allocation8 + $0x1e0] sm:$0xff] }
 0x163   : > { %4000 = vmatprep.subr.bf16.mxu0 %v7253_v44  ;;  %v4174_v44 = vunpack.c.h.bf16 %v8619_v25 }
 0x164   : > { %4038 = vmatpush2.bf16.msra.mxu1 %v7242_v50 }
 0x165   : > { %4039 = vmatprep.subr.bf16.mxu1 %v7250_v5  ;;  %v8637_v5 = vld [vmem:[#allocation8 + $0x260] sm:$0xff] }
 0x166   : > { %4001 = vmatpush2.bf16.msra.mxu0 %v7251_v2  ;;  %v4202_v2 = vunpack.c.h.bf16 %v8624_v7 }
 0x167   : > { %4002 = vmatprep.subr.bf16.mxu0 %v7259_v13  ;;  %v4178_v13 = vunpack.c.h.bf16 %v8627_v29 }
 0x168   : > { %4040 = vmatpush2.bf16.msra.mxu1 %v7248_v3  ;;  %v4206_v3 = vunpack.c.h.bf16 %v8629_v21 }
 0x169   : > { %4041 = vmatprep.subr.bf16.mxu1 %v7256_v56  ;;  %v8646_v56 = vld [vmem:[#allocation8 + $0x200] sm:$0xff] }
 0x16a   : > { %4003 = vmatpush2.bf16.msra.mxu0 %v7257_v63  ;;  %v8648_v63 = vld [vmem:[#allocation8 + $0x270] sm:$0xff] }
 0x16b   : > { %4004 = vmatprep.subr.bf16.mxu0 %v7265_v19  ;;  %v8652_v19 = vld [vmem:[#allocation8 + $0x210] sm:$0xff]  ;;  %v4214_v15 = vunpack.c.h.bf16 %v8648_v63 }
 0x16c   : > { %4042 = vmatpush2.bf16.msra.mxu1 %v7254_v32  ;;  %v8654_v32 = vld [vmem:[#allocation8 + $0x220] sm:$0x11] }
 0x16d   : > { %4043 = vmatprep.subr.bf16.mxu1 %v7262_v41  ;;  %v4210_v41 = vunpack.c.h.bf16 %v8637_v5 }
 0x16e   : > { %4005 = vmatpush2.bf16.msra.mxu0 %v7263_v11  ;;  %v4238_v11 = vadd.f32 %v4174_v44, %v4170_v58  ;;  %v7322_v44 = vld [vmem:[%s7937_s7 + $0x20c] ss:$16 sps:$4 sm:$0xff]  }
 0x16f   : > { %4006 = vmatprep.subr.bf16.mxu0 %v7271_v16  ;;  %v7319_v16 = vld [vmem:[%s7937_s7 + $0xc] ss:$16 sps:$4 sm:$0xff]  }
 0x170   : > { %4044 = vmatpush2.bf16.msra.mxu1 %v7260_v24  ;;  %v4186_v24 = vunpack.c.h.bf16 %v8646_v56  ;;  %v4239_v1 = vadd.f32 %v4238_v11, %v4178_v13  ;;  %v7331_v13 = vld [vmem:[%s7937_s7 + $0x1cc] ss:$16 sps:$4 sm:$0xff]  }
 0x171   : > { %4045 = vmatprep.subr.bf16.mxu1 %v7268_v61 }
 0x172   : > { %4007 = vmatpush2.bf16.msra.mxu0 %v7269_v43  ;;  %v8665_v43 = vld [vmem:[#allocation8 + $0x1c8] sm:$0xff]  ;;  %v4240_v55 = vadd.f32 %v4239_v1, %v4182_v9  ;;  %v8707_v9 = vld [vmem:[#allocation8 + $0x278] sm:$0xff] }
 0x173   : > { %4058 = vmatprep.subr.bf16.mxu0 %v7277_v28  ;;  %v4194_v28 = vunpack.c.h.bf16 %v8654_v32 }
 0x174   : > { %4046 = vmatpush2.bf16.msra.mxu1 %v7266_v34  ;;  %v4222_v34 = vunpack.c.h.bf16 %v8656_v52 }
 0x175   : > { %4009 = vmatmul.mubr.bf16.vlgmr.msra.gmra.mxu0 %v8591_v12  ;;  %4047 = vmatprep.subr.bf16.mxu1 %v7274_v4  ;;  %v7316_v4 = vld [vmem:[%s7937_s7 + $0x22c] ss:$16 sps:$4 sm:$0xff]  }
 0x176   : > { %4059 = vmatpush1.bf16.msra.mxu0 %v7275_v31  ;;  %4090 = vmatprep.mubr.bf16.mxu0 %v8533_v42  ;;  %v7292_v42 = vld [vmem:[%s7937_s7 + $0x2ac] ss:$16 sps:$4 sm:$0xff]   ;;  %v7317_v31 = vld [vmem:[%s7937_s7 + $0x8] ss:$16 sps:$4 sm:$0xff]  }
 0x177   : > { %4060 = vmatprep.subr.bf16.mxu0 %v7283_v14  ;;  %v4190_v14 = vunpack.c.h.bf16 %v8652_v19 }
 0x178   : > { %4048 = vmatpush2.bf16.msra.mxu1 %v7272_v30  ;;  %v4218_v30 = vunpack.c.h.bf16 %v8660_v18 }
 0x179   : > { %4099 = vmatprep.subr.bf16.mxu1 %v7280_v26 }
 0x17a   : > { %4061 = vmatpush1.bf16.msra.mxu0 %v7281_v47  ;;  %v8678_v47 = vld [vmem:[#allocation8 + $0x248] sm:$0xff] }
 0x17b   : > { %4062 = vmatprep.subr.bf16.mxu0 %v7289_v39  ;;  %4050 = vmatmul.mubr.bf16.vlgmr.msra.gmra.mxu1 %v8603_v48  ;;  %v8680_v39 = vld [vmem:[#allocation8 + $0x1e8] sm:$0xff]  ;;  %v4204_v58 = vunpack.c.h.bf16 %v8678_v47 }
 0x17c   : > { %4100 = vmatpush1.bf16.msra.mxu1 %v7278_v46  ;;  %4131 = vmatprep.mubr.bf16.mxu1 %v8555_v22  ;;  %v8622_v22 = vld [vmem:[#allocation8 + $0x230] sm:$0xff] }
 0x17d   : > { %4101 = vmatprep.subr.bf16.mxu1 %v7286_v60  ;;  %v4198_v50 = vunpack.c.h.bf16 %v8622_v22  ;;  %v7325_v46 = vld [vmem:[%s7937_s7 + $0x1ec] ss:$16 sps:$4 sm:$0xff]   ;;  %v4241_v60 = vadd.f32 %v4240_v55, %v4186_v24 }
 0x17e   : > { %4063 = vmatpush1.bf16.msra.mxu0 %v7287_v40  ;;  %v7328_v55 = vld [vmem:[%s7937_s7 + $0x3ec] ss:$16 sps:$4 sm:$0xff]  }
 0x17f   : > { %4064 = vmatprep.subr.bf16.mxu0 %v7295_v38  ;;  %v4290_v54 = vadd.f32 %v4202_v2, %v4198_v50  ;;  %v8683_v38 = vld [vmem:[#allocation8 + $0x258] sm:$0xff]  ;;  %v7323_v50 = vld [vmem:[%s7937_s7 + $0x1e8] ss:$16 sps:$4 sm:$0xff]  }
 0x180   : > { %4102 = vmatpush1.bf16.msra.mxu1 %v7284_v20  ;;  %v4172_v20 = vunpack.c.h.bf16 %v8665_v43 }
 0x181   : > { %4103 = vmatprep.subr.bf16.mxu1 %v7292_v42  ;;  %v4291_v61 = vadd.f32 %v4290_v54, %v4206_v3  ;;  %v4176_v42 = vunpack.c.h.bf16 %v8670_v51  ;;  %v8702_v3 = vld [vmem:[#allocation8 + $0x218] sm:$0xff] }
 0x182   : > { %4065 = vmatpush1.bf16.msra.mxu0 %v7293_v35  ;;  %v7314_v35 = vld [vmem:[%s7937_s7 + $0x228] ss:$16 sps:$4 sm:$0xff]   ;;  %v8710_v54 = vld [vmem:[#allocation8 + $0x298] sm:$0x11] }
 0x183   : > { %4066 = vmatprep.subr.bf16.mxu0 %v7301_v53  ;;  %v4292_v26 = vadd.f32 %v4291_v61, %v4210_v41  ;;  %v4243_v53 = vsel %vm1913_vm0, %v4194_v28, 0.0  ;;  %v4264_v11 = vadd.f32 %v4176_v42, %v4172_v20  ;;  %v8713_v61 = vld [vmem:[#allocation8 + $0x288] sm:$0xff]  ;;  %v7337_v42 = vld [vmem:[%s7937_s7 + $0x1ac] ss:$16 sps:$4 sm:$0xff]  }
 0x184   : > { %4104 = vmatpush1.bf16.msra.mxu1 %v7290_v0  ;;  %v4295_v0 = vsel %vm1913_vm0, %v4222_v34, 0.0  ;;  %v7320_v34 = vld [vmem:[%s7937_s7 + $0x208] ss:$16 sps:$4 sm:$0xff]  }
 0x185   : > { %4105 = vmatprep.subr.bf16.mxu1 %v7298_v10  ;;  %v4293_v40 = vadd.f32 %v4292_v26, %v4214_v15  ;;  %v8690_v10 = vld [vmem:[#allocation8 + $0x1f8] sm:$0xff]  ;;  %v7329_v26 = vld [vmem:[%s7937_s7 + $0x1c8] ss:$16 sps:$4 sm:$0xff]  }
 0x186   : > { %4067 = vmatpush1.bf16.msra.mxu0 %v7299_v45  ;;  %v8692_v45 = vld [vmem:[#allocation8 + $0x208] sm:$0xff]  ;;  %v4184_v41 = vunpack.c.h.bf16 %v8690_v10 }
 0x187   : > { %4068 = vmatprep.subr.bf16.mxu0 %v7307_v6  ;;  %v4200_v6 = vunpack.c.h.bf16 %v8672_v37  ;;  %v4294_v2 = vadd.f32 %v4293_v40, %v4218_v30  ;;  %v4224_v40 = vunpack.c.h.bf16 %v8710_v54 }
 0x188   : > { %4106 = vmatpush1.bf16.msra.mxu1 %v7296_v8  ;;  %v4242_v8 = vadd.f32 %v4241_v60, %v4190_v14  ;;  %v4216_v14 = vunpack.c.h.bf16 %v8707_v9 }
 0x189   : > { %4107 = vmatprep.subr.bf16.mxu1 %v7304_v62  ;;  %v8698_v62 = vld [vmem:[#allocation8 + $0x268] sm:$0xff]  ;;  %v4316_v24 = vadd.f32 %v4204_v58, %v4200_v6 }
 0x18a   : > { %4069 = vmatpush1.bf16.msra.mxu0 %v7305_v49  ;;  %v4180_v49 = vunpack.c.h.bf16 %v8680_v39 }
 0x18b   : > { %4070 = vmatprep.subr.bf16.mxu0 %v7313_v33  ;;  %v4244_v33 = vadd.f32 %v4243_v53, %v4242_v8 }
 0x18c   : > { %4108 = vmatpush1.bf16.msra.mxu1 %v7302_v27  ;;  %v4208_v27 = vunpack.c.h.bf16 %v8683_v38  ;;  %v4265_v28 = vadd.f32 %v4264_v11, %v4180_v49  ;;  %v7335_v49 = vld [vmem:[%s7937_s7 + $0x1a8] ss:$16 sps:$4 sm:$0xff]  }
 0x18d   : > { %4109 = vmatprep.subr.bf16.mxu1 %v7310_v23  ;;  %v4296_v23 = vadd.f32 %v4295_v0, %v4294_v2  ;;  %v4245_v15 = vrot.slane %v4244_v33, 4  ;;  %v7334_v2 = vld [vmem:[%s7937_s7 + $0x3cc] ss:$16 sps:$4 sm:$0xff]  }
 0x18e   : > { %4071 = vmatpush1.bf16.msra.mxu0 %v7311_v36  ;;  %v8705_v36 = vld [vmem:[#allocation8 + $0x228] sm:$0x11]  ;;  %v4317_v30 = vadd.f32 %v4316_v24, %v4208_v27  ;;  %v4266_v20 = vadd.f32 %v4265_v28, %v4184_v41  ;;  %v4321_v27 = vsel %vm1913_vm0, %v4224_v40, 0.0  ;;  %v7332_v24 = vld [vmem:[%s7937_s7 + $0x3c8] ss:$16 sps:$4 sm:$0xff]  }
 0x18f   : > { %4072 = vmatprep.subr.bf16.mxu0 %v7319_v16  ;;  %v4212_v16 = vunpack.c.h.bf16 %v8698_v62  ;;  %v4297_v1 = vrot.slane %v4296_v23, 4 }
 0x190   : > { %4110 = vmatpush1.bf16.msra.mxu1 %v7308_v57  ;;  %v4188_v57 = vunpack.c.h.bf16 %v8692_v45 }
 0x191   : > { %4111 = vmatprep.subr.bf16.mxu1 %v7316_v4  ;;  %v4192_v4 = vunpack.c.h.bf16 %v8702_v3  ;;  %v4298_v60 = vadd.f32 %v4297_v1, %v4296_v23  ;;  %v4318_v53 = vadd.f32 %v4317_v30, %v4212_v16  ;;  %v7340_v1 = vld [vmem:[%s7937_s7 + $0x3ac] ss:$16 sps:$4 sm:$0xff]  }
 0x192   : > { %4073 = vmatpush1.bf16.msra.mxu0 %v7317_v31  ;;  %v4196_v31 = vunpack.c.h.bf16 %v8705_v36  ;;  %v4267_v58 = vadd.f32 %v4266_v20, %v4188_v57  ;;  %v7341_v57 = vld [vmem:[%s7937_s7 + $0x188] ss:$16 sps:$4 sm:$0xff]   ;;  %v7355_v20 = vld [vmem:[%s7937_s7 + $0x14c] ss:$16 sps:$4 sm:$0xff]  }
 0x193   : > { %4074 = vmatprep.subr.bf16.mxu0 %v7325_v46  ;;  %v4246_v46 = vadd.f32 %v4245_v15, %v4244_v33  ;;  %v4299_v6 = vrot.slane %v4298_v60, 2  ;;  %v4319_v8 = vadd.f32 %v4318_v53, %v4216_v14  ;;  %v7343_v33 = vld [vmem:[%s7937_s7 + $0x18c] ss:$16 sps:$4 sm:$0xff]  }
 0x194   : > { %4112 = vmatpush1.bf16.msra.mxu1 %v7314_v35  ;;  %v4220_v35 = vunpack.c.h.bf16 %v8713_v61 }
 0x195   : > { %4113 = vmatprep.subr.bf16.mxu1 %v7322_v44  ;;  %v4247_v0 = vrot.slane %v4246_v46, 2  ;;  %v7326_v44 = vld [vmem:[%s7937_s7 + $0x3e8] ss:$16 sps:$4 sm:$0xff]   ;;  %v4300_v11 = vadd.f32 %v4299_v6, %v4298_v60 }
 0x196   : > { %4075 = vmatpush2.bf16.msra.mxu0 %v7323_v50  ;;  %v4269_v50 = vsel %vm1913_vm0, %v4196_v31, 0.0  ;;  %v4320_v23 = vadd.f32 %v4319_v8, %v4220_v35  ;;  %v7347_v60 = vld [vmem:[%s7937_s7 + $0x168] ss:$16 sps:$4 sm:$0xff]  }
 0x197   : > { %4076 = vmatprep.subr.bf16.mxu0 %v7331_v13  ;;  %v4268_v13 = vadd.f32 %v4267_v58, %v4192_v4  ;;  %v4248_v41 = vadd.f32 %v4247_v0, %v4246_v46  ;;  %v4301_v14 = vrot.slane %v4300_v11, 1  ;;  %v7346_v46 = vld [vmem:[%s7937_s7 + $0x38c] ss:$16 sps:$4 sm:$0xff]   ;;  %v7344_v6 = vld [vmem:[%s7937_s7 + $0x388] ss:$16 sps:$4 sm:$0xff]  }
 0x198   : > { %4114 = vmatpush1.bf16.msra.mxu1 %v7320_v34  ;;  %v4322_v15 = vadd.f32 %v4321_v27, %v4320_v23  ;;  %v7349_v34 = vld [vmem:[%s7937_s7 + $0x16c] ss:$16 sps:$4 sm:$0xff]  }
 0x199   : > { %4115 = vmatprep.subr.bf16.mxu1 %v7328_v55  ;;  %v4270_v16 = vadd.f32 %v4269_v50, %v4268_v13  ;;  %v4249_v31 = vrot.slane %v4248_v41, 1  ;;  %v7338_v55 = vld [vmem:[%s7937_s7 + $0x3a8] ss:$16 sps:$4 sm:$0xff]   ;;  %v4302_v53 = vadd.f32 %v4301_v14, %v4300_v11  ;;  %v7358_v23 = vld [vmem:[%s7937_s7 + $0x34c] ss:$16 sps:$4 sm:$0xff]  }
 0x19a   : > { %4077 = vmatpush2.bf16.msra.mxu0 %v7329_v26  ;;  %v4323_v4 = vrot.slane %v4322_v15, 4  ;;  %v7353_v50 = vld [vmem:[%s7937_s7 + $0x148] ss:$16 sps:$4 sm:$0xff]  }
 0x19b   : > { %4078 = vmatprep.subr.bf16.mxu0 %v7337_v42  ;;  %v4271_v28 = vrot.slane %v4270_v16, 4  ;;  %v4250_v35 = vadd.f32 %v4249_v31, %v4248_v41  ;;  %v4334_v27 = vpack.c.bf16 %v4302_v53, %v4302_v53  ;;  %v7359_v41 = vld [vmem:[%s7937_s7 + $0x128] ss:$16 sps:$4 sm:$0xff]  }
 0x19c   : > { %4116 = vmatpush2.bf16.msra.mxu1 %v7326_v44  ;;  %v4324_v26 = vadd.f32 %v4323_v4, %v4322_v15  ;;  %v7352_v44 = vld [vmem:[%s7937_s7 + $0x36c] ss:$16 sps:$4 sm:$0xff]   ;;  %v7373_v4 = vld [vmem:[%s7937_s7 + $0x8e4] ss:$16 sps:$4 sm:$0xff]  }
 0x19d   : > { %4117 = vmatprep.subr.bf16.mxu1 %v7334_v2  ;;  %v4272_v30 = vadd.f32 %v4271_v28, %v4270_v16  ;;  %v7361_v2 = vld [vmem:[%s7937_s7 + $0x12c] ss:$16 sps:$4 sm:$0xff]   ;;  %v4330_v13 = vpack.c.bf16 %v4250_v35, %v4250_v35 }
 0x19e   : > { %4079 = vmatpush2.bf16.msra.mxu0 %v7335_v49  ;;  %v4325_v42 = vrot.slane %v4324_v26, 2  ;;  %v7364_v28 = vld [vmem:[%s7937_s7 + $0x32c] ss:$16 sps:$4 sm:$0xff]  }
 0x19f   : > { %4080 = vmatprep.subr.bf16.mxu0 %v7343_v33  ;;  %v4273_v40 = vrot.slane %v4272_v30, 2  ;;  %v7350_v33 = vld [vmem:[%s7937_s7 + $0x368] ss:$16 sps:$4 sm:$0xff]   ;;  %v4475_v15 = vunpack.c.l.b16 %v4330_v13  ;;  %v7385_v13 = vld [vmem:[%s7937_s7 + $0x8a4] ss:$16 sps:$4 sm:$0xff]  }
 0x1a0   : > { %4118 = vmatpush2.bf16.msra.mxu1 %v7332_v24  ;;  %v4326_v58 = vadd.f32 %v4325_v42, %v4324_v26  ;;  %v7367_v24 = vld [vmem:[%s7937_s7 + $0x10c] ss:$16 sps:$4 sm:$0xff]   ;;  %v4201_v42 = vunpack.c.l.bf16 %v8624_v7  ;;  %v4205_v7 = vunpack.c.l.bf16 %v8629_v21  ;;  %v4199_v21 = vunpack.c.l.bf16 %v8672_v37 }
 0x1a1   : > { %4119 = vmatprep.subr.bf16.mxu1 %v7340_v1  ;;  %v4274_v0 = vadd.f32 %v4273_v40, %v4272_v30  ;;  %v4479_v1 = vunpack.c.l.b16 %v4334_v27  ;;  %v7370_v26 = vld [vmem:[%s7937_s7 + $0x30c] ss:$16 sps:$4 sm:$0xff]   ;;  %v7371_v40 = vld [vmem:[%s7937_s7 + $0x8e0] ss:$16 sps:$4 sm:$0xff]  }
 0x1a2   : > { %4081 = vmatpush2.bf16.msra.mxu0 %v7341_v57  ;;  %v4327_v49 = vrot.slane %v4326_v58, 1  ;;  %v7356_v57 = vld [vmem:[%s7937_s7 + $0x348] ss:$16 sps:$4 sm:$0xff]  }
 0x1a3   : > { %4082 = vmatprep.subr.bf16.mxu0 %v7349_v34  ;;  %v4275_v8 = vrot.slane %v4274_v0, 1  ;;  %v7365_v34 = vld [vmem:[%s7937_s7 + $0x108] ss:$16 sps:$4 sm:$0xff]   ;;  %v4483_v30 = vsel %vm2491_vm1, %v4479_v1, %v4475_v15 }
 0x1a4   : > { %4120 = vmatpush2.bf16.msra.mxu1 %v7338_v55  ;;  %v4328_v16 = vadd.f32 %v4327_v49, %v4326_v58  ;;  %v7362_v55 = vld [vmem:[%s7937_s7 + $0x328] ss:$16 sps:$4 sm:$0xff]  }
 0x1a5   : > { %4121 = vmatprep.subr.bf16.mxu1 %v7346_v46  ;;  %v4276_v11 = vadd.f32 %v4275_v8, %v4274_v0  ;;  %v4169_v46 = vunpack.c.l.bf16 %v8617_v17  ;;  %v7379_v0 = vld [vmem:[%s7937_s7 + $0x8c4] ss:$16 sps:$4 sm:$0xff]   ;;  %v7368_v17 = vld [vmem:[%s7937_s7 + $0x308] ss:$16 sps:$4 sm:$0xff]  }
 0x1a6   : > { %4083 = vmatpush2.bf16.msra.mxu0 %v7347_v60  ;;  %v4336_v14 = vpack.c.bf16 %v4328_v16, %v4328_v16  ;;  %v4173_v60 = vunpack.c.l.bf16 %v8619_v25  ;;  %v4177_v25 = vunpack.c.l.bf16 %v8627_v29  ;;  %v7374_v29 = vld [vmem:[%s7937_s7 + $0xae0] ss:$16 sps:$4 sm:$0xff]  }
 0x1a7   : > { %4084 = vmatprep.subr.bf16.mxu0 %v7355_v20  ;;  %v4332_v31 = vpack.c.bf16 %v4276_v11, %v4276_v11  ;;  %v4197_v20 = vunpack.c.l.bf16 %v8622_v22  ;;  %v7377_v22 = vld [vmem:[%s7937_s7 + $0x8c0] ss:$16 sps:$4 sm:$0xff]   ;;  %v7382_v11 = vld [vmem:[%s7937_s7 + $0xac4] ss:$16 sps:$4 sm:$0xff]  }
 0x1a8   : > { %4122 = vmatpush2.bf16.msra.mxu1 %v7344_v6  ;;  %v4481_v53 = vunpack.c.l.b16 %v4336_v14  ;;  %v8760_v6 = vpack.c.b16 %v4483_v30, %v4483_v30  ;;  %v4225_v8 = vadd.f32 %v4173_v60, %v4169_v46  ;;  %v7383_v16 = vld [vmem:[%s7937_s7 + $0x8a0] ss:$16 sps:$4 sm:$0xff]   ;;  %v7388_v14 = vld [vmem:[%s7937_s7 + $0xaa4] ss:$16 sps:$4 sm:$0xff]  }
 0x1a9   : > { %4123 = vmatprep.subr.bf16.mxu1 %v7352_v44  ;;  %v4477_v35 = vunpack.c.l.b16 %v4332_v31  ;;  %v7376_v44 = vld [vmem:[%s7937_s7 + $0xae4] ss:$16 sps:$4 sm:$0xff]   ;;  %v7389_v30 = vld [vmem:[%s7937_s7 + $0x880] ss:$16 sps:$4 sm:$0xff]  }
 0x1aa   : > { %4085 = vmatpush2.bf16.msra.mxu0 %v7353_v50  ;;  %v4226_v15 = vadd.f32 %v4225_v8, %v4177_v25  ;;  %v4215_v8 = vunpack.c.l.bf16 %v8707_v9  ;;  %v4191_v9 = vunpack.c.l.bf16 %v8702_v3  ;;  %v7404_v3 = vld [vmem:[%s7937_s7 + $0xa40] ss:$16 sps:$4 sm:$0xff]  }
 0x1ab   : > { %4086 = vmatprep.subr.bf16.mxu0 %v7361_v2  ;;  %v4485_v50 = vsel %vm2491_vm1, %v4481_v53, %v4477_v35  ;;  %v4277_v2 = vadd.f32 %v4201_v42, %v4197_v20  ;;  %v4183_v20 = vunpack.c.l.bf16 %v8690_v10  ;;  %v4211_v42 = vunpack.c.l.bf16 %v8698_v62  ;;  %v7403_v10 = vld [vmem:[%s7937_s7 + $0x844] ss:$16 sps:$4 sm:$0xff]  }
 0x1ac   : > { %4124 = vmatpush2.bf16.msra.mxu1 %v7350_v33  ;;  %v4175_v33 = vunpack.c.l.bf16 %v8670_v51  ;;  %v7391_v51 = vld [vmem:[%s7937_s7 + $0x884] ss:$16 sps:$4 sm:$0xff]   ;;  %v4193_v62 = vunpack.c.l.bf16 %v8654_v32 }
 0x1ad   : > { %4125 = vmatprep.subr.bf16.mxu1 %v7358_v23  ;;  %v4203_v23 = vunpack.c.l.bf16 %v8678_v47  ;;  %v4278_v1 = vadd.f32 %v4277_v2, %v4205_v7  ;;  %v4179_v47 = vunpack.c.l.bf16 %v8680_v39  ;;  %v4213_v39 = vunpack.c.l.bf16 %v8648_v63  ;;  %v7394_v63 = vld [vmem:[%s7937_s7 + $0xa84] ss:$16 sps:$4 sm:$0xff]   ;;  %v7392_v7 = vld [vmem:[%s7937_s7 + $0xa80] ss:$16 sps:$4 sm:$0xff]  }
 0x1ae   : > { %4087 = vmatpush2.bf16.msra.mxu0 %v7359_v41  ;;  %v8776_v41 = vpack.c.b16 %v4485_v50, %v4485_v50  ;;  %v4187_v50 = vunpack.c.l.bf16 %v8692_v45  ;;  %v7409_v32 = vld [vmem:[%s7937_s7 + $0x824] ss:$16 sps:$4 sm:$0xff]   ;;  %v7398_v45 = vld [vmem:[%s7937_s7 + $0xa60] ss:$16 sps:$4 sm:$0xff]  }
 0x1af   : > { %4088 = vmatprep.subr.bf16.mxu0 %v7367_v24  ;;  %v4181_v24 = vunpack.c.l.bf16 %v8635_v59  ;;  %v4207_v59 = vunpack.c.l.bf16 %v8683_v38  ;;  %v7397_v38 = vld [vmem:[%s7937_s7 + $0x864] ss:$16 sps:$4 sm:$0xff]  }
 0x1b0   : > { %4126 = vmatpush2.bf16.msra.mxu1 %v7356_v57 }
 0x1b1   : > { %4127 = vmatprep.subr.bf16.mxu1 %v7364_v28 }
 0x1b2   : > { %4089 = vmatpush2.bf16.msra.mxu0 %v7365_v34  ;;  %v7380_v34 = vld [vmem:[%s7937_s7 + $0xac0] ss:$16 sps:$4 sm:$0xff]  }
 0x1b3   : > { %5134 = vmatprep.subr.bf16.mxu0 %v7373_v4  ;;  %v4303_v4 = vadd.f32 %v4203_v23, %v4199_v21  ;;  %v7406_v23 = vld [vmem:[%s7937_s7 + $0xa44] ss:$16 sps:$4 sm:$0xff]  }
 0x1b4   : > { %4128 = vmatpush2.bf16.msra.mxu1 %v7362_v55  ;;  %v4227_v55 = vadd.f32 %v4226_v15, %v4181_v24  ;;  %v4223_v24 = vunpack.c.l.bf16 %v8710_v54 }
 0x1b5   : > { %v3178_v58 = vpop.f32.mrf.mxu0  ;;  %4091 = vmatmul.mubr.bf16.vlgmr.msra.gmra.mxu0 %v8591_v12  ;;  %4129 = vmatprep.subr.bf16.mxu1 %v7370_v26  ;;  %v4171_v12 = vunpack.c.l.bf16 %v8665_v43  ;;  %v4209_v43 = vunpack.c.l.bf16 %v8637_v5 }
 0x1b6   : > { %5135 = vmatpush1.bf16.msra.mxu0 %v7371_v40  ;;  %5166 = vmatprep.mubr.bf16.mxu0 %v8760_v6  ;;  %v7386_v40 = vld [vmem:[%s7937_s7 + $0xaa0] ss:$16 sps:$4 sm:$0xff]  }
 0x1b7   : > { %v3180_v49 = vpop.f32.mrf.mxu0  ;;  %5136 = vmatprep.subr.bf16.mxu0 %v7379_v0  ;;  %v4251_v5 = vadd.f32 %v4175_v33, %v4171_v12  ;;  %v4279_v26 = vadd.f32 %v4278_v1, %v4209_v43  ;;  %v7395_v0 = vld [vmem:[%s7937_s7 + $0x860] ss:$16 sps:$4 sm:$0xff]   ;;  %v7415_v1 = vld [vmem:[%s7937_s7 + $0x804] ss:$16 sps:$4 sm:$0xff]  }
 0x1b8   : > { %4130 = vmatpush2.bf16.msra.mxu1 %v7368_v17  ;;  %v4189_v17 = vunpack.c.l.bf16 %v8652_v19 }
 0x1b9   : > { %v3182_v27 = vpop.f32.mrf.mxu0  ;;  %5175 = vmatprep.subr.bf16.mxu1 %v7376_v44  ;;  %v4252_v35 = vadd.f32 %v4251_v5, %v4179_v47  ;;  %v4280_v44 = vadd.f32 %v4279_v26, %v4213_v39  ;;  %v7410_v5 = vld [vmem:[%s7937_s7 + $0xa20] ss:$16 sps:$4 sm:$0xff]  }
 0x1ba   : > { %5137 = vmatpush1.bf16.msra.mxu0 %v7377_v22  ;;  %v4221_v22 = vunpack.c.l.bf16 %v8656_v52  ;;  %v4230_v52 = vsel %vm1913_vm0, %v4193_v62, 0.0  ;;  %v4219_v27 = vunpack.c.l.bf16 %v8713_v61  ;;  %v7412_v61 = vld [vmem:[%s7937_s7 + $0xa24] ss:$16 sps:$4 sm:$0xff]   ;;  %v7416_v26 = vld [vmem:[%s7937_s7 + $0xa00] ss:$16 sps:$4 sm:$0xff]  }
 0x1bb   : > { %v3183_v57 = vpop.f32.mrf.mxu0  ;;  %5138 = vmatprep.subr.bf16.mxu0 %v7385_v13  ;;  %v3219_v37 = vpop.f32.mrf.mxu1  ;;  %4132 = vmatmul.mubr.bf16.vlgmr.msra.gmra.mxu1 %v8603_v48  ;;  %v4185_v48 = vunpack.c.l.bf16 %v8646_v56  ;;  %v4304_v56 = vadd.f32 %v4303_v4, %v4207_v59  ;;  %v4253_v19 = vadd.f32 %v4252_v35, %v4183_v20  ;;  %v7421_v59 = vld [vmem:[%s7937_s7 + $0x9e4] ss:$16 sps:$4 sm:$0xff]   ;;  %v7425_v20 = vld [vmem:[%s7937_s7 + $0x9c0] ss:$16 sps:$4 sm:$0xff]  }
 0x1bc   : > { %v8785_v28 = vadd.f32 %v3219_v37, %v3178_v58  ;;  %5176 = vmatpush1.bf16.msra.mxu1 %v7374_v29  ;;  %5207 = vmatprep.mubr.bf16.mxu1 %v8776_v41  ;;  %v4217_v58 = vunpack.c.l.bf16 %v8660_v18  ;;  %v7400_v18 = vld [vmem:[%s7937_s7 + $0xa64] ss:$16 sps:$4 sm:$0xff]   ;;  %v4282_v29 = vsel %vm1913_vm0, %v4221_v22, 0.0  ;;  %v7413_v37 = vld [vmem:[%s7937_s7 + $0x800] ss:$16 sps:$4 sm:$0xff]  }
 0x1bd   : > { %v3221_v31 = vpop.f32.mrf.mxu1  ;;  %5177 = vmatprep.subr.bf16.mxu1 %v7382_v11  ;;  %v4228_v25 = vadd.f32 %v4227_v55, %v4185_v48  ;;  %v4305_v2 = vadd.f32 %v4304_v56, %v4211_v42  ;;  %v4254_v33 = vadd.f32 %v4253_v19, %v4187_v50  ;;  %v7407_v11 = vld [vmem:[%s7937_s7 + $0x820] ss:$16 sps:$4 sm:$0xff]   ;;  %v7427_v55 = vld [vmem:[%s7937_s7 + $0x9c4] ss:$16 sps:$4 sm:$0xff]  }
 0x1be   : > { %5139 = vmatpush1.bf16.msra.mxu0 %v7383_v16  ;;  %v8794_v46 = vadd.f32 %v3221_v31, %v3180_v49  ;;  %v7401_v49 = vld [vmem:[%s7937_s7 + $0x840] ss:$16 sps:$4 sm:$0xff]   ;;  %v4281_v12 = vadd.f32 %v4280_v44, %v4217_v58  ;;  %v4195_v16 = vunpack.c.l.bf16 %v8705_v36  ;;  %v7433_v56 = vld [vmem:[%s7937_s7 + $0x9a4] ss:$16 sps:$4 sm:$0xff]  }
 0x1bf   : > { %5140 = vmatprep.subr.bf16.mxu0 %v7391_v51  ;;  %v3223_v60 = vpop.f32.mrf.mxu1  ;;  %v4229_v13 = vadd.f32 %v4228_v25, %v4189_v17  ;;  %v4306_v21 = vadd.f32 %v4305_v2, %v4215_v8  ;;  %v4255_v57 = vadd.f32 %v4254_v33, %v4191_v9  ;;  %v7430_v17 = vld [vmem:[%s7937_s7 + $0xbc4] ss:$16 sps:$4 sm:$0xff]   ;;  %v7431_v58 = vld [vmem:[%s7937_s7 + $0x9a0] ss:$16 sps:$4 sm:$0xff]  }
 0x1c0   : > { %5178 = vmatpush1.bf16.msra.mxu1 %v7380_v34  ;;  %v4283_v15 = vadd.f32 %v4282_v29, %v4281_v12  ;;  %v4256_v54 = vsel %vm1913_vm0, %v4195_v16, 0.0  ;;  %v4308_v34 = vsel %vm1913_vm0, %v4223_v24, 0.0  ;;  %v7428_v62 = vld [vmem:[%s7937_s7 + $0xbc0] ss:$16 sps:$4 sm:$0xff]   ;;  %v7436_v50 = vld [vmem:[%s7937_s7 + $0xba4] ss:$16 sps:$4 sm:$0xff]  }
 0x1c1   : > { %v3224_v53 = vpop.f32.mrf.mxu1  ;;  %5179 = vmatprep.subr.bf16.mxu1 %v7388_v14  ;;  %v4231_v43 = vadd.f32 %v4230_v52, %v4229_v13  ;;  %v4307_v51 = vadd.f32 %v4306_v21, %v4219_v27  ;;  %v4257_v4 = vadd.f32 %v4256_v54, %v4255_v57  ;;  %v7418_v14 = vld [vmem:[%s7937_s7 + $0xa04] ss:$16 sps:$4 sm:$0xff]   ;;  %v7437_v8 = vld [vmem:[%s7937_s7 + $0x980] ss:$16 sps:$4 sm:$0xff]  }
 0x1c2   : > { %5141 = vmatpush1.bf16.msra.mxu0 %v7389_v30  ;;  %v4284_v36 = vrot.slane %v4283_v15, 4  ;;  %v7419_v30 = vld [vmem:[%s7937_s7 + $0x9e0] ss:$16 sps:$4 sm:$0xff]   ;;  %v7451_v9 = vld [vmem:[%s7937_s7 + $0x944] ss:$16 sps:$4 sm:$0xff]  }
 0x1c3   : > { %5142 = vmatprep.subr.bf16.mxu0 %v7397_v38  ;;  %v4232_v47 = vrot.slane %v4231_v43, 4  ;;  %v4309_v31 = vadd.f32 %v4308_v34, %v4307_v51  ;;  %v4258_v38 = vrot.slane %v4257_v4, 4  ;;  %v7422_v53 = vld [vmem:[%s7937_s7 + $0xbe0] ss:$16 sps:$4 sm:$0xff]  }
 0x1c4   : > { %5180 = vmatpush1.bf16.msra.mxu1 %v7386_v40  ;;  %v4285_v39 = vadd.f32 %v4284_v36, %v4283_v15  ;;  %v7424_v40 = vld [vmem:[%s7937_s7 + $0xbe4] ss:$16 sps:$4 sm:$0xff]   ;;  %v7443_v52 = vld [vmem:[%s7937_s7 + $0x960] ss:$16 sps:$4 sm:$0xff]  }
 0x1c5   : > { %5181 = vmatprep.subr.bf16.mxu1 %v7394_v63  ;;  %v4233_v48 = vadd.f32 %v4232_v47, %v4231_v43  ;;  %v4310_v60 = vrot.slane %v4309_v31, 4  ;;  %v4259_v63 = vadd.f32 %v4258_v38, %v4257_v4  ;;  %v7440_v27 = vld [vmem:[%s7937_s7 + $0xb80] ss:$16 sps:$4 sm:$0xff]   ;;  %v7457_v43 = vld [vmem:[%s7937_s7 + $0x924] ss:$16 sps:$4 sm:$0xff]  }
 0x1c6   : > { %5143 = vmatpush1.bf16.msra.mxu0 %v7395_v0  ;;  %v4286_v35 = vrot.slane %v4285_v39, 2  ;;  %v7446_v15 = vld [vmem:[%s7937_s7 + $0xb60] ss:$16 sps:$4 sm:$0xff]   ;;  %v7463_v47 = vld [vmem:[%s7937_s7 + $0x904] ss:$16 sps:$4 sm:$0xff]  }
 0x1c7   : > { %5144 = vmatprep.subr.bf16.mxu0 %v7403_v10  ;;  %v4234_v42 = vrot.slane %v4233_v48, 2  ;;  %v4311_v0 = vadd.f32 %v4310_v60, %v4309_v31  ;;  %v7439_v10 = vld [vmem:[%s7937_s7 + $0x984] ss:$16 sps:$4 sm:$0xff]   ;;  %v4260_v22 = vrot.slane %v4259_v63, 2  ;;  %v7455_v57 = vld [vmem:[%s7937_s7 + $0x920] ss:$16 sps:$4 sm:$0xff]  }
 0x1c8   : > { %5182 = vmatpush1.bf16.msra.mxu1 %v7392_v7  ;;  %v4287_v44 = vadd.f32 %v4286_v35, %v4285_v39  ;;  %v7452_v36 = vld [vmem:[%s7937_s7 + $0xb40] ss:$16 sps:$4 sm:$0xff]   ;;  %v7469_v31 = vld [vmem:[%s7937_s7 + $0x8ec] ss:$16 sps:$4 sm:$0xff]   ;;  %v7473_v35 = vld [vmem:[%s7937_s7 + $0x8c8] ss:$16 sps:$4 sm:$0xff]  }
 0x1c9   : > { %5183 = vmatprep.subr.bf16.mxu1 %v7400_v18  ;;  %v4235_v25 = vadd.f32 %v4234_v42, %v4233_v48  ;;  %v4312_v7 = vrot.slane %v4311_v0, 2  ;;  %v7445_v18 = vld [vmem:[%s7937_s7 + $0x964] ss:$16 sps:$4 sm:$0xff]   ;;  %v4261_v13 = vadd.f32 %v4260_v22, %v4259_v63  ;;  %v7475_v38 = vld [vmem:[%s7937_s7 + $0x8cc] ss:$16 sps:$4 sm:$0xff]  }
 0x1ca   : > { %5145 = vmatpush1.bf16.msra.mxu0 %v7401_v49  ;;  %v4288_v2 = vrot.slane %v4287_v44, 1  ;;  %v7434_v49 = vld [vmem:[%s7937_s7 + $0xba0] ss:$16 sps:$4 sm:$0xff]   ;;  %v7472_v42 = vld [vmem:[%s7937_s7 + $0xaec] ss:$16 sps:$4 sm:$0xff]  }
 0x1cb   : > { %5146 = vmatprep.subr.bf16.mxu0 %v7409_v32  ;;  %v4236_v19 = vrot.slane %v4235_v25, 1  ;;  %v4313_v12 = vadd.f32 %v4312_v7, %v4311_v0  ;;  %v7442_v32 = vld [vmem:[%s7937_s7 + $0xb84] ss:$16 sps:$4 sm:$0xff]   ;;  %v4262_v33 = vrot.slane %v4261_v13, 1  ;;  %v7464_v60 = vld [vmem:[%s7937_s7 + $0xb00] ss:$16 sps:$4 sm:$0xff]  }
 0x1cc   : > { %5184 = vmatpush1.bf16.msra.mxu1 %v7398_v45  ;;  %v4289_v45 = vadd.f32 %v4288_v2, %v4287_v44  ;;  %v7470_v0 = vld [vmem:[%s7937_s7 + $0xae8] ss:$16 sps:$4 sm:$0xff]   ;;  %v7493_v2 = vld [vmem:[%s7937_s7 + $0x86c] ss:$16 sps:$4 sm:$0xff]  }
 0x1cd   : > { %5185 = vmatprep.subr.bf16.mxu1 %v7406_v23  ;;  %v4237_v29 = vadd.f32 %v4236_v19, %v4235_v25  ;;  %v4314_v21 = vrot.slane %v4313_v12, 1  ;;  %v7448_v23 = vld [vmem:[%s7937_s7 + $0xb64] ss:$16 sps:$4 sm:$0xff]   ;;  %v7479_v25 = vld [vmem:[%s7937_s7 + $0x8a8] ss:$16 sps:$4 sm:$0xff]  }
 0x1ce   : > { %5147 = vmatpush1.bf16.msra.mxu0 %v7407_v11  ;;  %v7449_v11 = vld [vmem:[%s7937_s7 + $0x940] ss:$16 sps:$4 sm:$0xff]   ;;  %v4333_v24 = vpack.c.bf16 %v4289_v45, %v4289_v45  ;;  %v7476_v22 = vld [vmem:[%s7937_s7 + $0xac8] ss:$16 sps:$4 sm:$0xff]  }
 0x1cf   : > { %5148 = vmatprep.subr.bf16.mxu0 %v7415_v1  ;;  %v4329_v16 = vpack.c.bf16 %v4237_v29, %v4237_v29  ;;  %v4263_v1 = vadd.f32 %v4262_v33, %v4261_v13  ;;  %v7496_v29 = vld [vmem:[%s7937_s7 + $0xa6c] ss:$16 sps:$4 sm:$0xff]   ;;  %v7497_v45 = vld [vmem:[%s7937_s7 + $0x848] ss:$16 sps:$4 sm:$0xff]  }
 0x1d0   : > { %5186 = vmatpush1.bf16.msra.mxu1 %v7404_v3  ;;  %v4315_v3 = vadd.f32 %v4314_v21, %v4313_v12  ;;  %v7491_v12 = vld [vmem:[%s7937_s7 + $0x868] ss:$16 sps:$4 sm:$0xff]   ;;  %v7502_v33 = vld [vmem:[%s7937_s7 + $0xa4c] ss:$16 sps:$4 sm:$0xff]  }
 0x1d1   : > { %5187 = vmatprep.subr.bf16.mxu1 %v7412_v61  ;;  %v7454_v61 = vld [vmem:[%s7937_s7 + $0xb44] ss:$16 sps:$4 sm:$0xff]   ;;  %v4474_v51 = vunpack.c.l.b16 %v4329_v16  ;;  %v4331_v54 = vpack.c.bf16 %v4263_v1, %v4263_v1  ;;  %v7503_v21 = vld [vmem:[%s7937_s7 + $0x828] ss:$16 sps:$4 sm:$0xff]   ;;  %v7508_v16 = vld [vmem:[%s7937_s7 + $0xa2c] ss:$16 sps:$4 sm:$0xff]  }
 0x1d2   : > { %5149 = vmatpush1.bf16.msra.mxu0 %v7413_v37  ;;  %v4478_v37 = vunpack.c.l.b16 %v4333_v24  ;;  %v4335_v34 = vpack.c.bf16 %v4315_v3, %v4315_v3  ;;  %v7509_v24 = vld [vmem:[%s7937_s7 + $0x808] ss:$16 sps:$4 sm:$0xff]   ;;  %v7514_v1 = vld [vmem:[%s7937_s7 + $0xa0c] ss:$16 sps:$4 sm:$0xff]  }
 0x1d3   : > { %5150 = vmatprep.subr.bf16.mxu0 %v7421_v59  ;;  %v7460_v59 = vld [vmem:[%s7937_s7 + $0xb24] ss:$16 sps:$4 sm:$0xff]   ;;  %v4476_v48 = vunpack.c.l.b16 %v4331_v54  ;;  %v7515_v3 = vld [vmem:[%s7937_s7 + $0x9e8] ss:$16 sps:$4 sm:$0xff]   ;;  %v7526_v54 = vld [vmem:[%s7937_s7 + $0xbcc] ss:$16 sps:$4 sm:$0xff]  }
 0x1d4   : > { %5188 = vmatpush1.bf16.msra.mxu1 %v7410_v5  ;;  %v7461_v5 = vld [vmem:[%s7937_s7 + $0x900] ss:$16 sps:$4 sm:$0xff]   ;;  %v4482_v4 = vsel %vm2491_vm1, %v4478_v37, %v4474_v51  ;;  %v4480_v39 = vunpack.c.l.b16 %v4335_v34  ;;  %v7520_v51 = vld [vmem:[%s7937_s7 + $0xbec] ss:$16 sps:$4 sm:$0xff]   ;;  %v7521_v37 = vld [vmem:[%s7937_s7 + $0x9c8] ss:$16 sps:$4 sm:$0xff]  }
 0x1d5   : > { %5189 = vmatprep.subr.bf16.mxu1 %v7418_v14  ;;  %v7458_v14 = vld [vmem:[%s7937_s7 + $0xb20] ss:$16 sps:$4 sm:$0xff]   ;;  %v7527_v34 = vld [vmem:[%s7937_s7 + $0x9a8] ss:$16 sps:$4 sm:$0xff]  }
 0x1d6   : > { %5151 = vmatpush2.bf16.msra.mxu0 %v7419_v30  ;;  %v8863_v30 = vpack.c.b16 %v4482_v4, %v4482_v4  ;;  %v7532_v4 = vld [vmem:[%s7937_s7 + $0xbac] ss:$16 sps:$4 sm:$0xff]  }
 0x1d7   : > { %5152 = vmatprep.subr.bf16.mxu0 %v7427_v55  ;;  %v7466_v55 = vld [vmem:[%s7937_s7 + $0xb04] ss:$16 sps:$4 sm:$0xff]  }
 0x1d8   : > { %5190 = vmatpush1.bf16.msra.mxu1 %v7416_v26  ;;  %v7467_v26 = vld [vmem:[%s7937_s7 + $0x8e8] ss:$16 sps:$4 sm:$0xff]  }
 0x1d9   : > { %5191 = vmatprep.subr.bf16.mxu1 %v7424_v40 }
 0x1da   : > { %5153 = vmatpush2.bf16.msra.mxu0 %v7425_v20  ;;  %v4484_v20 = vsel %vm2491_vm1, %v4480_v39, %v4476_v48  ;;  %v7530_v48 = vld [vmem:[%s7937_s7 + $0xba8] ss:$16 sps:$4 sm:$0xff]   ;;  %v7538_v39 = vld [vmem:[%s7937_s7 + $0xb8c] ss:$16 sps:$4 sm:$0xff]  }
 0x1db   : > { %5154 = vmatprep.subr.bf16.mxu0 %v7433_v56  ;;  %v8875_v63 = vpack.c.b16 %v4484_v20, %v4484_v20  ;;  %v7553_v20 = vld [vmem:[%s7937_s7 + $0x92c] ss:$16 sps:$4 sm:$0xff]  }
 0x1dc   : > { %5192 = vmatpush2.bf16.msra.mxu1 %v7422_v53  ;;  %v7481_v53 = vld [vmem:[%s7937_s7 + $0x8ac] ss:$16 sps:$4 sm:$0xff]  }
 0x1dd   : > { %5193 = vmatprep.subr.bf16.mxu1 %v7430_v17 }
 0x1de   : > { %5155 = vmatpush2.bf16.msra.mxu0 %v7431_v58  ;;  %v7478_v58 = vld [vmem:[%s7937_s7 + $0xacc] ss:$16 sps:$4 sm:$0xff]  }
 0x1df   : > { %5156 = vmatprep.subr.bf16.mxu0 %v7439_v10  ;;  %v7487_v10 = vld [vmem:[%s7937_s7 + $0x88c] ss:$16 sps:$4 sm:$0xff]  }
 0x1e0   : > { %5194 = vmatpush2.bf16.msra.mxu1 %v7428_v62 }
 0x1e1   : > { %5195 = vmatprep.subr.bf16.mxu1 %v7436_v50  ;;  %v7484_v50 = vld [vmem:[%s7937_s7 + $0xaac] ss:$16 sps:$4 sm:$0xff]  }
 0x1e2   : > { %5157 = vmatpush2.bf16.msra.mxu0 %v7437_v8  ;;  %v7485_v8 = vld [vmem:[%s7937_s7 + $0x888] ss:$16 sps:$4 sm:$0xff]  }
 0x1e3   : > { %5158 = vmatprep.subr.bf16.mxu0 %v7445_v18 }
 0x1e4   : > { %5196 = vmatpush2.bf16.msra.mxu1 %v7434_v49  ;;  %v7482_v49 = vld [vmem:[%s7937_s7 + $0xaa8] ss:$16 sps:$4 sm:$0xff]  }
 0x1e5   : > { %5197 = vmatprep.subr.bf16.mxu1 %v7442_v32  ;;  %v7499_v32 = vld [vmem:[%s7937_s7 + $0x84c] ss:$16 sps:$4 sm:$0xff]  }
 0x1e6   : > { %5159 = vmatpush2.bf16.msra.mxu0 %v7443_v52  ;;  %v7488_v52 = vld [vmem:[%s7937_s7 + $0xa88] ss:$16 sps:$4 sm:$0xff]  }
 0x1e7   : > { %5160 = vmatprep.subr.bf16.mxu0 %v7451_v9  ;;  %v7505_v9 = vld [vmem:[%s7937_s7 + $0x82c] ss:$16 sps:$4 sm:$0xff]  }
 0x1e8   : > { %5198 = vmatpush2.bf16.msra.mxu1 %v7440_v27  ;;  %v7494_v27 = vld [vmem:[%s7937_s7 + $0xa68] ss:$16 sps:$4 sm:$0xff]  }
 0x1e9   : > { %5199 = vmatprep.subr.bf16.mxu1 %v7448_v23  ;;  %v7511_v23 = vld [vmem:[%s7937_s7 + $0x80c] ss:$16 sps:$4 sm:$0xff]  }
 0x1ea   : > { %5161 = vmatpush2.bf16.msra.mxu0 %v7449_v11  ;;  %v7500_v11 = vld [vmem:[%s7937_s7 + $0xa48] ss:$16 sps:$4 sm:$0xff]  }
 0x1eb   : > { %5162 = vmatprep.subr.bf16.mxu0 %v7457_v43  ;;  %v7517_v43 = vld [vmem:[%s7937_s7 + $0x9ec] ss:$16 sps:$4 sm:$0xff]  }
 0x1ec   : > { %5200 = vmatpush2.bf16.msra.mxu1 %v7446_v15  ;;  %v7506_v15 = vld [vmem:[%s7937_s7 + $0xa28] ss:$16 sps:$4 sm:$0xff]  }
 0x1ed   : > { %5201 = vmatprep.subr.bf16.mxu1 %v7454_v61  ;;  %v7523_v61 = vld [vmem:[%s7937_s7 + $0x9cc] ss:$16 sps:$4 sm:$0xff]  }
 0x1ee   : > { %5163 = vmatpush2.bf16.msra.mxu0 %v7455_v57  ;;  %v7512_v57 = vld [vmem:[%s7937_s7 + $0xa08] ss:$16 sps:$4 sm:$0xff]  }
 0x1ef   : > { %5164 = vmatprep.subr.bf16.mxu0 %v7463_v47  ;;  %v7529_v47 = vld [vmem:[%s7937_s7 + $0x9ac] ss:$16 sps:$4 sm:$0xff]  }
 0x1f0   : > { %5202 = vmatpush2.bf16.msra.mxu1 %v7452_v36  ;;  %v7518_v36 = vld [vmem:[%s7937_s7 + $0xbe8] ss:$16 sps:$4 sm:$0xff]  }
 0x1f1   : > { %5203 = vmatprep.subr.bf16.mxu1 %v7460_v59  ;;  %v7535_v59 = vld [vmem:[%s7937_s7 + $0x98c] ss:$16 sps:$4 sm:$0xff]  }
 0x1f2   : > { %5165 = vmatpush2.bf16.msra.mxu0 %v7461_v5  ;;  %v7524_v5 = vld [vmem:[%s7937_s7 + $0xbc8] ss:$16 sps:$4 sm:$0xff]  }
 0x1f3   : > { %5216 = vmatprep.subr.bf16.mxu0 %v7469_v31  ;;  %v7533_v31 = vld [vmem:[%s7937_s7 + $0x988] ss:$16 sps:$4 sm:$0xff]  }
 0x1f4   : > { %5204 = vmatpush2.bf16.msra.mxu1 %v7458_v14  ;;  %v7541_v14 = vld [vmem:[%s7937_s7 + $0x96c] ss:$16 sps:$4 sm:$0xff]  }
 0x1f5   : > { %v3260_v40 = vpop.f32.mrf.mxu0  ;;  %5167 = vmatmul.mubr.bf16.vlgmr.msra.gmra.mxu0 %v8863_v30  ;;  %5205 = vmatprep.subr.bf16.mxu1 %v7466_v55  ;;  %v7539_v55 = vld [vmem:[%s7937_s7 + $0x968] ss:$16 sps:$4 sm:$0xff]  }
 0x1f6   : > { %5217 = vmatpush1.bf16.msra.mxu0 %v7467_v26  ;;  %5248 = vmatprep.mubr.bf16.mxu0 %v8760_v6  ;;  %v7547_v26 = vld [vmem:[%s7937_s7 + $0x94c] ss:$16 sps:$4 sm:$0xff]  }
 0x1f7   : > { %v3262_v56 = vpop.f32.mrf.mxu0  ;;  %5218 = vmatprep.subr.bf16.mxu0 %v7475_v38  ;;  %v7536_v38 = vld [vmem:[%s7937_s7 + $0xb88] ss:$16 sps:$4 sm:$0xff]  }
 0x1f8   : > { %5206 = vmatpush2.bf16.msra.mxu1 %v7464_v60  ;;  %v7544_v60 = vld [vmem:[%s7937_s7 + $0xb6c] ss:$16 sps:$4 sm:$0xff]  }
 0x1f9   : > { %v3264_v17 = vpop.f32.mrf.mxu0  ;;  %5257 = vmatprep.subr.bf16.mxu1 %v7472_v42  ;;  %v7542_v42 = vld [vmem:[%s7937_s7 + $0xb68] ss:$16 sps:$4 sm:$0xff]  }
 0x1fa   : > { %5219 = vmatpush1.bf16.msra.mxu0 %v7473_v35  ;;  %v7550_v35 = vld [vmem:[%s7937_s7 + $0xb4c] ss:$16 sps:$4 sm:$0xff]  }
 0x1fb   : > { %v3265_v44 = vpop.f32.mrf.mxu0  ;;  %5220 = vmatprep.subr.bf16.mxu0 %v7481_v53  ;;  %v3301_v62 = vpop.f32.mrf.mxu1  ;;  %5208 = vmatmul.mubr.bf16.vlgmr.msra.gmra.mxu1 %v8875_v63  ;;  %v7559_v53 = vld [vmem:[%s7937_s7 + $0x90c] ss:$16 sps:$4 sm:$0xff]  }
 0x1fc   : > { %v8882_v6 = vadd.f32 %v3301_v62, %v3260_v40  ;;  %5258 = vmatpush1.bf16.msra.mxu1 %v7470_v0  ;;  %5289 = vmatprep.mubr.bf16.mxu1 %v8776_v41  ;;  %v7490_v41 = vld [vmem:[%s7937_s7 + $0xa8c] ss:$16 sps:$4 sm:$0xff]   ;;  %v7545_v40 = vld [vmem:[%s7937_s7 + $0x948] ss:$16 sps:$4 sm:$0xff]  }
 0x1fd   : > { %v3303_v7 = vpop.f32.mrf.mxu1  ;;  %5259 = vmatprep.subr.bf16.mxu1 %v7478_v58  ;;  %v7548_v0 = vld [vmem:[%s7937_s7 + $0xb48] ss:$16 sps:$4 sm:$0xff]   ;;  %v7556_v17 = vld [vmem:[%s7937_s7 + $0xb2c] ss:$16 sps:$4 sm:$0xff]  }
 0x1fe   : > { %5221 = vmatpush1.bf16.msra.mxu0 %v7479_v25  ;;  %v8888_v19 = vadd.f32 %v3303_v7, %v3262_v56  ;;  %v7551_v56 = vld [vmem:[%s7937_s7 + $0x928] ss:$16 sps:$4 sm:$0xff]   ;;  %v7562_v44 = vld [vmem:[%s7937_s7 + $0xb0c] ss:$16 sps:$4 sm:$0xff]  }
 0x1ff   : > { %5222 = vmatprep.subr.bf16.mxu0 %v7487_v10  ;;  %v3305_v18 = vpop.f32.mrf.mxu1  ;;  %v7557_v58 = vld [vmem:[%s7937_s7 + $0x908] ss:$16 sps:$4 sm:$0xff]  }
 0x200   : > { %5260 = vmatpush1.bf16.msra.mxu1 %v7476_v22  ;;  %v7554_v25 = vld [vmem:[%s7937_s7 + $0xb28] ss:$16 sps:$4 sm:$0xff]  }
 0x201   : > { %v3306_v13 = vpop.f32.mrf.mxu1  ;;  %5261 = vmatprep.subr.bf16.mxu1 %v7484_v50  ;;  %v7560_v10 = vld [vmem:[%s7937_s7 + $0xb08] ss:$16 sps:$4 sm:$0xff]  }
 0x202   : > { %5223 = vmatpush1.bf16.msra.mxu0 %v7485_v8 }
 0x203   : > { %5224 = vmatprep.subr.bf16.mxu0 %v7493_v2 }
 0x204   : > { %5262 = vmatpush1.bf16.msra.mxu1 %v7482_v49 }
 0x205   : > { %5263 = vmatprep.subr.bf16.mxu1 %v7490_v41 }
 0x206   : > { %5225 = vmatpush1.bf16.msra.mxu0 %v7491_v12 }
 0x207   : > { %5226 = vmatprep.subr.bf16.mxu0 %v7499_v32 }
 0x208   : > { %5264 = vmatpush1.bf16.msra.mxu1 %v7488_v52 }
 0x209   : > { %5265 = vmatprep.subr.bf16.mxu1 %v7496_v29 }
 0x20a   : > { %5227 = vmatpush1.bf16.msra.mxu0 %v7497_v45 }
 0x20b   : > { %5228 = vmatprep.subr.bf16.mxu0 %v7505_v9 }
 0x20c   : > { %5266 = vmatpush1.bf16.msra.mxu1 %v7494_v27 }
 0x20d   : > { %5267 = vmatprep.subr.bf16.mxu1 %v7502_v33 }
 0x20e   : > { %5229 = vmatpush1.bf16.msra.mxu0 %v7503_v21 }
 0x20f   : > { %5230 = vmatprep.subr.bf16.mxu0 %v7511_v23 }
 0x210   : > { %5268 = vmatpush1.bf16.msra.mxu1 %v7500_v11 }
 0x211   : > { %5269 = vmatprep.subr.bf16.mxu1 %v7508_v16 }
 0x212   : > { %5231 = vmatpush1.bf16.msra.mxu0 %v7509_v24 }
 0x213   : > { %5232 = vmatprep.subr.bf16.mxu0 %v7517_v43 }
 0x214   : > { %5270 = vmatpush1.bf16.msra.mxu1 %v7506_v15 }
 0x215   : > { %5271 = vmatprep.subr.bf16.mxu1 %v7514_v1 }
 0x216   : > { %5233 = vmatpush2.bf16.msra.mxu0 %v7515_v3 }
 0x217   : > { %5234 = vmatprep.subr.bf16.mxu0 %v7523_v61 }
 0x218   : > { %5272 = vmatpush1.bf16.msra.mxu1 %v7512_v57 }
 0x219   : > { %5273 = vmatprep.subr.bf16.mxu1 %v7520_v51 }
 0x21a   : > { %5235 = vmatpush2.bf16.msra.mxu0 %v7521_v37 }
 0x21b   : > { %5236 = vmatprep.subr.bf16.mxu0 %v7529_v47 }
 0x21c   : > { %5274 = vmatpush2.bf16.msra.mxu1 %v7518_v36 }
 0x21d   : > { %5275 = vmatprep.subr.bf16.mxu1 %v7526_v54  ;;  %v7751_v54 = vmov 1983009808  }
 0x21e   : > { %5237 = vmatpush2.bf16.msra.mxu0 %v7527_v34  ;;  %v5310_v34 = vunpack.c.l.s4 %v7751_v54 }
 0x21f   : > { %5238 = vmatprep.subr.bf16.mxu0 %v7535_v59  ;;  %v5312_v59 = vlaneseq }
 0x220   : > { %5276 = vmatpush2.bf16.msra.mxu1 %v7524_v5 }
 0x221   : > { %5277 = vmatprep.subr.bf16.mxu1 %v7532_v4 }
 0x222   : > { %5239 = vmatpush2.bf16.msra.mxu0 %v7533_v31 }
 0x223   : > { %5240 = vmatprep.subr.bf16.mxu0 %v7541_v14  ;;  %v5311_v14 = vunpack.c.0.s8 %v5310_v34 }
 0x224   : > { %5278 = vmatpush2.bf16.msra.mxu1 %v7530_v48  ;;  %v5313_v48 = vshrl.u32 %v5312_v59, 7 }
 0x225   : > { %5279 = vmatprep.subr.bf16.mxu1 %v7538_v39 }
 0x226   : > { %5241 = vmatpush2.bf16.msra.mxu0 %v7539_v55 }
 0x227   : > { %5242 = vmatprep.subr.bf16.mxu0 %v7547_v26 }
 0x228   : > { %5280 = vmatpush2.bf16.msra.mxu1 %v7536_v38 }
 0x229   : > { %5281 = vmatprep.subr.bf16.mxu1 %v7544_v60  ;;  %v5314_v60 = vsub.s32 %v5311_v14, %v5313_v48 }
 0x22a   : > { %5243 = vmatpush2.bf16.msra.mxu0 %v7545_v40 }
 0x22b   : > { %5244 = vmatprep.subr.bf16.mxu0 %v7553_v20 }
 0x22c   : > { %5282 = vmatpush2.bf16.msra.mxu1 %v7542_v42 }
 0x22d   : > { %5283 = vmatprep.subr.bf16.mxu1 %v7550_v35 }
 0x22e   : > { %5245 = vmatpush2.bf16.msra.mxu0 %v7551_v56 }
 0x22f   : > { %5246 = vmatprep.subr.bf16.mxu0 %v7559_v53 }
 0x230   : > { %5284 = vmatpush2.bf16.msra.mxu1 %v7548_v0  ;;  %v5302_v0 = vld [vmem:[%s8047_s15] sm:$0xff] }
 0x231   : > { %5285 = vmatprep.subr.bf16.mxu1 %v7556_v17 }
 0x232   : > { %5247 = vmatpush2.bf16.msra.mxu0 %v7557_v58 }
 0x234   : > { %5286 = vmatpush2.bf16.msra.mxu1 %v7554_v25 }
 0x235   : > { %v4010_v62 = vpop.f32.mrf.mxu0  ;;  %5249 = vmatmul.mubr.bf16.vlgmr.msra.gmra.mxu0 %v8863_v30  ;;  %5287 = vmatprep.subr.bf16.mxu1 %v7562_v44 }
 0x236   : > { %v4011_v22 = vadd.f32 %v4010_v62, %v8785_v28 }
 0x237   : > { %v4012_v7 = vpop.f32.mrf.mxu0 }
 0x238   : > { %v4013_v50 = vadd.f32 %v4012_v7, %v8794_v46  ;;  %5288 = vmatpush2.bf16.msra.mxu1 %v7560_v10 }
 0x239   : > { %v4014_v8 = vpop.f32.mrf.mxu0 }
 0x23b   : > { %v4015_v2 = vpop.f32.mrf.mxu0  ;;  %v4051_v18 = vpop.f32.mrf.mxu1  ;;  %5290 = vmatmul.mubr.bf16.vlgmr.msra.gmra.mxu1 %v8875_v63 }
 0x23c   : > { %v4052_v49 = vadd.f32 %v4051_v18, %v4011_v22 }
 0x23d   : > { %v4053_v13 = vpop.f32.mrf.mxu1 }
 0x23e   : > { %v4054_v41 = vadd.f32 %v4053_v13, %v4013_v50 }
 0x23f   : > { %v4055_v12 = vpop.f32.mrf.mxu1 }
 0x241   : > { %v4056_v32 = vpop.f32.mrf.mxu1 }
 0x275   : > { %v4092_v52 = vpop.f32.mrf.mxu0 }
 0x276   : > { %v4093_v30 = vadd.f32 %v4092_v52, %v8882_v6 }
 0x277   : > { %v4094_v29 = vpop.f32.mrf.mxu0 }
 0x278   : > { %v4095_v28 = vadd.f32 %v4094_v29, %v8888_v19 }
 0x279   : > { %v4096_v45 = vpop.f32.mrf.mxu0 }
 0x27b   : > { %v4097_v9 = vpop.f32.mrf.mxu0  ;;  %v4133_v46 = vpop.f32.mrf.mxu1 }
 0x27c   : > { %v4134_v27 = vadd.f32 %v4133_v46, %v4093_v30 }
 0x27d   : > { %v4135_v33 = vpop.f32.mrf.mxu1 }
 0x27e   : > { %v4136_v21 = vadd.f32 %v4135_v33, %v4095_v28 }
 0x27f   : > { %v4137_v23 = vpop.f32.mrf.mxu1 }
 0x281   : > { %v4138_v11 = vpop.f32.mrf.mxu1 }
 0x2b5   : > { %v5168_v63 = vpop.f32.mrf.mxu0 }
 0x2b7   : > { %v5170_v16 = vpop.f32.mrf.mxu0 }
 0x2b9   : > { %v5172_v24 = vpop.f32.mrf.mxu0 }
 0x2bb   : > { %v5173_v43 = vpop.f32.mrf.mxu0  ;;  %v5209_v15 = vpop.f32.mrf.mxu1 }
 0x2bc   : > { %v5210_v1 = vadd.f32 %v5209_v15, %v5168_v63 }
 0x2bd   : > { %v5211_v3 = vpop.f32.mrf.mxu1 }
 0x2be   : > { %v5298_v61 = vadd.f32 %v5210_v1, %v4052_v49  ;;  %v5212_v6 = vadd.f32 %v5211_v3, %v5170_v16 }
 0x2bf   : > { %v5213_v57 = vpop.f32.mrf.mxu1 }
 0x2c0   : > { %v5299_v51 = vadd.f32 %v5212_v6, %v4054_v41 }
 0x2c1   : > { %v5214_v19 = vpop.f32.mrf.mxu1 }
 0x2c2   : > { %v5307_v37 = vcombine.low %v5298_v61, %v5299_v51 }
 0x2c4   : > { %v5315_v56 = vrot.slane %v5307_v37, %v5314_v60 }
 0x2f5   : > { %v5250_v47 = vpop.f32.mrf.mxu0 }
 0x2f7   : > { %v5252_v36 = vpop.f32.mrf.mxu0 }
 0x2f9   : > { %v5254_v5 = vpop.f32.mrf.mxu0 }
 0x2fb   : > { %v5255_v4 = vpop.f32.mrf.mxu0  ;;  %v5291_v31 = vpop.f32.mrf.mxu1 }
 0x2fc   : > { %v5292_v39 = vadd.f32 %v5291_v31, %v5250_v47 }
 0x2fd   : > { %v5293_v55 = vpop.f32.mrf.mxu1 }
 0x2fe   : > { %v5294_v26 = vadd.f32 %v5293_v55, %v5252_v36  ;;  %v5300_v40 = vadd.f32 %v5292_v39, %v4134_v27 }
 0x2ff   : > { %v5295_v38 = vpop.f32.mrf.mxu1 }
 0x300   : > { %v5301_v20 = vadd.f32 %v5294_v26, %v4136_v21 }
 0x301   : > { %v5296_v42 = vpop.f32.mrf.mxu1 }
 0x302   : > { %v5308_v35 = vcombine.low %v5300_v40, %v5301_v20 }
 0x304   : > { %v5322_v53 = vrot.slane %v5308_v35, %v5314_v60 }
 0x306   : > { %v5323_v17 = vcombine.low %v5315_v56, %v5322_v53 }
 0x308   : > { %v5325_v58 = vadd.f32 %v5323_v17, %v5302_v0 }
 0x30a   : > { %5326 = vst [vmem:[%s8047_s15] sm:$0xff] %v5325_v58 }
 0x30b   : > { %7632 = shalt.err (!%p7629_p6)
}
 0x30c   : > { %s7633_s27 = scalar_lea.hbm %s5340_s4, 128  ;;  %s7637_s15 = scalar_lea.hbm %s9048_s25, 256 }
 0x30d   : > { %p7634_p0 = scmp.ne.s32.totalorder %s5340_s4, %s7633_s27  ;;  %p7638_p8 = scmp.lt.s32.totalorder %s5340_s4, %s9048_s25 }
 0x30e   : > { %p7639_p4 = scmp.lt.s32.totalorder %s7637_s15, %s7633_s27 }
 0x30f   : > { %p7635_p13 = pnand %p7634_p0, %p9049_p11 }
 0x310   : > { %p7640_p7 = por %p7639_p4, %p7638_p8 }
 0x311   : > { %p7636_p1 = pneg %p7635_p13 }
 0x313   : > { %p7641_p10 = pnand %p7640_p7, %p7636_p1 }
 0x315   : > { %7644 = shalt.err (!%p7641_p10)
}
 0x316   : > { %6796 = dma.vmem_to_hbm [thread:$0]  (%p9049_p11), %s5343_s19, 128, %s5340_s4, %s5328_s29  }
 0x317 PF: > { %p6810_p3 = scmp.ge.s32.totalorder %s7743_s22, 2  ;;  %s5354_s24 = sand.u32 1, %s7703_s12  }
 0x318   : > { %p9050_p5 = scmp.ne.s32.totalorder %s9023_s3, 0  ;;  %s5355_s7 = scalar_lea.sflag [#allocation4], %s5354_s24 }
 0x31a   : > { %p6806_p9 = pnand %p6810_p3, %p9050_p5 }
 0x31c   : > { %p6807_p12 = pneg %p6806_p9 }
 0x31e   : > { %7698 = dma.done.wait (%p6807_p12), %s5355_s7, 128  }
 0x31f   : > { %7700 = vsyncadd (%p6807_p12), %s5355_s7, 4294967168  ;;  %s22_s22 = sadd.s32 1, %s7743_s22   ;;  %s9051_s8 = sld [smem:[#allocation13_spill]] }
 0x320   : > { %p19_p2 = scmp.ge.s32.totalorder %s22_s22, 8   ;;  %s9052_s12 = smov %s7707_s13 }
 0x321   : > { %s9053_s13 = smov %s7711_s14  ;;  %s9054_s14 = smov %s7903_s9 }
 0x322   : > { %s9055_s15 = smov %s7719_s16  ;;  %s9056_s16 = smov %s7723_s17 }
 0x323   : > { %s9057_s17 = smov %s7908_s11  ;;  %s9058_s18 = smov %s7735_s20 }
 0x324   : > { %s9059_s19 = smov %s7739_s21  ;;  %s9060_s20 = smov %s9063_s23 }
 0x325   : > { %s9061_s21 = smov %s9051_s8  ;;  %21 = sbr.rel (!%p19_p2) target bundleno = 14 (0xe), region = 435 }
 0x32a   :  { %5360 = vsyncpa [#allocation3], 1 }
 0x32b   :  { %5362 = vsyncpa [#allocation3 + $0x1], 1 }
 0x32c   :  { %5363 = vsyncpa [#allocation6], 1 }
 0x32d   :  { %5365 = vsyncpa [#allocation6 + $0x1], 1 }
 0x32e   :  { %5366 = vsyncpa [#allocation4], 1 }
 0x32f   :  { %5368 = vsyncpa [#allocation4 + $0x1], 1 }

</bundles_post_ra>
